<compile_context>
chip_gen: v5e
topology: v5e:2x2
jax: 0.10.0
libtpu: 0.0.40
codegen_flags: <defaults>
</compile_context>

<pallas_src>
import functools

import jax
import jax.numpy as jnp
from jax.experimental import pallas as pl
from jax.experimental.pallas import tpu as pltpu

# ------------------------- model hyper-parameters -------------------------
STEM_WIDTH = 16
STAGE_WIDTHS = (32, 64)     # feature width per set-abstraction stage
STRIDES = (4, 4)            # point-count reduction per stage
K_NEIGHBORS = 8             # neighbors per group
BN_EPS = 1e-5


# ----------------------------- Pallas kernel ------------------------------
def _pointnext_fused_kernel(
    x0_ref, idx1_ref, rel1_ref, idx2_ref, rel2_ref, pool_ref,
    ws_ref, bs_ref,
    wf1_ref, wx1_ref, b1_ref,
    wf2_ref, wx2_ref, b2_ref,
    wh_ref, bh_ref,
    obn_scale_ref, obn_shift_ref,
    o_ref, *, k):
    f32 = jnp.float32

    # ---- stem: pointwise Conv1d(1x1) (BN scale folded into W) + ReLU ----
    x1 = jnp.dot(x0_ref[...], ws_ref[...], preferred_element_type=f32) + bs_ref[...]
    x1 = jnp.maximum(x1, 0.0)                                    # (B*N, 16)

    def sa_stage(x_src, idx_ref, rel_ref, wf_ref, wx_ref, b_ref):
        # x_src:  (S, Cin)  VMEM-resident source features (rows = b*M_src + m)
        # idx_ref:(R, 1)    int32 global source-row indices, rows ordered k-major
        # rel_ref:(R, 3)    neighbor xyz minus center xyz, same row ordering
        r = idx_ref.shape[0]
        s = x_src.shape[0]
        bm = r // k
        # In-kernel gather as a one-hot matmul (MXU) -- no HBM grouped tensor.
        onehot = (jax.lax.broadcasted_iota(jnp.int32, (r, s), 1)
                  == idx_ref[...]).astype(f32)                   # (R, S)
        gathered = jnp.dot(onehot, x_src, preferred_element_type=f32)   # (R, Cin)
        # concat([feat, rel]) @ W  ==  feat @ Wf + rel @ Wx   (BN folded into W)
        y = (jnp.dot(gathered, wf_ref[...], preferred_element_type=f32)
             + jnp.dot(rel_ref[...], wx_ref[...], preferred_element_type=f32)
             + b_ref[...])
        y = jnp.maximum(y, 0.0)                                  # (R, Cout)
        # max over K neighbors: rows are k-major, so K static contiguous sublane
        # slices of height bm -> jnp.maximum tree on the VPU (no reshape/relayout).
        out = y[0:bm]
        for kk in range(1, k):
            out = jnp.maximum(out, y[kk * bm:(kk + 1) * bm])
        return out                                               # (B*M, Cout)

    x2 = sa_stage(x1, idx1_ref, rel1_ref, wf1_ref, wx1_ref, b1_ref)   # (B*M1, 32)
    x3 = sa_stage(x2, idx2_ref, rel2_ref, wf2_ref, wx2_ref, b2_ref)   # (B*M2, 64)

    # ---- head MLP (BN folded) + ReLU ----
    h = jnp.dot(x3, wh_ref[...], preferred_element_type=f32) + bh_ref[...]
    h = jnp.maximum(h, 0.0)                                      # (B*M2, E)

    # ---- outer module: mean over points (block-diag averaging matmul),
    #      then the commuted BatchNorm affine, then ReLU ----
    pooled = jnp.dot(pool_ref[...], h, preferred_element_type=f32)    # (B, E)
    o_ref[...] = jnp.maximum(
        pooled * obn_scale_ref[...] + obn_shift_ref[...], 0.0)


def _full_spec(shape):
    zeros = (0,) * len(shape)
    return pl.BlockSpec(shape, lambda i, _z=zeros: _z)


def pointnext_fused(inputs, out_shape):
    return pl.pallas_call(
        functools.partial(_pointnext_fused_kernel, k=K_NEIGHBORS),
        out_shape=jax.ShapeDtypeStruct(out_shape, jnp.float32),
        grid=(1,),
        in_specs=[_full_spec(a.shape) for a in inputs],
        out_specs=_full_spec(out_shape),
        compiler_params=pltpu.CompilerParams(
            dimension_semantics=("arbitrary",),      # sub-us body: don't shard cores
            vmem_limit_bytes=64 * 1024 * 1024),
    )(*inputs)


# ------------------------------- JAX glue ---------------------------------
def _knn_group_rows(src_xyz, centers_xyz, k, n_src):
    """kNN on geometry only.  Returns k-major-ordered global row indices into the
    flattened (B*N_src, C) feature matrix and the matching relative xyz rows."""
    b, m, _ = centers_xyz.shape
    d = (jnp.sum(centers_xyz ** 2, axis=-1, keepdims=True)
         + jnp.sum(src_xyz ** 2, axis=-1)[:, None, :]
         - 2.0 * jnp.einsum("bmd,bnd->bmn", centers_xyz, src_xyz))      # (B, M, N)
    _, idx = jax.lax.top_k(-d, k)                                       # (B, M, k)
    xyz_g = jnp.take_along_axis(src_xyz[:, None, :, :], idx[..., None], axis=2)
    rel = xyz_g - centers_xyz[:, :, None, :]                            # (B, M, k, 3)
    gidx = idx + jnp.arange(b)[:, None, None] * n_src                   # global rows
    # row ordering: row = kk*(B*M) + b*M + m   (k-major)
    idx_rows = jnp.transpose(gidx, (2, 0, 1)).reshape(k * b * m, 1).astype(jnp.int32)
    rel_rows = jnp.transpose(rel, (2, 0, 1, 3)).reshape(k * b * m, 3).astype(jnp.float32)
    return idx_rows, rel_rows


def _bn_affine(key, c):
    """Deterministic eval-mode BatchNorm params as (scale, shift)."""
    kg, kb = jax.random.split(key)
    gamma = 1.0 + 0.1 * jax.random.normal(kg, (c,), jnp.float32)
    beta = 0.1 * jax.random.normal(kb, (c,), jnp.float32)
    running_mean = jnp.zeros((c,), jnp.float32)
    running_var = jnp.ones((c,), jnp.float32)
    scale = gamma * jax.lax.rsqrt(running_var + BN_EPS)
    shift = beta - running_mean * scale
    return scale, shift


def _linear(key, cin, cout):
    return jax.random.normal(key, (cin, cout), jnp.float32) * (1.0 / jnp.sqrt(cin))


def init_params(key, in_dim, emb_dims):
    ks = jax.random.split(key, 9)
    p = {}
    # stem (BN scale folded into W)
    w = _linear(ks[0], in_dim, STEM_WIDTH)
    sc, sh = _bn_affine(ks[1], STEM_WIDTH)
    p["stem_w"] = w * sc[None, :]
    p["stem_b"] = sh.reshape(1, STEM_WIDTH)
    # set-abstraction stages (W split into feature / rel-xyz halves, BN folded)
    cin = STEM_WIDTH
    for i, width in enumerate(STAGE_WIDTHS):
        w = _linear(ks[2 + 2 * i], cin + 3, width)
        sc, sh = _bn_affine(ks[3 + 2 * i], width)
        wfold = w * sc[None, :]
        p[f"s{i + 1}_wf"] = wfold[:cin]
        p[f"s{i + 1}_wx"] = wfold[cin:]
        p[f"s{i + 1}_b"] = sh.reshape(1, width)
        cin = width
    # head (BN folded)
    w = _linear(ks[6], cin, emb_dims)
    sc, sh = _bn_affine(ks[7], emb_dims)
    p["head_w"] = w * sc[None, :]
    p["head_b"] = sh.reshape(1, emb_dims)
    # outer BatchNorm1d (eval-mode, applied after mean -- affine commutes with mean)
    sc, sh = _bn_affine(ks[8], emb_dims)
    p["out_scale"] = sc.reshape(1, emb_dims)
    p["out_shift"] = sh.reshape(1, emb_dims)
    return p


def pointnext_encoder_forward(params, pc_feat_ncw, xyz_ncw):
    """Forward pass matching PointNextEncoder.forward(pc_feat, xyz) semantics.

    pc_feat_ncw: (B, in_dim, N)  xyz_ncw: (B, 3, N)   (PyTorch NCW convention)
    returns: (B, emb_dims)
    """
    B, in_dim, N = pc_feat_ncw.shape
    x0 = jnp.transpose(pc_feat_ncw, (0, 2, 1)).astype(jnp.float32).reshape(B * N, in_dim)
    pts = jnp.transpose(xyz_ncw, (0, 2, 1)).astype(jnp.float32)          # (B, N, 3)

    # TODO(synk): PointNeXt uses furthest-point-sampling + ball query; replaced here
    # by deterministic strided subsampling + kNN (geometry-only, plain JAX top_k).
    c1 = pts[:, ::STRIDES[0]]                                            # (B, M1, 3)
    idx1, rel1 = _knn_group_rows(pts, c1, K_NEIGHBORS, N)
    c2 = c1[:, ::STRIDES[1]]                                             # (B, M2, 3)
    idx2, rel2 = _knn_group_rows(c1, c2, K_NEIGHBORS, c1.shape[1])

    m2 = c2.shape[1]
    # block-diagonal averaging matrix: pooled[b] = mean_m h[b*M2 + m]
    pool = jnp.kron(jnp.eye(B, dtype=jnp.float32),
                    jnp.full((1, m2), 1.0 / m2, dtype=jnp.float32))       # (B, B*M2)

    emb_dims = params["head_w"].shape[1]
    inputs = (x0, idx1, rel1, idx2, rel2, pool,
              params["stem_w"], params["stem_b"],
              params["s1_wf"], params["s1_wx"], params["s1_b"],
              params["s2_wf"], params["s2_wx"], params["s2_b"],
              params["head_w"], params["head_b"],
              params["out_scale"], params["out_shift"])
    # TODO(synk): training-mode BatchNorm batch statistics are not modeled
    # (eval-mode running stats folded into scale/shift).
    return pointnext_fused(inputs, (B, emb_dims))


if __name__ == "__main__":
    B, IN_DIM, N = 2, 4, 128
    EMB_DIMS = 64

    key = jax.random.PRNGKey(0)
    k_feat, k_xyz = jax.random.split(key)
    pc_feat = jax.random.normal(k_feat, (B, IN_DIM, N), jnp.float32)  # torch NCW
    xyz = jax.random.normal(k_xyz, (B, 3, N), jnp.float32)            # torch NCW

    params = init_params(jax.random.PRNGKey(42), IN_DIM, EMB_DIMS)

    fwd = jax.jit(pointnext_encoder_forward)
    out = fwd(params, pc_feat, xyz)
    out = jax.block_until_ready(out)

    assert out.shape == (B, EMB_DIMS), out.shape
    assert bool(jnp.all(jnp.isfinite(out)))
    assert bool(jnp.all(out >= 0.0))  # post-ReLU
    print("KERNEL_OK")
</pallas_src>

<mosaic_0001>
module attributes {stable_mosaic.version = 11 : i64} {
  func.func @_pointnext_fused_kernel(%arg0: i32, %arg1: memref<256x4xf32, #tpu.memory_space<vmem>>, %arg2: memref<512x1xi32, #tpu.memory_space<vmem>>, %arg3: memref<512x3xf32, #tpu.memory_space<vmem>>, %arg4: memref<128x1xi32, #tpu.memory_space<vmem>>, %arg5: memref<128x3xf32, #tpu.memory_space<vmem>>, %arg6: memref<2x16xf32, #tpu.memory_space<vmem>>, %arg7: memref<4x16xf32, #tpu.memory_space<vmem>>, %arg8: memref<1x16xf32, #tpu.memory_space<vmem>>, %arg9: memref<16x32xf32, #tpu.memory_space<vmem>>, %arg10: memref<3x32xf32, #tpu.memory_space<vmem>>, %arg11: memref<1x32xf32, #tpu.memory_space<vmem>>, %arg12: memref<32x64xf32, #tpu.memory_space<vmem>>, %arg13: memref<3x64xf32, #tpu.memory_space<vmem>>, %arg14: memref<1x64xf32, #tpu.memory_space<vmem>>, %arg15: memref<64x64xf32, #tpu.memory_space<vmem>>, %arg16: memref<1x64xf32, #tpu.memory_space<vmem>>, %arg17: memref<1x64xf32, #tpu.memory_space<vmem>>, %arg18: memref<1x64xf32, #tpu.memory_space<vmem>>, %arg19: memref<2x64xf32, #tpu.memory_space<vmem>>) attributes {dimension_semantics = [#tpu.dimension_semantics<arbitrary>], iteration_bounds = array<i64: 1>, scalar_prefetch = 0 : i64, scratch_operands = 0 : i64, tpu.core_type = #tpu.core_type<tc>, window_params = [{pipeline_mode = #tpu.pipeline_mode<synchronous>, transform_indices = @transform_0, window_bounds = array<i64: 256, 4>}, {pipeline_mode = #tpu.pipeline_mode<synchronous>, transform_indices = @transform_1, window_bounds = array<i64: 512, 1>}, {pipeline_mode = #tpu.pipeline_mode<synchronous>, transform_indices = @transform_2, window_bounds = array<i64: 512, 3>}, {pipeline_mode = #tpu.pipeline_mode<synchronous>, transform_indices = @transform_3, window_bounds = array<i64: 128, 1>}, {pipeline_mode = #tpu.pipeline_mode<synchronous>, transform_indices = @transform_4, window_bounds = array<i64: 128, 3>}, {pipeline_mode = #tpu.pipeline_mode<synchronous>, transform_indices = @transform_5, window_bounds = array<i64: 2, 16>}, {pipeline_mode = #tpu.pipeline_mode<synchronous>, transform_indices = @transform_6, window_bounds = array<i64: 4, 16>}, {pipeline_mode = #tpu.pipeline_mode<synchronous>, transform_indices = @transform_7, window_bounds = array<i64: 1, 16>}, {pipeline_mode = #tpu.pipeline_mode<synchronous>, transform_indices = @transform_8, window_bounds = array<i64: 16, 32>}, {pipeline_mode = #tpu.pipeline_mode<synchronous>, transform_indices = @transform_9, window_bounds = array<i64: 3, 32>}, {pipeline_mode = #tpu.pipeline_mode<synchronous>, transform_indices = @transform_10, window_bounds = array<i64: 1, 32>}, {pipeline_mode = #tpu.pipeline_mode<synchronous>, transform_indices = @transform_11, window_bounds = array<i64: 32, 64>}, {pipeline_mode = #tpu.pipeline_mode<synchronous>, transform_indices = @transform_12, window_bounds = array<i64: 3, 64>}, {pipeline_mode = #tpu.pipeline_mode<synchronous>, transform_indices = @transform_13, window_bounds = array<i64: 1, 64>}, {pipeline_mode = #tpu.pipeline_mode<synchronous>, transform_indices = @transform_14, window_bounds = array<i64: 64, 64>}, {pipeline_mode = #tpu.pipeline_mode<synchronous>, transform_indices = @transform_15, window_bounds = array<i64: 1, 64>}, {pipeline_mode = #tpu.pipeline_mode<synchronous>, transform_indices = @transform_16, window_bounds = array<i64: 1, 64>}, {pipeline_mode = #tpu.pipeline_mode<synchronous>, transform_indices = @transform_17, window_bounds = array<i64: 1, 64>}, {pipeline_mode = #tpu.pipeline_mode<synchronous>, transform_indices = @transform_18, window_bounds = array<i64: 2, 64>}]} {
    %c0 = arith.constant 0 : index
    %c0_0 = arith.constant 0 : index
    %0 = vector.load %arg1[%c0, %c0_0] : memref<256x4xf32, #tpu.memory_space<vmem>>, vector<256x4xf32>
    %c0_1 = arith.constant 0 : index
    %c0_2 = arith.constant 0 : index
    %1 = vector.load %arg7[%c0_1, %c0_2] : memref<4x16xf32, #tpu.memory_space<vmem>>, vector<4x16xf32>
    %cst = arith.constant dense<0.000000e+00> : vector<256x16xf32>
    %2 = tpu.matmul %0, %1, %cst {dimension_numbers = #tpu.dot_dimension_numbers<[1], [0], [0], [1], [0, 0, 1, 1], [], []>} : vector<256x4xf32>, vector<4x16xf32>, vector<256x16xf32> -> vector<256x16xf32>
    %c0_3 = arith.constant 0 : index
    %c0_4 = arith.constant 0 : index
    %3 = vector.load %arg8[%c0_3, %c0_4] : memref<1x16xf32, #tpu.memory_space<vmem>>, vector<1x16xf32>
    %4 = vector.broadcast %3 : vector<1x16xf32> to vector<256x16xf32>
    %5 = arith.addf %2, %4 : vector<256x16xf32>
    %cst_5 = arith.constant 0.000000e+00 : f32
    %6 = vector.broadcast %cst_5 : f32 to vector<256x16xf32>
    %7 = arith.maximumf %5, %6 : vector<256x16xf32>
    %8 = tpu.iota {dimensions = array<i32: 1>} : vector<512x256xi32>
    %c0_6 = arith.constant 0 : index
    %c0_7 = arith.constant 0 : index
    %9 = vector.load %arg2[%c0_6, %c0_7] : memref<512x1xi32, #tpu.memory_space<vmem>>, vector<512x1xi32>
    %10 = vector.broadcast %9 : vector<512x1xi32> to vector<512x256xi32>
    %11 = arith.cmpi eq, %8, %10 : vector<512x256xi32>
    %12 = arith.extui %11 : vector<512x256xi1> to vector<512x256xi32>
    %13 = arith.sitofp %12 : vector<512x256xi32> to vector<512x256xf32>
    %cst_8 = arith.constant dense<0.000000e+00> : vector<512x16xf32>
    %14 = tpu.matmul %13, %7, %cst_8 {dimension_numbers = #tpu.dot_dimension_numbers<[1], [0], [0], [1], [0, 0, 1, 1], [], []>} : vector<512x256xf32>, vector<256x16xf32>, vector<512x16xf32> -> vector<512x16xf32>
    %c0_9 = arith.constant 0 : index
    %c0_10 = arith.constant 0 : index
    %15 = vector.load %arg9[%c0_9, %c0_10] : memref<16x32xf32, #tpu.memory_space<vmem>>, vector<16x32xf32>
    %cst_11 = arith.constant dense<0.000000e+00> : vector<512x32xf32>
    %16 = tpu.matmul %14, %15, %cst_11 {dimension_numbers = #tpu.dot_dimension_numbers<[1], [0], [0], [1], [0, 0, 1, 1], [], []>} : vector<512x16xf32>, vector<16x32xf32>, vector<512x32xf32> -> vector<512x32xf32>
    %c0_12 = arith.constant 0 : index
    %c0_13 = arith.constant 0 : index
    %17 = vector.load %arg3[%c0_12, %c0_13] : memref<512x3xf32, #tpu.memory_space<vmem>>, vector<512x3xf32>
    %c0_14 = arith.constant 0 : index
    %c0_15 = arith.constant 0 : index
    %18 = vector.load %arg10[%c0_14, %c0_15] : memref<3x32xf32, #tpu.memory_space<vmem>>, vector<3x32xf32>
    %cst_16 = arith.constant dense<0.000000e+00> : vector<512x32xf32>
    %19 = tpu.matmul %17, %18, %cst_16 {dimension_numbers = #tpu.dot_dimension_numbers<[1], [0], [0], [1], [0, 0, 1, 1], [], []>} : vector<512x3xf32>, vector<3x32xf32>, vector<512x32xf32> -> vector<512x32xf32>
    %20 = arith.addf %16, %19 : vector<512x32xf32>
    %c0_17 = arith.constant 0 : index
    %c0_18 = arith.constant 0 : index
    %21 = vector.load %arg11[%c0_17, %c0_18] : memref<1x32xf32, #tpu.memory_space<vmem>>, vector<1x32xf32>
    %22 = vector.broadcast %21 : vector<1x32xf32> to vector<512x32xf32>
    %23 = arith.addf %20, %22 : vector<512x32xf32>
    %cst_19 = arith.constant 0.000000e+00 : f32
    %24 = vector.broadcast %cst_19 : f32 to vector<512x32xf32>
    %25 = arith.maximumf %23, %24 : vector<512x32xf32>
    %26 = vector.extract_strided_slice %25 {offsets = [0, 0], sizes = [64, 32], strides = [1, 1]} : vector<512x32xf32> to vector<64x32xf32>
    %27 = vector.extract_strided_slice %25 {offsets = [64, 0], sizes = [64, 32], strides = [1, 1]} : vector<512x32xf32> to vector<64x32xf32>
    %28 = arith.maximumf %26, %27 : vector<64x32xf32>
    %29 = vector.extract_strided_slice %25 {offsets = [128, 0], sizes = [64, 32], strides = [1, 1]} : vector<512x32xf32> to vector<64x32xf32>
    %30 = arith.maximumf %28, %29 : vector<64x32xf32>
    %31 = vector.extract_strided_slice %25 {offsets = [192, 0], sizes = [64, 32], strides = [1, 1]} : vector<512x32xf32> to vector<64x32xf32>
    %32 = arith.maximumf %30, %31 : vector<64x32xf32>
    %33 = vector.extract_strided_slice %25 {offsets = [256, 0], sizes = [64, 32], strides = [1, 1]} : vector<512x32xf32> to vector<64x32xf32>
    %34 = arith.maximumf %32, %33 : vector<64x32xf32>
    %35 = vector.extract_strided_slice %25 {offsets = [320, 0], sizes = [64, 32], strides = [1, 1]} : vector<512x32xf32> to vector<64x32xf32>
    %36 = arith.maximumf %34, %35 : vector<64x32xf32>
    %37 = vector.extract_strided_slice %25 {offsets = [384, 0], sizes = [64, 32], strides = [1, 1]} : vector<512x32xf32> to vector<64x32xf32>
    %38 = arith.maximumf %36, %37 : vector<64x32xf32>
    %39 = vector.extract_strided_slice %25 {offsets = [448, 0], sizes = [64, 32], strides = [1, 1]} : vector<512x32xf32> to vector<64x32xf32>
    %40 = arith.maximumf %38, %39 : vector<64x32xf32>
    %41 = tpu.iota {dimensions = array<i32: 1>} : vector<128x64xi32>
    %c0_20 = arith.constant 0 : index
    %c0_21 = arith.constant 0 : index
    %42 = vector.load %arg4[%c0_20, %c0_21] : memref<128x1xi32, #tpu.memory_space<vmem>>, vector<128x1xi32>
    %43 = vector.broadcast %42 : vector<128x1xi32> to vector<128x64xi32>
    %44 = arith.cmpi eq, %41, %43 : vector<128x64xi32>
    %45 = arith.extui %44 : vector<128x64xi1> to vector<128x64xi32>
    %46 = arith.sitofp %45 : vector<128x64xi32> to vector<128x64xf32>
    %cst_22 = arith.constant dense<0.000000e+00> : vector<128x32xf32>
    %47 = tpu.matmul %46, %40, %cst_22 {dimension_numbers = #tpu.dot_dimension_numbers<[1], [0], [0], [1], [0, 0, 1, 1], [], []>} : vector<128x64xf32>, vector<64x32xf32>, vector<128x32xf32> -> vector<128x32xf32>
    %c0_23 = arith.constant 0 : index
    %c0_24 = arith.constant 0 : index
    %48 = vector.load %arg12[%c0_23, %c0_24] : memref<32x64xf32, #tpu.memory_space<vmem>>, vector<32x64xf32>
    %cst_25 = arith.constant dense<0.000000e+00> : vector<128x64xf32>
    %49 = tpu.matmul %47, %48, %cst_25 {dimension_numbers = #tpu.dot_dimension_numbers<[1], [0], [0], [1], [0, 0, 1, 1], [], []>} : vector<128x32xf32>, vector<32x64xf32>, vector<128x64xf32> -> vector<128x64xf32>
    %c0_26 = arith.constant 0 : index
    %c0_27 = arith.constant 0 : index
    %50 = vector.load %arg5[%c0_26, %c0_27] : memref<128x3xf32, #tpu.memory_space<vmem>>, vector<128x3xf32>
    %c0_28 = arith.constant 0 : index
    %c0_29 = arith.constant 0 : index
    %51 = vector.load %arg13[%c0_28, %c0_29] : memref<3x64xf32, #tpu.memory_space<vmem>>, vector<3x64xf32>
    %cst_30 = arith.constant dense<0.000000e+00> : vector<128x64xf32>
    %52 = tpu.matmul %50, %51, %cst_30 {dimension_numbers = #tpu.dot_dimension_numbers<[1], [0], [0], [1], [0, 0, 1, 1], [], []>} : vector<128x3xf32>, vector<3x64xf32>, vector<128x64xf32> -> vector<128x64xf32>
    %53 = arith.addf %49, %52 : vector<128x64xf32>
    %c0_31 = arith.constant 0 : index
    %c0_32 = arith.constant 0 : index
    %54 = vector.load %arg14[%c0_31, %c0_32] : memref<1x64xf32, #tpu.memory_space<vmem>>, vector<1x64xf32>
    %55 = vector.broadcast %54 : vector<1x64xf32> to vector<128x64xf32>
    %56 = arith.addf %53, %55 : vector<128x64xf32>
    %cst_33 = arith.constant 0.000000e+00 : f32
    %57 = vector.broadcast %cst_33 : f32 to vector<128x64xf32>
    %58 = arith.maximumf %56, %57 : vector<128x64xf32>
    %59 = vector.extract_strided_slice %58 {offsets = [0, 0], sizes = [16, 64], strides = [1, 1]} : vector<128x64xf32> to vector<16x64xf32>
    %60 = vector.extract_strided_slice %58 {offsets = [16, 0], sizes = [16, 64], strides = [1, 1]} : vector<128x64xf32> to vector<16x64xf32>
    %61 = arith.maximumf %59, %60 : vector<16x64xf32>
    %62 = vector.extract_strided_slice %58 {offsets = [32, 0], sizes = [16, 64], strides = [1, 1]} : vector<128x64xf32> to vector<16x64xf32>
    %63 = arith.maximumf %61, %62 : vector<16x64xf32>
    %64 = vector.extract_strided_slice %58 {offsets = [48, 0], sizes = [16, 64], strides = [1, 1]} : vector<128x64xf32> to vector<16x64xf32>
    %65 = arith.maximumf %63, %64 : vector<16x64xf32>
    %66 = vector.extract_strided_slice %58 {offsets = [64, 0], sizes = [16, 64], strides = [1, 1]} : vector<128x64xf32> to vector<16x64xf32>
    %67 = arith.maximumf %65, %66 : vector<16x64xf32>
    %68 = vector.extract_strided_slice %58 {offsets = [80, 0], sizes = [16, 64], strides = [1, 1]} : vector<128x64xf32> to vector<16x64xf32>
    %69 = arith.maximumf %67, %68 : vector<16x64xf32>
    %70 = vector.extract_strided_slice %58 {offsets = [96, 0], sizes = [16, 64], strides = [1, 1]} : vector<128x64xf32> to vector<16x64xf32>
    %71 = arith.maximumf %69, %70 : vector<16x64xf32>
    %72 = vector.extract_strided_slice %58 {offsets = [112, 0], sizes = [16, 64], strides = [1, 1]} : vector<128x64xf32> to vector<16x64xf32>
    %73 = arith.maximumf %71, %72 : vector<16x64xf32>
    %c0_34 = arith.constant 0 : index
    %c0_35 = arith.constant 0 : index
    %74 = vector.load %arg15[%c0_34, %c0_35] : memref<64x64xf32, #tpu.memory_space<vmem>>, vector<64x64xf32>
    %cst_36 = arith.constant dense<0.000000e+00> : vector<16x64xf32>
    %75 = tpu.matmul %73, %74, %cst_36 {dimension_numbers = #tpu.dot_dimension_numbers<[1], [0], [0], [1], [0, 0, 1, 1], [], []>} : vector<16x64xf32>, vector<64x64xf32>, vector<16x64xf32> -> vector<16x64xf32>
    %c0_37 = arith.constant 0 : index
    %c0_38 = arith.constant 0 : index
    %76 = vector.load %arg16[%c0_37, %c0_38] : memref<1x64xf32, #tpu.memory_space<vmem>>, vector<1x64xf32>
    %77 = vector.broadcast %76 : vector<1x64xf32> to vector<16x64xf32>
    %78 = arith.addf %75, %77 : vector<16x64xf32>
    %cst_39 = arith.constant 0.000000e+00 : f32
    %79 = vector.broadcast %cst_39 : f32 to vector<16x64xf32>
    %80 = arith.maximumf %78, %79 : vector<16x64xf32>
    %c0_40 = arith.constant 0 : index
    %c0_41 = arith.constant 0 : index
    %81 = vector.load %arg6[%c0_40, %c0_41] : memref<2x16xf32, #tpu.memory_space<vmem>>, vector<2x16xf32>
    %cst_42 = arith.constant dense<0.000000e+00> : vector<2x64xf32>
    %82 = tpu.matmul %81, %80, %cst_42 {dimension_numbers = #tpu.dot_dimension_numbers<[1], [0], [0], [1], [0, 0, 1, 1], [], []>} : vector<2x16xf32>, vector<16x64xf32>, vector<2x64xf32> -> vector<2x64xf32>
    %c0_43 = arith.constant 0 : index
    %c0_44 = arith.constant 0 : index
    %83 = vector.load %arg17[%c0_43, %c0_44] : memref<1x64xf32, #tpu.memory_space<vmem>>, vector<1x64xf32>
    %84 = vector.broadcast %83 : vector<1x64xf32> to vector<2x64xf32>
    %85 = arith.mulf %82, %84 : vector<2x64xf32>
    %c0_45 = arith.constant 0 : index
    %c0_46 = arith.constant 0 : index
    %86 = vector.load %arg18[%c0_45, %c0_46] : memref<1x64xf32, #tpu.memory_space<vmem>>, vector<1x64xf32>
    %87 = vector.broadcast %86 : vector<1x64xf32> to vector<2x64xf32>
    %88 = arith.addf %85, %87 : vector<2x64xf32>
    %cst_47 = arith.constant 0.000000e+00 : f32
    %89 = vector.broadcast %cst_47 : f32 to vector<2x64xf32>
    %90 = arith.maximumf %88, %89 : vector<2x64xf32>
    %c0_48 = arith.constant 0 : index
    %c0_49 = arith.constant 0 : index
    %91 = vector.load %arg19[%c0_48, %c0_49] : memref<2x64xf32, #tpu.memory_space<vmem>>, vector<2x64xf32>
    tpu.vector_store %arg19[%c0_48, %c0_49], %90 {strides = array<i32>} : memref<2x64xf32, #tpu.memory_space<vmem>>, vector<2x64xf32>,
    return
  }
  func.func @transform_0(%arg0: i32) -> (i32, i32) {
    %c0_i32 = arith.constant 0 : i32
    %c0_i32_0 = arith.constant 0 : i32
    %c0_i32_1 = arith.constant 0 : i32
    return %c0_i32, %c0_i32_0 : i32, i32
  }
  func.func @transform_1(%arg0: i32) -> (i32, i32) {
    %c0_i32 = arith.constant 0 : i32
    %c0_i32_0 = arith.constant 0 : i32
    %c0_i32_1 = arith.constant 0 : i32
    return %c0_i32, %c0_i32_0 : i32, i32
  }
  func.func @transform_2(%arg0: i32) -> (i32, i32) {
    %c0_i32 = arith.constant 0 : i32
    %c0_i32_0 = arith.constant 0 : i32
    %c0_i32_1 = arith.constant 0 : i32
    return %c0_i32, %c0_i32_0 : i32, i32
  }
  func.func @transform_3(%arg0: i32) -> (i32, i32) {
    %c0_i32 = arith.constant 0 : i32
    %c0_i32_0 = arith.constant 0 : i32
    %c0_i32_1 = arith.constant 0 : i32
    return %c0_i32, %c0_i32_0 : i32, i32
  }
  func.func @transform_4(%arg0: i32) -> (i32, i32) {
    %c0_i32 = arith.constant 0 : i32
    %c0_i32_0 = arith.constant 0 : i32
    %c0_i32_1 = arith.constant 0 : i32
    return %c0_i32, %c0_i32_0 : i32, i32
  }
  func.func @transform_5(%arg0: i32) -> (i32, i32) {
    %c0_i32 = arith.constant 0 : i32
    %c0_i32_0 = arith.constant 0 : i32
    %c0_i32_1 = arith.constant 0 : i32
    return %c0_i32, %c0_i32_0 : i32, i32
  }
  func.func @transform_6(%arg0: i32) -> (i32, i32) {
    %c0_i32 = arith.constant 0 : i32
    %c0_i32_0 = arith.constant 0 : i32
    %c0_i32_1 = arith.constant 0 : i32
    return %c0_i32, %c0_i32_0 : i32, i32
  }
  func.func @transform_7(%arg0: i32) -> (i32, i32) {
    %c0_i32 = arith.constant 0 : i32
    %c0_i32_0 = arith.constant 0 : i32
    %c0_i32_1 = arith.constant 0 : i32
    return %c0_i32, %c0_i32_0 : i32, i32
  }
  func.func @transform_8(%arg0: i32) -> (i32, i32) {
    %c0_i32 = arith.constant 0 : i32
    %c0_i32_0 = arith.constant 0 : i32
    %c0_i32_1 = arith.constant 0 : i32
    return %c0_i32, %c0_i32_0 : i32, i32
  }
  func.func @transform_9(%arg0: i32) -> (i32, i32) {
    %c0_i32 = arith.constant 0 : i32
    %c0_i32_0 = arith.constant 0 : i32
    %c0_i32_1 = arith.constant 0 : i32
    return %c0_i32, %c0_i32_0 : i32, i32
  }
  func.func @transform_10(%arg0: i32) -> (i32, i32) {
    %c0_i32 = arith.constant 0 : i32
    %c0_i32_0 = arith.constant 0 : i32
    %c0_i32_1 = arith.constant 0 : i32
    return %c0_i32, %c0_i32_0 : i32, i32
  }
  func.func @transform_11(%arg0: i32) -> (i32, i32) {
    %c0_i32 = arith.constant 0 : i32
    %c0_i32_0 = arith.constant 0 : i32
    %c0_i32_1 = arith.constant 0 : i32
    return %c0_i32, %c0_i32_0 : i32, i32
  }
  func.func @transform_12(%arg0: i32) -> (i32, i32) {
    %c0_i32 = arith.constant 0 : i32
    %c0_i32_0 = arith.constant 0 : i32
    %c0_i32_1 = arith.constant 0 : i32
    return %c0_i32, %c0_i32_0 : i32, i32
  }
  func.func @transform_13(%arg0: i32) -> (i32, i32) {
    %c0_i32 = arith.constant 0 : i32
    %c0_i32_0 = arith.constant 0 : i32
    %c0_i32_1 = arith.constant 0 : i32
    return %c0_i32, %c0_i32_0 : i32, i32
  }
  func.func @transform_14(%arg0: i32) -> (i32, i32) {
    %c0_i32 = arith.constant 0 : i32
    %c0_i32_0 = arith.constant 0 : i32
    %c0_i32_1 = arith.constant 0 : i32
    return %c0_i32, %c0_i32_0 : i32, i32
  }
  func.func @transform_15(%arg0: i32) -> (i32, i32) {
    %c0_i32 = arith.constant 0 : i32
    %c0_i32_0 = arith.constant 0 : i32
    %c0_i32_1 = arith.constant 0 : i32
    return %c0_i32, %c0_i32_0 : i32, i32
  }
  func.func @transform_16(%arg0: i32) -> (i32, i32) {
    %c0_i32 = arith.constant 0 : i32
    %c0_i32_0 = arith.constant 0 : i32
    %c0_i32_1 = arith.constant 0 : i32
    return %c0_i32, %c0_i32_0 : i32, i32
  }
  func.func @transform_17(%arg0: i32) -> (i32, i32) {
    %c0_i32 = arith.constant 0 : i32
    %c0_i32_0 = arith.constant 0 : i32
    %c0_i32_1 = arith.constant 0 : i32
    return %c0_i32, %c0_i32_0 : i32, i32
  }
  func.func @transform_18(%arg0: i32) -> (i32, i32) {
    %c0_i32 = arith.constant 0 : i32
    %c0_i32_0 = arith.constant 0 : i32
    %c0_i32_1 = arith.constant 0 : i32
    return %c0_i32, %c0_i32_0 : i32, i32
  }
}

</mosaic_0001>

<bundles_post_ra>
// kernel: pointnext_encoder_forward.1
= control target key start
LH: loop header
LB: loop body
LE: loop exit
PB: predicated region body
PF: predicated region fallthrough
CT: control target
= control target key end

     0   :  { %s5513_s0 = inlined_call_operand.vmem [shape: f32[256,4], index: 0, kind: input, shape index: {}]   ;;  %s5514_s1 = inlined_call_operand.vmem [shape: s32[512,1], index: 1, kind: input, shape index: {}]   ;;  %s5515_s2 = inlined_call_operand.vmem [shape: f32[512,3], index: 2, kind: input, shape index: {}]   ;;  %s5516_s3 = inlined_call_operand.vmem [shape: s32[128,1], index: 3, kind: input, shape index: {}]   ;;  %s5517_s4 = inlined_call_operand.vmem [shape: f32[128,3], index: 4, kind: input, shape index: {}]   ;;  %s5518_s5 = inlined_call_operand.vmem [shape: f32[2,16], index: 5, kind: input, shape index: {}]   ;;  %s5519_s6 = inlined_call_operand.vmem [shape: f32[4,16], index: 6, kind: input, shape index: {}]   ;;  %s5520_s7 = inlined_call_operand.vmem [shape: f32[1,16], index: 7, kind: input, shape index: {}]   ;;  %s5521_s8 = inlined_call_operand.vmem [shape: f32[16,32], index: 8, kind: input, shape index: {}]   ;;  %s5522_s9 = inlined_call_operand.vmem [shape: f32[3,32], index: 9, kind: input, shape index: {}]   ;;  %s5523_s10 = inlined_call_operand.vmem [shape: f32[1,32], index: 10, kind: input, shape index: {}]   ;;  %s5524_s11 = inlined_call_operand.vmem [shape: f32[32,64], index: 11, kind: input, shape index: {}]   ;;  %s5525_s12 = inlined_call_operand.vmem [shape: f32[3,64], index: 12, kind: input, shape index: {}]   ;;  %s5526_s13 = inlined_call_operand.vmem [shape: f32[1,64], index: 13, kind: input, shape index: {}]   ;;  %s5527_s14 = inlined_call_operand.vmem [shape: f32[64,64], index: 14, kind: input, shape index: {}]   ;;  %s5528_s15 = inlined_call_operand.vmem [shape: f32[1,64], index: 15, kind: input, shape index: {}]   ;;  %s5529_s16 = inlined_call_operand.vmem [shape: f32[1,64], index: 16, kind: input, shape index: {}]   ;;  %s5530_s17 = inlined_call_operand.vmem [shape: f32[1,64], index: 17, kind: input, shape index: {}]   ;;  %s5531_s18 = inlined_call_operand.hbm [shape: f32[2,64], index: 18, kind: output, shape index: {}]  }
   0x1   :  { %5535 = sst [smem:[#allocation5_spill]] %s5513_s0 }
   0x2   :  { %5536 = sst [smem:[#allocation6_spill]] %s5514_s1 }
   0x3   :  { %5537 = sst [smem:[#allocation7_spill]] %s5515_s2 }
   0x4   :  { %v92_v0 = vld [vmem:[%s5519_s6] sm:$0xf]  ;;  %vm194_vm0 = vcmask 1043456   ;;  %s5538_s0 = sld [smem:[#allocation6_spill]]  ;;  %v3620_v3 = vmov 0   ;;  %vm97_vm1 = vcmask 31744  }
   0x5   :  { %s5539_s20 = sld [smem:[#allocation5_spill]]  ;;  %3584 = vset.pattern.permute.xlu0 %v3620_v3  ;;  %3090 = vmatpush.msk.msra.mxu0 %vm194_vm0, %v92_v0 }
   0x6   :  { %3585 = vset.pattern.permute.xlu1 %v3620_v3  ;;  %3586 = vset.pattern.permute.xlu2 %v3620_v3 }
   0x7   :  { %3576 = vmatpush.msk.msra.mxu1 %vm194_vm0, %v92_v0  ;;  %3577 = vmatpush.msk.msra.mxu3 %vm194_vm0, %v92_v0 }
   0xa   :  { %v346_v1 = vld [vmem:[%s5538_s0] sm:$0xff]  ;;  %v348_v4 = vld [vmem:[%s5538_s0 + $0x10] sm:$0xff]  ;;  %v347_v5 = vld [vmem:[%s5538_s0 + $0x8] sm:$0xff] }
   0xb   :  { %v60_v2 = vld [vmem:[%s5539_s20] sm:$0xff]  ;;  %411 = vperm.xlu0 %3584, %v346_v1   ;;  %417 = vperm.xlu1 %3585, %v348_v4   ;;  %v61_v6 = vld [vmem:[%s5539_s20 + $0x8] sm:$0xff] }
   0xc   :  { %3091 = vmatmul.msk.f32.vlgmr.msra.gmra.mxu0 %vm97_vm1, %v60_v2 }
   0xd   :  { %23 = vsyncpa [#allocation3], 0  ;;  %v349_v7 = vld [vmem:[%s5538_s0 + $0x18] sm:$0xff]  ;;  %v352_v8 = vld [vmem:[%s5538_s0 + $0x30] sm:$0xff]  ;;  %s5540_s29 = sld [smem:[#allocation7_spill]]  ;;  %s3081_s26 = sshll.u32 %s5531_s18, 4  ;;  %s3082_s26 = int_to_ptr.hbm [resolvable:$true] %s3081_s26 }
   0xe   :  { %v62_v9 = vld [vmem:[%s5539_s20 + $0x10] sm:$0xff]  ;;  %v353_v10 = vld [vmem:[%s5538_s0 + $0x38] sm:$0xff]  ;;  %v355_v11 = vld [vmem:[%s5538_s0 + $0x48] sm:$0xff] }
   0xf   :  { %v63_v12 = vld [vmem:[%s5539_s20 + $0x18] sm:$0xff]  ;;  %v356_v13 = vld [vmem:[%s5538_s0 + $0x50] sm:$0xff]  ;;  %v350_v14 = vld [vmem:[%s5538_s0 + $0x20] sm:$0xff] }
  0x10   :  { %423 = vperm.xlu2 %3586, %v350_v14   ;;  %v358_v15 = vld [vmem:[%s5538_s0 + $0x60] sm:$0xff]  ;;  %v359_v17 = vld [vmem:[%s5538_s0 + $0x68] sm:$0xff]  ;;  %v361_v19 = vld [vmem:[%s5538_s0 + $0x78] sm:$0xff] }
  0x11   :  { %v64_v16 = vld [vmem:[%s5539_s20 + $0x20] sm:$0xff]  ;;  %v351_v18 = vld [vmem:[%s5538_s0 + $0x28] sm:$0xff]  ;;  %v83_v22 = vld [vmem:[%s5539_s20 + $0xb8] sm:$0xff] }
  0x12   :  { %v65_v20 = vld [vmem:[%s5539_s20 + $0x28] sm:$0xff]  ;;  %v362_v21 = vld [vmem:[%s5538_s0 + $0x80] sm:$0xff]  ;;  %3114 = vmatmul.msk.f32.vlgmr.msra.gmra.mxu1 %vm97_vm1, %v83_v22  ;;  %v364_v24 = vld [vmem:[%s5538_s0 + $0x90] sm:$0xff] }
  0x13   :  { %414 = vperm.xlu0 %3584, %v347_v5   ;;  %420 = vperm.xlu1 %3585, %v349_v7   ;;  %v354_v23 = vld [vmem:[%s5538_s0 + $0x40] sm:$0xff]  ;;  %v66_v25 = vld [vmem:[%s5539_s20 + $0x30] sm:$0xff]  ;;  %v365_v26 = vld [vmem:[%s5538_s0 + $0x98] sm:$0xff] }
  0x14   :  { %3092 = vmatmul.msk.f32.gmra.mxu0 %vm97_vm1, %v61_v6  ;;  %v84_v27 = vld [vmem:[%s5539_s20 + $0xc0] sm:$0xff]  ;;  %v357_v28 = vld [vmem:[%s5538_s0 + $0x58] sm:$0xff]  ;;  %v89_v29 = vld [vmem:[%s5539_s20 + $0xe8] sm:$0xff] }
  0x15   :  { %3120 = vmatmul.msk.f32.vlgmr.msra.gmra.mxu3 %vm97_vm1, %v89_v29  ;;  %v367_v30 = vld [vmem:[%s5538_s0 + $0xa8] sm:$0xff]  ;;  %v67_v31 = vld [vmem:[%s5539_s20 + $0x38] sm:$0xff]  ;;  %v368_v32 = vld [vmem:[%s5538_s0 + $0xb0] sm:$0xff] }
  0x16   :  { %v85_v33 = vld [vmem:[%s5539_s20 + $0xc8] sm:$0xff]  ;;  %v360_v34 = vld [vmem:[%s5538_s0 + $0x70] sm:$0xff]  ;;  %v370_v36 = vld [vmem:[%s5538_s0 + $0xc0] sm:$0xff] }
  0x17   :  { %v90_v35 = vld [vmem:[%s5539_s20 + $0xf0] sm:$0xff]  ;;  %v68_v37 = vld [vmem:[%s5539_s20 + $0x40] sm:$0xff]  ;;  %v371_v38 = vld [vmem:[%s5538_s0 + $0xc8] sm:$0xff] }
  0x18   :  { %426 = vperm.xlu2 %3586, %v351_v18   ;;  %v86_v39 = vld [vmem:[%s5539_s20 + $0xd0] sm:$0xff]  ;;  %v363_v40 = vld [vmem:[%s5538_s0 + $0x88] sm:$0xff]  ;;  %v91_v41 = vld [vmem:[%s5539_s20 + $0xf8] sm:$0xff] }
  0x19   :  { %v373_v42 = vld [vmem:[%s5538_s0 + $0xd8] sm:$0xff]  ;;  %v69_v43 = vld [vmem:[%s5539_s20 + $0x48] sm:$0xff]  ;;  %v374_v44 = vld [vmem:[%s5538_s0 + $0xe0] sm:$0xff] }
  0x1a   :  { %3115 = vmatmul.msk.f32.gmra.mxu1 %vm97_vm1, %v84_v27  ;;  %v87_v45 = vld [vmem:[%s5539_s20 + $0xd8] sm:$0xff]  ;;  %v366_v46 = vld [vmem:[%s5538_s0 + $0xa0] sm:$0xff]  ;;  %v376_v47 = vld [vmem:[%s5538_s0 + $0xf0] sm:$0xff] }
  0x1b   :  { %429 = vperm.xlu0 %3584, %v352_v8   ;;  %432 = vperm.xlu1 %3585, %v353_v10   ;;  %v70_v48 = vld [vmem:[%s5539_s20 + $0x50] sm:$0xff]  ;;  %v377_v49 = vld [vmem:[%s5538_s0 + $0xf8] sm:$0xff]  ;;  %v88_v50 = vld [vmem:[%s5539_s20 + $0xe0] sm:$0xff] }
  0x1c   :  { %3093 = vmatmul.msk.f32.gmra.mxu0 %vm97_vm1, %v62_v9  ;;  %v369_v51 = vld [vmem:[%s5538_s0 + $0xb8] sm:$0xff]  ;;  %v379_v52 = vld [vmem:[%s5538_s0 + $0x108] sm:$0xff]  ;;  %v380_v54 = vld [vmem:[%s5538_s0 + $0x110] sm:$0xff] }
  0x1d   :  { %3121 = vmatmul.msk.f32.gmra.mxu3 %vm97_vm1, %v90_v35  ;;  %v71_v53 = vld [vmem:[%s5539_s20 + $0x58] sm:$0xff]  ;;  %v372_v55 = vld [vmem:[%s5538_s0 + $0xd0] sm:$0xff]  ;;  %v382_v56 = vld [vmem:[%s5538_s0 + $0x120] sm:$0xff] }
  0x1e   :  { %v72_v57 = vld [vmem:[%s5539_s20 + $0x60] sm:$0xff]  ;;  %v383_v58 = vld [vmem:[%s5538_s0 + $0x128] sm:$0xff]  ;;  %v385_v60 = vld [vmem:[%s5538_s0 + $0x138] sm:$0xff] }
  0x1f   :  { %v375_v59 = vld [vmem:[%s5538_s0 + $0xe8] sm:$0xff]  ;;  %v386_v62 = vld [vmem:[%s5538_s0 + $0x140] sm:$0xff]  ;;  %v388_v0 = vld [vmem:[%s5538_s0 + $0x150] sm:$0xff] }
  0x20   :  { %435 = vperm.xlu2 %3586, %v354_v23   ;;  %v73_v61 = vld [vmem:[%s5539_s20 + $0x68] sm:$0xff]  ;;  %v378_v63 = vld [vmem:[%s5538_s0 + $0x100] sm:$0xff]  ;;  %v74_v1 = vld [vmem:[%s5539_s20 + $0x70] sm:$0xff] }
  0x21   :  { %v389_v2 = vld [vmem:[%s5538_s0 + $0x158] sm:$0xff]  ;;  %v391_v4 = vld [vmem:[%s5538_s0 + $0x168] sm:$0xff]  ;;  %v392_v6 = vld [vmem:[%s5538_s0 + $0x170] sm:$0xff] }
  0x22   :  { %3116 = vmatmul.msk.f32.gmra.mxu1 %vm97_vm1, %v85_v33  ;;  %v381_v3 = vld [vmem:[%s5538_s0 + $0x118] sm:$0xff]  ;;  %v384_v7 = vld [vmem:[%s5538_s0 + $0x130] sm:$0xff]  ;;  %v394_v9 = vld [vmem:[%s5538_s0 + $0x180] sm:$0xff] }
  0x23   :  { %438 = vperm.xlu0 %3584, %v355_v11   ;;  %441 = vperm.xlu1 %3585, %v356_v13   ;;  %v75_v5 = vld [vmem:[%s5539_s20 + $0x78] sm:$0xff]  ;;  %v76_v10 = vld [vmem:[%s5539_s20 + $0x80] sm:$0xff]  ;;  %v395_v11 = vld [vmem:[%s5538_s0 + $0x188] sm:$0xff] }
  0x24   :  { %3094 = vmatmul.msk.f32.gmra.mxu0 %vm97_vm1, %v63_v12  ;;  %v387_v12 = vld [vmem:[%s5538_s0 + $0x148] sm:$0xff]  ;;  %v397_v14 = vld [vmem:[%s5538_s0 + $0x198] sm:$0xff]  ;;  %v396_v27 = vld [vmem:[%s5538_s0 + $0x190] sm:$0xff] }
  0x25   :  { %3122 = vmatmul.msk.f32.gmra.mxu3 %vm97_vm1, %v91_v41  ;;  %v393_v22 = vld [vmem:[%s5538_s0 + $0x178] sm:$0xff]  ;;  %v406_v29 = vld [vmem:[%s5538_s0 + $0x1e0] sm:$0xff]  ;;  %v81_v35 = vld [vmem:[%s5539_s20 + $0xa8] sm:$0xff] }
  0x26   :  { %v82_v41 = vld [vmem:[%s5539_s20 + $0xb0] sm:$0xff] }
  0x28   :  { %444 = vperm.xlu2 %3586, %v357_v28  }
  0x2a   :  { %3117 = vmatmul.msk.f32.gmra.mxu1 %vm97_vm1, %v86_v39 }
  0x2b   :  { %447 = vperm.xlu0 %3584, %v358_v15   ;;  %450 = vperm.xlu1 %3585, %v359_v17   ;;  %v77_v15 = vld [vmem:[%s5539_s20 + $0x88] sm:$0xff]  ;;  %v390_v17 = vld [vmem:[%s5538_s0 + $0x160] sm:$0xff] }
  0x2c   :  { %3095 = vmatmul.msk.f32.gmra.mxu0 %vm97_vm1, %v64_v16  ;;  %v398_v16 = vld [vmem:[%s5538_s0 + $0x1a0] sm:$0xff] }
  0x30   :  { %453 = vperm.xlu2 %3586, %v360_v34   ;;  %v409_v34 = vld [vmem:[%s5538_s0 + $0x1f8] sm:$0xff] }
  0x32   :  { %3118 = vmatmul.msk.f32.gmra.mxu1 %vm97_vm1, %v87_v45 }
  0x33   :  { %456 = vperm.xlu0 %3584, %v361_v19   ;;  %459 = vperm.xlu1 %3585, %v362_v21   ;;  %v400_v19 = vld [vmem:[%s5538_s0 + $0x1b0] sm:$0xff]  ;;  %v401_v21 = vld [vmem:[%s5538_s0 + $0x1b8] sm:$0xff] }
  0x34   :  { %3096 = vmatmul.msk.f32.gmra.mxu0 %vm97_vm1, %v65_v20  ;;  %v78_v20 = vld [vmem:[%s5539_s20 + $0x90] sm:$0xff] }
  0x38   :  { %462 = vperm.xlu2 %3586, %v363_v40   ;;  %v2469_v40 = vld [vmem:[%s5516_s3 + $0x10] sm:$0xff] }
  0x3a   :  { %3119 = vmatmul.msk.f32.gmra.mxu1 %vm97_vm1, %v88_v50  ;;  %v408_v50 = vld [vmem:[%s5538_s0 + $0x1f0] sm:$0xff] }
  0x3b   :  { %465 = vperm.xlu0 %3584, %v364_v24   ;;  %468 = vperm.xlu1 %3585, %v365_v26   ;;  %v403_v24 = vld [vmem:[%s5538_s0 + $0x1c8] sm:$0xff]  ;;  %v404_v26 = vld [vmem:[%s5538_s0 + $0x1d0] sm:$0xff] }
  0x3c   :  { %3097 = vmatmul.msk.f32.gmra.mxu0 %vm97_vm1, %v66_v25  ;;  %v79_v25 = vld [vmem:[%s5539_s20 + $0x98] sm:$0xff] }
  0x40   :  { %471 = vperm.xlu2 %3586, %v366_v46   ;;  %v2472_v46 = vld [vmem:[%s5516_s3 + $0x28] sm:$0xff] }
  0x43   :  { %474 = vperm.xlu0 %3584, %v367_v30   ;;  %477 = vperm.xlu1 %3585, %v368_v32   ;;  %v80_v30 = vld [vmem:[%s5539_s20 + $0xa0] sm:$0xff]  ;;  %v399_v32 = vld [vmem:[%s5538_s0 + $0x1a8] sm:$0xff] }
  0x44   :  { %3098 = vmatmul.msk.f32.gmra.mxu0 %vm97_vm1, %v67_v31  ;;  %v407_v31 = vld [vmem:[%s5538_s0 + $0x1e8] sm:$0xff] }
  0x48   :  { %480 = vperm.xlu2 %3586, %v369_v51  }
  0x4b   :  { %483 = vperm.xlu0 %3584, %v370_v36   ;;  %486 = vperm.xlu1 %3585, %v371_v38   ;;  %v402_v38 = vld [vmem:[%s5538_s0 + $0x1c0] sm:$0xff] }
  0x4c   :  { %3099 = vmatmul.msk.f32.gmra.mxu0 %vm97_vm1, %v68_v37  ;;  %v2467_v37 = vld [vmem:[%s5516_s3] sm:$0xff] }
  0x50   :  { %489 = vperm.xlu2 %3586, %v372_v55   ;;  %v2476_v55 = vld [vmem:[%s5516_s3 + $0x48] sm:$0xff] }
  0x53   :  { %492 = vperm.xlu0 %3584, %v373_v42   ;;  %495 = vperm.xlu1 %3585, %v374_v44   ;;  %v405_v44 = vld [vmem:[%s5538_s0 + $0x1d8] sm:$0xff] }
  0x54   :  { %3100 = vmatmul.msk.f32.gmra.mxu0 %vm97_vm1, %v69_v43  ;;  %v2470_v43 = vld [vmem:[%s5516_s3 + $0x18] sm:$0xff] }
  0x58   :  { %498 = vperm.xlu2 %3586, %v375_v59  }
  0x5b   :  { %501 = vperm.xlu0 %3584, %v376_v47   ;;  %504 = vperm.xlu1 %3585, %v377_v49   ;;  %v2473_v49 = vld [vmem:[%s5516_s3 + $0x30] sm:$0xff] }
  0x5c   :  { %3101 = vmatmul.msk.f32.gmra.mxu0 %vm97_vm1, %v70_v48 }
  0x60   :  { %507 = vperm.xlu2 %3586, %v378_v63  }
  0x63   :  { %510 = vperm.xlu0 %3584, %v379_v52   ;;  %513 = vperm.xlu1 %3585, %v380_v54   ;;  %v2475_v52 = vld [vmem:[%s5516_s3 + $0x40] sm:$0xff] }
  0x64   :  { %3102 = vmatmul.msk.f32.gmra.mxu0 %vm97_vm1, %v71_v53 }
  0x68   :  { %516 = vperm.xlu2 %3586, %v381_v3  }
  0x6b   :  { %519 = vperm.xlu0 %3584, %v382_v56   ;;  %522 = vperm.xlu1 %3585, %v383_v58   ;;  %v2468_v56 = vld [vmem:[%s5516_s3 + $0x8] sm:$0xff]  ;;  %v2478_v58 = vld [vmem:[%s5516_s3 + $0x58] sm:$0xff] }
  0x6c   :  { %3103 = vmatmul.msk.f32.gmra.mxu0 %vm97_vm1, %v72_v57 }
  0x70   :  { %525 = vperm.xlu2 %3586, %v384_v7   ;;  %v2482_v7 = vld [vmem:[%s5516_s3 + $0x78] sm:$0xff] }
  0x73   :  { %528 = vperm.xlu0 %3584, %v385_v60   ;;  %531 = vperm.xlu1 %3585, %v386_v62   ;;  %v2479_v60 = vld [vmem:[%s5516_s3 + $0x60] sm:$0xff] }
  0x74   :  { %3104 = vmatmul.msk.f32.gmra.mxu0 %vm97_vm1, %v73_v61  ;;  %v4097_v62 = vld [vmem:[%s5520_s7] ss:$0 sm:$0xff] }
  0x78   :  { %534 = vperm.xlu2 %3586, %v387_v12  }
  0x7b   :  { %537 = vperm.xlu0 %3584, %v388_v0   ;;  %540 = vperm.xlu1 %3585, %v389_v2   ;;  %v2471_v0 = vld [vmem:[%s5516_s3 + $0x20] sm:$0xff] }
  0x7c   :  { %3105 = vmatmul.msk.f32.gmra.mxu0 %vm97_vm1, %v74_v1 }
  0x80   :  { %543 = vperm.xlu2 %3586, %v390_v17  }
  0x83   :  { %546 = vperm.xlu0 %3584, %v391_v4   ;;  %549 = vperm.xlu1 %3585, %v392_v6  }
  0x84   :  { %3106 = vmatmul.msk.f32.gmra.mxu0 %vm97_vm1, %v75_v5  ;;  %v2481_v5 = vld [vmem:[%s5516_s3 + $0x70] sm:$0xff] }
  0x88   :  { %552 = vperm.xlu2 %3586, %v393_v22  }
  0x89   :  { %v3957_v8 = vpop.f32.mrf.mxu0 }
  0x8b   :  { %555 = vperm.xlu0 %3584, %v394_v9   ;;  %558 = vperm.xlu1 %3585, %v395_v11  }
  0x8c   :  { %3107 = vmatmul.msk.f32.gmra.mxu0 %vm97_vm1, %v76_v10 }
  0x8f   :  { %v4040_v36 = vpop.f32.mrf.mxu1 }
  0x90   :  { %561 = vperm.xlu2 %3586, %v396_v27  }
  0x91   :  { %v3972_v13 = vpop.f32.mrf.mxu0 }
  0x93   :  { %564 = vperm.xlu0 %3584, %v397_v14   ;;  %567 = vperm.xlu1 %3585, %v398_v16  }
  0x94   :  { %3108 = vmatmul.msk.f32.gmra.mxu0 %vm97_vm1, %v77_v15  ;;  %v2474_v15 = vld [vmem:[%s5516_s3 + $0x38] sm:$0xff] }
  0x97   :  { %v287_v42 = vpop.f32.mrf.mxu1 }
  0x98   :  { %570 = vperm.xlu2 %3586, %v399_v32   ;;  %v302_v48 = vpop.f32.mrf.mxu3 }
  0x99   :  { %v3987_v18 = vpop.f32.mrf.mxu0  ;;  %v303_v2 = vadd.f32 %v4097_v62, %v302_v48 }
  0x9b   :  { %573 = vperm.xlu0 %3584, %v400_v19   ;;  %576 = vperm.xlu1 %3585, %v401_v21   ;;  %v340_v12 = vmax.f32 %v303_v2, 0.0  ;;  %v288_v21 = vadd.f32 %v4097_v62, %v287_v42 }
  0x9c   :  { %3109 = vmatmul.msk.f32.gmra.mxu0 %vm97_vm1, %v78_v20 }
  0x9d   :  { %v335_v27 = vmax.f32 %v288_v21, 0.0 }
  0x9f   :  { %v290_v47 = vpop.f32.mrf.mxu1 }
  0xa0   :  { %579 = vperm.xlu2 %3586, %v402_v38   ;;  %v305_v54 = vpop.f32.mrf.mxu3  ;;  %v291_v17 = vadd.f32 %v4097_v62, %v290_v47 }
  0xa1   :  { %v4002_v23 = vpop.f32.mrf.mxu0  ;;  %v306_v63 = vadd.f32 %v4097_v62, %v305_v54 }
  0xa3   :  { %582 = vperm.xlu0 %3584, %v403_v24   ;;  %585 = vperm.xlu1 %3585, %v404_v26   ;;  %v341_v6 = vmax.f32 %v306_v63, 0.0  ;;  %v285_v24 = vadd.f32 %v4097_v62, %v4040_v36  ;;  %v2477_v26 = vld [vmem:[%s5516_s3 + $0x50] sm:$0xff] }
  0xa4   :  { %3110 = vmatmul.msk.f32.gmra.mxu0 %vm97_vm1, %v79_v25  ;;  %v336_v25 = vmax.f32 %v291_v17, 0.0 }
  0xa7   :  { %v293_v53 = vpop.f32.mrf.mxu1 }
  0xa8   :  { %588 = vperm.xlu2 %3586, %v405_v44   ;;  %v308_v61 = vpop.f32.mrf.mxu3  ;;  %v294_v14 = vadd.f32 %v4097_v62, %v293_v53 }
  0xa9   :  { %v4017_v28 = vpop.f32.mrf.mxu0  ;;  %v309_v1 = vadd.f32 %v4097_v62, %v308_v61 }
  0xaa   :  { %v337_v22 = vmax.f32 %v294_v14, 0.0 }
  0xab   :  { %591 = vperm.xlu0 %3584, %v406_v29   ;;  %594 = vperm.xlu1 %3585, %v407_v31   ;;  %v342_v3 = vmax.f32 %v309_v1, 0.0  ;;  %v334_v29 = vmax.f32 %v285_v24, 0.0  ;;  %v2480_v31 = vld [vmem:[%s5516_s3 + $0x68] sm:$0xff]  ;;  %v343_v1 = vlaneseq }
  0xac   :  { %3111 = vmatmul.msk.f32.gmra.mxu0 %vm97_vm1, %v80_v30 }
  0xad   :  { %1195 = vmatpush.msra.mxu2 %v342_v3 }
  0xaf   :  { %v296_v59 = vpop.f32.mrf.mxu1  ;;  %1196 = vmatpush.msra.mxu2 %v341_v6 }
  0xb0   :  { %597 = vperm.xlu2 %3586, %v408_v50   ;;  %v297_v10 = vadd.f32 %v4097_v62, %v296_v59 }
  0xb1   :  { %v4032_v33 = vpop.f32.mrf.mxu0  ;;  %1197 = vmatpush.msra.mxu2 %v340_v12 }
  0xb2   :  { %v338_v19 = vmax.f32 %v297_v10, 0.0 }
  0xb3   :  { %600 = vperm.xlu0 %3584, %v409_v34   ;;  %2484 = vperm.xlu1 %3585, %v2467_v37  }
  0xb4   :  { %3112 = vmatmul.msk.f32.gmra.mxu0 %vm97_vm1, %v81_v35 }
  0xb7   :  { %v299_v9 = vpop.f32.mrf.mxu1 }
  0xb8   :  { %2487 = vperm.xlu2 %3586, %v2468_v56   ;;  %v300_v11 = vadd.f32 %v4097_v62, %v299_v9  ;;  %v3621_v9 = vmov 1.0  }
  0xb9   :  { %v4049_v39 = vpop.f32.mrf.mxu0 }
  0xba   :  { %v339_v16 = vmax.f32 %v300_v11, 0.0 }
  0xbb   :  { %2490 = vperm.xlu0 %3584, %v2469_v40   ;;  %2493 = vperm.xlu1 %3585, %v2470_v43  }
  0xbc   :  { %3113 = vmatmul.msk.f32.gmra.mxu0 %vm97_vm1, %v82_v41  ;;  %1198 = vmatpush.msra.mxu2 %v339_v16 }
  0xbe   :  { %1199 = vmatpush.msra.mxu2 %v338_v19 }
  0xc0   :  { %2496 = vperm.xlu2 %3586, %v2471_v0   ;;  %1200 = vmatpush.msra.mxu2 %v337_v22  ;;  %v424_v22 = vpop.permute.xlu2 %423 }
  0xc1   :  { %v4064_v45 = vpop.f32.mrf.mxu0 }
  0xc2   :  { %1201 = vmatpush.msra.mxu2 %v336_v25  ;;  %v237_v54 = vadd.f32 %v4097_v62, %v4064_v45  ;;  %v225_v45 = vadd.f32 %v4097_v62, %v4002_v23 }
  0xc3   :  { %2499 = vperm.xlu0 %3584, %v2472_v46   ;;  %2502 = vperm.xlu1 %3585, %v2473_v49  }
  0xc4   :  { %1202 = vmatpush.msra.mxu2 %v335_v27  ;;  %v314_v3 = vmax.f32 %v225_v45, 0.0  ;;  %v1409_v45 = vld [vmem:[%s5540_s29 + $0x18] sm:$0xff] }
  0xc6   :  { %1203 = vmatpush.msra.mxu2 %v334_v29 }
  0xc8   :  { %2505 = vperm.xlu2 %3586, %v2474_v15  }
  0xc9   :  { %v4075_v51 = vpop.f32.mrf.mxu0 }
  0xcb   :  { %2508 = vperm.xlu0 %3584, %v2475_v52   ;;  %2511 = vperm.xlu1 %3585, %v2476_v55   ;;  %v240_v52 = vadd.f32 %v4097_v62, %v4075_v51  ;;  %v228_v51 = vadd.f32 %v4097_v62, %v4017_v28  ;;  %v4153_v28 = vand.u32 127, %v343_v1  ;;  %v1410_v1 = vld [vmem:[%s5540_s29 + $0x20] sm:$0xff] }
  0xcd   :  { %v319_v59 = vmax.f32 %v240_v52, 0.0  ;;  %v315_v2 = vmax.f32 %v228_v51, 0.0  ;;  %vm610_vm6 = vcmp.eq.s32.totalorder %v4153_v28, %v424_v22  ;;  %v4173_v29 = vadd.s32 128, %v4153_v28  ;;  %v1406_v52 = vld [vmem:[%s5540_s29] sm:$0xff] }
  0xcf   :  { %vm611_vm15 = vcmp.eq.s32.totalorder %v4173_v29, %v424_v22 }
  0xd0   :  { %2514 = vperm.xlu2 %3586, %v2477_v26  }
  0xd1   :  { %v4086_v57 = vpop.f32.mrf.mxu0 }
  0xd2   :  { %v243_v49 = vadd.f32 %v4097_v62, %v4086_v57  ;;  %v231_v57 = vadd.f32 %v4097_v62, %v4032_v33  ;;  %v219_v33 = vadd.f32 %v4097_v62, %v3972_v13 }
  0xd3   :  { %2517 = vperm.xlu0 %3584, %v2478_v58   ;;  %2520 = vperm.xlu1 %3585, %v2479_v60   ;;  %v234_v58 = vadd.f32 %v4097_v62, %v4049_v39  ;;  %v318_v60 = vmax.f32 %v237_v54, 0.0  ;;  %v222_v39 = vadd.f32 %v4097_v62, %v3987_v18  ;;  %v1405_v54 = vld [vmem:[%s5521_s8 + $0x8] sm:$0xff] }
  0xd4   :  { %v320_v55 = vmax.f32 %v243_v49, 0.0  ;;  %v316_v63 = vmax.f32 %v231_v57, 0.0  ;;  %v312_v6 = vmax.f32 %v219_v33, 0.0  ;;  %v1470_v49 = vld [vmem:[%s5522_s9] sm:$0x7]  ;;  %2084 = vmatpush.msrb.mxu0 %v1405_v54 }
  0xd5   :  { %v317_v61 = vmax.f32 %v234_v58, 0.0  ;;  %v313_v23 = vmax.f32 %v222_v39, 0.0  ;;  %v1407_v58 = vld [vmem:[%s5540_s29 + $0x8] sm:$0xff] }
  0xd8   :  { %2523 = vperm.xlu2 %3586, %v2480_v31  }
  0xd9   :  { %v245_v4 = vpop.f32.mrf.mxu0 }
  0xda   :  { %v246_v47 = vadd.f32 %v4097_v62, %v245_v4  ;;  %v216_v4 = vadd.f32 %v4097_v62, %v3957_v8  ;;  %v418_v8 = vpop.permute.xlu1 %417 }
  0xdb   :  { %2526 = vperm.xlu0 %3584, %v2481_v5   ;;  %2529 = vperm.xlu1 %3585, %v2482_v7   ;;  %v412_v5 = vpop.permute.xlu0 %411  ;;  %vm606_vm4 = vcmp.eq.s32.totalorder %v4153_v28, %v418_v8  ;;  %vm607_vm11 = vcmp.eq.s32.totalorder %v4173_v29, %v418_v8 }
  0xdc   :  { %v321_v53 = vmax.f32 %v246_v47, 0.0  ;;  %vm602_vm2 = vcmp.eq.s32.totalorder %v4153_v28, %v412_v5  ;;  %v311_v18 = vmax.f32 %v216_v4, 0.0  ;;  %vm603_vm7 = vcmp.eq.s32.totalorder %v4173_v29, %v412_v5  ;;  %v1411_v4 = vld [vmem:[%s5540_s29 + $0x28] sm:$0xff] }
  0xe1   :  { %v248_v20 = vpop.f32.mrf.mxu0 }
  0xe2   :  { %v249_v43 = vadd.f32 %v4097_v62, %v248_v20  ;;  %v421_v12 = vpop.permute.xlu1 %420 }
  0xe3   :  { %v415_v13 = vpop.permute.xlu0 %414  ;;  %vm608_vm5 = vcmp.eq.s32.totalorder %v4153_v28, %v421_v12  ;;  %vm609_vm13 = vcmp.eq.s32.totalorder %v4173_v29, %v421_v12  ;;  %v1413_v12 = vld [vmem:[%s5540_s29 + $0x38] sm:$0xff] }
  0xe4   :  { %v322_v50 = vmax.f32 %v249_v43, 0.0  ;;  %vm604_vm3 = vcmp.eq.s32.totalorder %v4153_v28, %v415_v13  ;;  %vm605_vm9 = vcmp.eq.s32.totalorder %v4173_v29, %v415_v13 }
  0xe9   :  { %v251_v30 = vpop.f32.mrf.mxu0 }
  0xea   :  { %v252_v41 = vadd.f32 %v4097_v62, %v251_v30 }
  0xec   :  { %v323_v48 = vmax.f32 %v252_v41, 0.0 }
  0xf1   :  { %v254_v32 = vpop.f32.mrf.mxu0 }
  0xf2   :  { %v255_v38 = vadd.f32 %v4097_v62, %v254_v32 }
  0xf4   :  { %v324_v44 = vmax.f32 %v255_v38, 0.0 }
  0xf9   :  { %v257_v34 = vpop.f32.mrf.mxu0 }
  0xfa   :  { %v258_v36 = vadd.f32 %v4097_v62, %v257_v34 }
  0xfc   :  { %v325_v42 = vmax.f32 %v258_v36, 0.0  ;;  %v433_v36 = vpop.permute.xlu1 %432 }
  0xfd   :  { %vm616_vm12 = vcmp.eq.s32.totalorder %v4153_v28, %v433_v36 }
 0x101   :  { %v260_v35 = vpop.f32.mrf.mxu0 }
 0x102   :  { %v261_v37 = vadd.f32 %v4097_v62, %v260_v35  ;;  %v427_v35 = vpop.permute.xlu2 %426 }
 0x103   :  { %vm612_vm8 = vcmp.eq.s32.totalorder %v4153_v28, %v427_v35  ;;  %vm613_vm1 = vcmp.eq.s32.totalorder %v4173_v29, %v427_v35 }
 0x104   :  { %v326_v40 = vmax.f32 %v261_v37, 0.0 }
 0x106   :  { %986 = vmatpush.msrb.mxu1 %v326_v40  ;;  %v442_v40 = vpop.permute.xlu1 %441 }
 0x108   :  { %987 = vmatpush.msrb.mxu1 %v325_v42 }
 0x109   :  { %v4132_v46 = vpop.f32.mrf.mxu0 }
 0x10a   :  { %988 = vmatpush.msrb.mxu1 %v324_v44  ;;  %v264_v30 = vadd.f32 %v4097_v62, %v4132_v46  ;;  %v436_v37 = vpop.permute.xlu2 %435 }
 0x10b   :  { %vm618_vm14 = vcmp.eq.s32.totalorder %v4153_v28, %v436_v37 }
 0x10c   :  { %989 = vmatpush.msrb.mxu1 %v323_v48  ;;  %v327_v34 = vmax.f32 %v264_v30, 0.0 }
 0x10e   :  { %990 = vmatpush.msrb.mxu1 %v322_v50  ;;  %v451_v43 = vpop.permute.xlu1 %450 }
 0x110   :  { %991 = vmatpush.msrb.mxu1 %v321_v53 }
 0x111   :  { %v266_v56 = vpop.f32.mrf.mxu0 }
 0x112   :  { %992 = vmatpush.msrb.mxu1 %v320_v55  ;;  %v267_v26 = vadd.f32 %v4097_v62, %v266_v56  ;;  %v445_v41 = vpop.permute.xlu2 %444  ;;  %v1404_v55 = vld [vmem:[%s5521_s8] sm:$0xff] }
 0x113   :  { %2085 = vmatpush.msrb.mxu0 %v1404_v55 }
 0x114   :  { %993 = vmatpush.msrb.mxu1 %v319_v59  ;;  %v328_v32 = vmax.f32 %v267_v26, 0.0 }
 0x116   :  { %994 = vmatpush.msrb.mxu1 %v318_v60  ;;  %v460_v48 = vpop.permute.xlu1 %459  ;;  %v1408_v60 = vld [vmem:[%s5540_s29 + $0x10] sm:$0xff] }
 0x118   :  { %995 = vmatpush.msrb.mxu1 %v317_v61 }
 0x119   :  { %v269_v0 = vpop.f32.mrf.mxu0 }
 0x11a   :  { %996 = vmatpush.msrb.mxu1 %v316_v63  ;;  %v270_v24 = vadd.f32 %v4097_v62, %v269_v0  ;;  %v454_v44 = vpop.permute.xlu2 %453 }
 0x11c   :  { %997 = vmatpush.msrb.mxu1 %v315_v2  ;;  %v329_v31 = vmax.f32 %v270_v24, 0.0 }
 0x11e   :  { %998 = vmatpush.msrb.mxu1 %v314_v3  ;;  %v469_v51 = vpop.permute.xlu1 %468 }
 0x120   :  { %999 = vmatpush.msrb.mxu1 %v313_v23 }
 0x121   :  { %v272_v7 = vpop.f32.mrf.mxu0 }
 0x122   :  { %1000 = vmatpush.msrb.mxu1 %v312_v6  ;;  %v273_v20 = vadd.f32 %v4097_v62, %v272_v7  ;;  %v463_v53 = vpop.permute.xlu2 %462 }
 0x124   :  { %1001 = vmatpush.msrb.mxu1 %v311_v18  ;;  %v330_v27 = vmax.f32 %v273_v20, 0.0  ;;  %v1412_v18 = vld [vmem:[%s5540_s29 + $0x30] sm:$0xff] }
 0x125   :  { %3251 = vmatmul.msk.f32.vlgmr.msrb.gmra.mxu1 %vm602_vm2, %v3621_v9  ;;  %vm622_vm2 = vcmp.eq.s32.totalorder %v4153_v28, %v442_v40 }
 0x126   :  { %v478_v23 = vpop.permute.xlu1 %477 }
 0x129   :  { %v275_v10 = vpop.f32.mrf.mxu0 }
 0x12a   :  { %v276_v17 = vadd.f32 %v4097_v62, %v275_v10  ;;  %v472_v63 = vpop.permute.xlu2 %471 }
 0x12c   :  { %v331_v25 = vmax.f32 %v276_v17, 0.0 }
 0x12d   :  { %3252 = vmatmul.msk.f32.gmra.mxu1 %vm604_vm3, %v3621_v9 }
 0x12e   :  { %v487_v20 = vpop.permute.xlu1 %486 }
 0x131   :  { %v278_v11 = vpop.f32.mrf.mxu0 }
 0x132   :  { %v279_v15 = vadd.f32 %v4097_v62, %v278_v11  ;;  %v481_v13 = vpop.permute.xlu2 %480 }
 0x134   :  { %v332_v21 = vmax.f32 %v279_v15, 0.0 }
 0x135   :  { %3253 = vmatmul.msk.f32.gmra.mxu1 %vm606_vm4, %v3621_v9  ;;  %vm624_vm4 = vcmp.eq.s32.totalorder %v4153_v28, %v445_v41 }
 0x139   :  { %v281_v14 = vpop.f32.mrf.mxu0 }
 0x13a   :  { %v282_v16 = vadd.f32 %v4097_v62, %v281_v14  ;;  %v430_v62 = vpop.permute.xlu0 %429  ;;  %v490_v26 = vpop.permute.xlu2 %489 }
 0x13b   :  { %vm614_vm10 = vcmp.eq.s32.totalorder %v4153_v28, %v430_v62  ;;  %vm615_vm3 = vcmp.eq.s32.totalorder %v4173_v29, %v430_v62 }
 0x13c   :  { %v333_v19 = vmax.f32 %v282_v16, 0.0 }
 0x13d   :  { %3254 = vmatmul.msk.f32.gmra.mxu1 %vm608_vm5, %v3621_v9  ;;  %vm617_vm5 = vcmp.eq.s32.totalorder %v4173_v29, %v433_v36 }
 0x13e   :  { %1204 = vmatpush.msra.mxu2 %v333_v19  ;;  %v1414_v19 = vld [vmem:[%s5540_s29 + $0x40] sm:$0xff] }
 0x140   :  { %1205 = vmatpush.msra.mxu2 %v332_v21 }
 0x142   :  { %1206 = vmatpush.msra.mxu2 %v331_v25  ;;  %v439_v38 = vpop.permute.xlu0 %438  ;;  %v1415_v25 = vld [vmem:[%s5540_s29 + $0x48] sm:$0xff] }
 0x143   :  { %vm620_vm0 = vcmp.eq.s32.totalorder %v4153_v28, %v439_v38 }
 0x144   :  { %1207 = vmatpush.msra.mxu2 %v330_v27 }
 0x145   :  { %3255 = vmatmul.msk.f32.gmra.mxu1 %vm610_vm6, %v3621_v9 }
 0x146   :  { %1208 = vmatpush.msra.mxu2 %v329_v31 }
 0x148   :  { %1209 = vmatpush.msra.mxu2 %v328_v32  ;;  %v1416_v32 = vld [vmem:[%s5540_s29 + $0x50] sm:$0xff] }
 0x14a   :  { %1210 = vmatpush.msra.mxu2 %v327_v34  ;;  %v448_v42 = vpop.permute.xlu0 %447 }
 0x14b   :  { %3315 = vmatmul.msk.f32.vlgmr.msra.gmra.mxu2 %vm603_vm7, %v3621_v9  ;;  %vm626_vm6 = vcmp.eq.s32.totalorder %v4153_v28, %v448_v42  ;;  %vm619_vm7 = vcmp.eq.s32.totalorder %v4173_v29, %v436_v37  ;;  %v1417_v37 = vld [vmem:[%s5540_s29 + $0x58] sm:$0xff] }
 0x14c   :  { %3578 = vmatpush.msrb.mxu2 %v1405_v54 }
 0x14d   :  { %3256 = vmatmul.msk.f32.gmra.mxu1 %vm612_vm8, %v3621_v9  ;;  %vm628_vm8 = vcmp.eq.s32.totalorder %v4153_v28, %v451_v43 }
 0x14e   :  { %3579 = vmatpush.msrb.mxu2 %v1404_v55  ;;  %v1420_v55 = vld [vmem:[%s5540_s29 + $0x70] sm:$0xff] }
 0x152   :  { %v457_v46 = vpop.permute.xlu0 %456 }
 0x153   :  { %3316 = vmatmul.msk.f32.gmra.mxu2 %vm605_vm9, %v3621_v9  ;;  %vm621_vm9 = vcmp.eq.s32.totalorder %v4173_v29, %v439_v38  ;;  %v496_v38 = vpop.permute.xlu1 %495 }
 0x155   :  { %3257 = vmatmul.msk.f32.gmra.mxu1 %vm614_vm10, %v3621_v9  ;;  %vm630_vm10 = vcmp.eq.s32.totalorder %v4153_v28, %v454_v44 }
 0x15a   :  { %v466_v59 = vpop.permute.xlu0 %465 }
 0x15b   :  { %3317 = vmatmul.msk.f32.gmra.mxu2 %vm607_vm11, %v3621_v9  ;;  %vm623_vm11 = vcmp.eq.s32.totalorder %v4173_v29, %v442_v40 }
 0x15d   :  { %3258 = vmatmul.msk.f32.gmra.mxu1 %vm616_vm12, %v3621_v9  ;;  %vm632_vm12 = vcmp.eq.s32.totalorder %v4153_v28, %v457_v46 }
 0x162   :  { %v475_v39 = vpop.permute.xlu0 %474 }
 0x163   :  { %3318 = vmatmul.msk.f32.gmra.mxu2 %vm609_vm13, %v3621_v9  ;;  %vm625_vm13 = vcmp.eq.s32.totalorder %v4173_v29, %v445_v41 }
 0x165   :  { %3259 = vmatmul.msk.f32.gmra.mxu1 %vm618_vm14, %v3621_v9  ;;  %vm634_vm14 = vcmp.eq.s32.totalorder %v4153_v28, %v460_v48 }
 0x16a   :  { %v484_v14 = vpop.permute.xlu0 %483 }
 0x16b   :  { %3319 = vmatmul.msk.f32.gmra.mxu2 %vm611_vm15, %v3621_v9  ;;  %vm1664_vm15 = vcmask 1042432  }
 0x16c   :  { %3379 = vmatpush.msk.msrb.mxu3 %vm1664_vm15, %v1470_v49  ;;  %v1419_v49 = vld [vmem:[%s5540_s29 + $0x68] sm:$0xff] }
 0x16d   :  { %3260 = vmatmul.msk.f32.gmra.mxu1 %vm620_vm0, %v3621_v9  ;;  %vm627_vm0 = vcmp.eq.s32.totalorder %v4173_v29, %v448_v42 }
 0x172   :  { %v493_v34 = vpop.permute.xlu0 %492 }
 0x173   :  { %3320 = vmatmul.msk.f32.gmra.mxu2 %vm613_vm1, %v3621_v9  ;;  %vm1471_vm1 = vcmask 23552  }
 0x174   :  { %3380 = vmatmul.msk.f32.vlgmr.msrb.gmra.mxu3 %vm1471_vm1, %v1406_v52 }
 0x175   :  { %3261 = vmatmul.msk.f32.gmra.mxu1 %vm622_vm2, %v3621_v9  ;;  %vm636_vm2 = vcmp.eq.s32.totalorder %v4153_v28, %v463_v53 }
 0x17b   :  { %3321 = vmatmul.msk.f32.gmra.mxu2 %vm615_vm3, %v3621_v9  ;;  %vm629_vm3 = vcmp.eq.s32.totalorder %v4173_v29, %v451_v43  ;;  %v1418_v43 = vld [vmem:[%s5540_s29 + $0x60] sm:$0xff] }
 0x17c   :  { %3381 = vmatmul.msk.f32.gmra.mxu3 %vm1471_vm1, %v1407_v58 }
 0x17d   :  { %3262 = vmatmul.msk.f32.gmra.mxu1 %vm624_vm4, %v3621_v9  ;;  %vm638_vm4 = vcmp.eq.s32.totalorder %v4153_v28, %v466_v59 }
 0x183   :  { %3322 = vmatmul.msk.f32.gmra.mxu2 %vm617_vm5, %v3621_v9  ;;  %vm631_vm5 = vcmp.eq.s32.totalorder %v4173_v29, %v454_v44  ;;  %v499_v44 = vpop.permute.xlu2 %498 }
 0x184   :  { %3382 = vmatmul.msk.f32.gmra.mxu3 %vm1471_vm1, %v1408_v60  ;;  %v1421_v60 = vld [vmem:[%s5540_s29 + $0x78] sm:$0xff] }
 0x185   :  { %3263 = vmatmul.msk.f32.gmra.mxu1 %vm626_vm6, %v3621_v9  ;;  %vm640_vm6 = vcmp.eq.s32.totalorder %v4153_v28, %v469_v51 }
 0x18b   :  { %3323 = vmatmul.msk.f32.gmra.mxu2 %vm619_vm7, %v3621_v9  ;;  %vm633_vm7 = vcmp.eq.s32.totalorder %v4173_v29, %v457_v46 }
 0x18c   :  { %3383 = vmatmul.msk.f32.gmra.mxu3 %vm1471_vm1, %v1409_v45 }
 0x18d   :  { %3264 = vmatmul.msk.f32.gmra.mxu1 %vm628_vm8, %v3621_v9  ;;  %vm642_vm8 = vcmp.eq.s32.totalorder %v4153_v28, %v472_v63 }
 0x193   :  { %3324 = vmatmul.msk.f32.gmra.mxu2 %vm621_vm9, %v3621_v9  ;;  %vm635_vm9 = vcmp.eq.s32.totalorder %v4173_v29, %v460_v48 }
 0x194   :  { %3384 = vmatmul.msk.f32.gmra.mxu3 %vm1471_vm1, %v1410_v1 }
 0x195   :  { %3265 = vmatmul.msk.f32.gmra.mxu1 %vm630_vm10, %v3621_v9  ;;  %vm644_vm10 = vcmp.eq.s32.totalorder %v4153_v28, %v475_v39 }
 0x19b   :  { %3325 = vmatmul.msk.f32.gmra.mxu2 %vm623_vm11, %v3621_v9  ;;  %vm1877_vm11 = vcmask 130048  }
 0x19c   :  { %3385 = vmatmul.msk.f32.gmra.mxu3 %vm1471_vm1, %v1411_v4  ;;  %v1423_v4 = vld [vmem:[%s5540_s29 + $0x88] sm:$0xff] }
 0x19d   :  { %3266 = vmatmul.msk.f32.gmra.mxu1 %vm632_vm12, %v3621_v9  ;;  %vm637_vm12 = vcmp.eq.s32.totalorder %v4173_v29, %v463_v53 }
 0x1a2   :  { %v1003_v47 = vpop.f32.mrf.mxu1 }
 0x1a3   :  { %3326 = vmatmul.msk.f32.gmra.mxu2 %vm625_vm13, %v3621_v9  ;;  %vm646_vm13 = vcmp.eq.s32.totalorder %v4153_v28, %v478_v23 }
 0x1a4   :  { %3386 = vmatmul.msk.f32.gmra.mxu3 %vm1471_vm1, %v1412_v18 }
 0x1a5   :  { %3267 = vmatmul.msk.f32.gmra.mxu1 %vm634_vm14, %v3621_v9  ;;  %vm639_vm14 = vcmp.eq.s32.totalorder %v4173_v29, %v466_v59 }
 0x1aa   :  { %v1006_v50 = vpop.f32.mrf.mxu1 }
 0x1ab   :  { %3327 = vmatmul.msk.f32.gmra.mxu2 %vm627_vm0, %v3621_v9  ;;  %vm648_vm0 = vcmp.eq.s32.totalorder %v4153_v28, %v481_v13 }
 0x1ac   :  { %3387 = vmatmul.msk.f32.gmra.mxu3 %vm1471_vm1, %v1413_v12 }
 0x1ad   :  { %3268 = vmatmul.msk.f32.gmra.mxu1 %vm636_vm2, %v3621_v9  ;;  %vm641_vm2 = vcmp.eq.s32.totalorder %v4173_v29, %v469_v51  ;;  %v508_v51 = vpop.permute.xlu2 %507 }
 0x1b2   :  { %v1009_v56 = vpop.f32.mrf.mxu1 }
 0x1b3   :  { %3328 = vmatmul.msk.f32.gmra.mxu2 %vm629_vm3, %v3621_v9  ;;  %vm650_vm3 = vcmp.eq.s32.totalorder %v4153_v28, %v484_v14 }
 0x1b4   :  { %3388 = vmatmul.msk.f32.gmra.mxu3 %vm1471_vm1, %v1414_v19 }
 0x1b5   :  { %3269 = vmatmul.msk.f32.gmra.mxu1 %vm638_vm4, %v3621_v9  ;;  %vm643_vm4 = vcmp.eq.s32.totalorder %v4173_v29, %v472_v63 }
 0x1ba   :  { %v1012_v57 = vpop.f32.mrf.mxu1 }
 0x1bb   :  { %3329 = vmatmul.msk.f32.gmra.mxu2 %vm631_vm5, %v3621_v9  ;;  %vm652_vm5 = vcmp.eq.s32.totalorder %v4153_v28, %v487_v20 }
 0x1bc   :  { %3389 = vmatmul.msk.f32.gmra.mxu3 %vm1471_vm1, %v1415_v25 }
 0x1bd   :  { %3270 = vmatmul.msk.f32.gmra.mxu1 %vm640_vm6, %v3621_v9  ;;  %vm645_vm6 = vcmp.eq.s32.totalorder %v4173_v29, %v475_v39 }
 0x1c2   :  { %v1015_v61 = vpop.f32.mrf.mxu1 }
 0x1c3   :  { %3330 = vmatmul.msk.f32.gmra.mxu2 %vm633_vm7, %v3621_v9  ;;  %vm654_vm7 = vcmp.eq.s32.totalorder %v4153_v28, %v490_v26 }
 0x1c4   :  { %3390 = vmatmul.msk.f32.gmra.mxu3 %vm1471_vm1, %v1416_v32  ;;  %v1427_v32 = vld [vmem:[%s5540_s29 + $0xa8] sm:$0xff] }
 0x1c5   :  { %3271 = vmatmul.msk.f32.gmra.mxu1 %vm642_vm8, %v3621_v9  ;;  %vm647_vm8 = vcmp.eq.s32.totalorder %v4173_v29, %v478_v23 }
 0x1ca   :  { %v4268_v0 = vpop.f32.mrf.mxu1 }
 0x1cb   :  { %3331 = vmatmul.msk.f32.gmra.mxu2 %vm635_vm9, %v3621_v9  ;;  %vm656_vm9 = vcmp.eq.s32.totalorder %v4153_v28, %v493_v34 }
 0x1cc   :  { %3391 = vmatmul.msk.f32.gmra.mxu3 %vm1471_vm1, %v1417_v37 }
 0x1cd   :  { %3272 = vmatmul.msk.f32.gmra.mxu1 %vm644_vm10, %v3621_v9  ;;  %vm649_vm10 = vcmp.eq.s32.totalorder %v4173_v29, %v481_v13  ;;  %v1424_v13 = vld [vmem:[%s5540_s29 + $0x90] sm:$0xff] }
 0x1ce   :  { %v1212_v2 = vpop.f32.mrf.mxu2 }
 0x1cf   :  { %v1213_v33 = vadd.f32 %v1212_v2, %v1003_v47 }
 0x1d1   :  { %3444 = vmatmul.msk.f32.vlgmr.msrb.gmra.mxu0 %vm1877_vm11, %v1213_v33 }
 0x1d2   :  { %v4279_v3 = vpop.f32.mrf.mxu1 }
 0x1d3   :  { %3332 = vmatmul.msk.f32.gmra.mxu2 %vm637_vm12, %v3621_v9  ;;  %vm658_vm12 = vcmp.eq.s32.totalorder %v4153_v28, %v496_v38 }
 0x1d4   :  { %3392 = vmatmul.msk.f32.gmra.mxu3 %vm1471_vm1, %v1418_v43 }
 0x1d5   :  { %3273 = vmatmul.msk.f32.gmra.mxu1 %vm646_vm13, %v3621_v9  ;;  %vm651_vm13 = vcmp.eq.s32.totalorder %v4173_v29, %v484_v14 }
 0x1d6   :  { %v1215_v5 = vpop.f32.mrf.mxu2 }
 0x1d7   :  { %v1216_v6 = vadd.f32 %v1215_v5, %v1006_v50  ;;  %v502_v50 = vpop.permute.xlu0 %501 }
 0x1d9   :  { %3445 = vmatmul.msk.f32.gmra.mxu0 %vm1877_vm11, %v1216_v6 }
 0x1da   :  { %v4290_v7 = vpop.f32.mrf.mxu1 }
 0x1db   :  { %3333 = vmatmul.msk.f32.gmra.mxu2 %vm639_vm14, %v3621_v9  ;;  %vm660_vm14 = vcmp.eq.s32.totalorder %v4153_v28, %v499_v44 }
 0x1dc   :  { %3393 = vmatmul.msk.f32.gmra.mxu3 %vm1471_vm1, %v1419_v49 }
 0x1dd   :  { %3274 = vmatmul.msk.f32.gmra.mxu1 %vm648_vm0, %v3621_v9  ;;  %vm653_vm0 = vcmp.eq.s32.totalorder %v4173_v29, %v487_v20 }
 0x1de   :  { %v1218_v10 = vpop.f32.mrf.mxu2 }
 0x1df   :  { %v1219_v8 = vadd.f32 %v1218_v10, %v1009_v56  ;;  %v505_v56 = vpop.permute.xlu1 %504  ;;  %v4413_v1 = vpop.permute.xlu0 %510 }
 0x1e0   :  { %v4447_v10 = vpop.permute.xlu2 %516 }
 0x1e1   :  { %3446 = vmatmul.msk.f32.gmra.mxu0 %vm1877_vm11, %v1219_v8 }
 0x1e2   :  { %v4301_v11 = vpop.f32.mrf.mxu1 }
 0x1e3   :  { %3334 = vmatmul.msk.f32.gmra.mxu2 %vm641_vm2, %v3621_v9  ;;  %vm662_vm2 = vcmp.eq.s32.totalorder %v4153_v28, %v502_v50 }
 0x1e4   :  { %3394 = vmatmul.msk.f32.gmra.mxu3 %vm1471_vm1, %v1420_v55 }
 0x1e5   :  { %3275 = vmatmul.msk.f32.gmra.mxu1 %vm650_vm3, %v3621_v9  ;;  %vm655_vm3 = vcmp.eq.s32.totalorder %v4173_v29, %v490_v26 }
 0x1e6   :  { %v1221_v15 = vpop.f32.mrf.mxu2 }
 0x1e7   :  { %v1222_v16 = vadd.f32 %v1221_v15, %v1012_v57  ;;  %v4430_v23 = vpop.permute.xlu1 %513  ;;  %v1425_v15 = vld [vmem:[%s5540_s29 + $0x98] sm:$0xff] }
 0x1e9   :  { %3447 = vmatmul.msk.f32.gmra.mxu0 %vm1877_vm11, %v1222_v16  ;;  %v4464_v16 = vpop.permute.xlu0 %519 }
 0x1ea   :  { %v4312_v17 = vpop.f32.mrf.mxu1 }
 0x1eb   :  { %3335 = vmatmul.msk.f32.gmra.mxu2 %vm643_vm4, %v3621_v9  ;;  %vm664_vm4 = vcmp.eq.s32.totalorder %v4153_v28, %v505_v56 }
 0x1ec   :  { %3395 = vmatmul.msk.f32.gmra.mxu3 %vm1471_vm1, %v1421_v60 }
 0x1ed   :  { %3276 = vmatmul.msk.f32.gmra.mxu1 %vm652_vm5, %v3621_v9  ;;  %vm657_vm5 = vcmp.eq.s32.totalorder %v4173_v29, %v493_v34  ;;  %v4501_v34 = vpop.permute.xlu2 %525 }
 0x1ee   :  { %v1224_v21 = vpop.f32.mrf.mxu2 }
 0x1ef   :  { %v1225_v22 = vadd.f32 %v1224_v21, %v1015_v61 }
 0x1f1   :  { %3448 = vmatmul.msk.f32.gmra.mxu0 %vm1877_vm11, %v1225_v22  ;;  %v1426_v22 = vld [vmem:[%s5540_s29 + $0xa0] sm:$0xff] }
 0x1f2   :  { %v4323_v24 = vpop.f32.mrf.mxu1 }
 0x1f3   :  { %3336 = vmatmul.msk.f32.gmra.mxu2 %vm645_vm6, %v3621_v9  ;;  %vm666_vm6 = vcmp.eq.s32.totalorder %v4153_v28, %v508_v51 }
 0x1f5   :  { %3277 = vmatmul.msk.f32.gmra.mxu1 %vm654_vm7, %v3621_v9  ;;  %vm659_vm7 = vcmp.eq.s32.totalorder %v4173_v29, %v496_v38 }
 0x1f6   :  { %v1227_v27 = vpop.f32.mrf.mxu2 }
 0x1f7   :  { %v1228_v30 = vadd.f32 %v1227_v27, %v4268_v0  ;;  %v1422_v0 = vld [vmem:[%s5540_s29 + $0x80] sm:$0xff]  ;;  %v4420_v2 = vpop.f32.mrf.mxu3 }
 0x1f8   :  { %3396 = vmatmul.msk.f32.gmra.mxu3 %vm1471_vm1, %v1422_v0 }
 0x1f9   :  { %3449 = vmatmul.msk.f32.gmra.mxu0 %vm1877_vm11, %v1228_v30 }
 0x1fa   :  { %v4335_v31 = vpop.f32.mrf.mxu1 }
 0x1fb   :  { %3337 = vmatmul.msk.f32.gmra.mxu2 %vm647_vm8, %v3621_v9  ;;  %vm668_vm8 = vcmp.eq.s32.totalorder %v4153_v28, %v4413_v1 }
 0x1fd   :  { %3278 = vmatmul.msk.f32.gmra.mxu1 %vm656_vm9, %v3621_v9  ;;  %vm661_vm9 = vcmp.eq.s32.totalorder %v4173_v29, %v499_v44 }
 0x1fe   :  { %v1230_v35 = vpop.f32.mrf.mxu2 }
 0x1ff   :  { %v1231_v62 = vadd.f32 %v1230_v35, %v4279_v3  ;;  %v4437_v6 = vpop.f32.mrf.mxu3 }
 0x200   :  { %3397 = vmatmul.msk.f32.gmra.mxu3 %vm1471_vm1, %v1423_v4  ;;  %v1432_v4 = vld [vmem:[%s5540_s29 + $0xd0] sm:$0xff] }
 0x201   :  { %3450 = vmatmul.msk.f32.gmra.mxu0 %vm1877_vm11, %v1231_v62 }
 0x202   :  { %v4347_v36 = vpop.f32.mrf.mxu1 }
 0x203   :  { %3338 = vmatmul.msk.f32.gmra.mxu2 %vm649_vm10, %v3621_v9  ;;  %vm670_vm10 = vcmp.eq.s32.totalorder %v4153_v28, %v4430_v23 }
 0x205   :  { %3279 = vmatmul.msk.f32.gmra.mxu1 %vm658_vm12, %v3621_v9  ;;  %vm663_vm12 = vcmp.eq.s32.totalorder %v4173_v29, %v502_v50 }
 0x206   :  { %v1233_v40 = vpop.f32.mrf.mxu2 }
 0x207   :  { %v1234_v41 = vadd.f32 %v1233_v40, %v4290_v7  ;;  %v1428_v40 = vld [vmem:[%s5540_s29 + $0xb0] sm:$0xff] }
 0x208   :  { %3398 = vmatmul.msk.f32.gmra.mxu3 %vm1471_vm1, %v1424_v13 }
 0x209   :  { %3451 = vmatmul.msk.f32.gmra.mxu0 %vm1877_vm11, %v1234_v41  ;;  %v4521_v41 = vpop.permute.xlu0 %528 }
 0x20a   :  { %v4360_v42 = vpop.f32.mrf.mxu1 }
 0x20b   :  { %3339 = vmatmul.msk.f32.gmra.mxu2 %vm651_vm13, %v3621_v9  ;;  %vm672_vm13 = vcmp.eq.s32.totalorder %v4153_v28, %v4447_v10 }
 0x20d   :  { %3280 = vmatmul.msk.f32.gmra.mxu1 %vm660_vm14, %v3621_v9  ;;  %vm665_vm14 = vcmp.eq.s32.totalorder %v4173_v29, %v505_v56  ;;  %v1430_v56 = vld [vmem:[%s5540_s29 + $0xc0] sm:$0xff] }
 0x20e   :  { %v1236_v46 = vpop.f32.mrf.mxu2 }
 0x20f   :  { %v1237_v47 = vadd.f32 %v1236_v46, %v4301_v11  ;;  %v4454_v11 = vpop.f32.mrf.mxu3 }
 0x210   :  { %3399 = vmatmul.msk.f32.gmra.mxu3 %vm1471_vm1, %v1425_v15 }
 0x211   :  { %3452 = vmatmul.msk.f32.gmra.mxu0 %vm1877_vm11, %v1237_v47 }
 0x212   :  { %v4372_v48 = vpop.f32.mrf.mxu1 }
 0x213   :  { %3340 = vmatmul.msk.f32.gmra.mxu2 %vm653_vm0, %v3621_v9  ;;  %vm674_vm0 = vcmp.eq.s32.totalorder %v4153_v28, %v4464_v16 }
 0x215   :  { %3281 = vmatmul.msk.f32.gmra.mxu1 %vm662_vm2, %v3621_v9  ;;  %vm667_vm2 = vcmp.eq.s32.totalorder %v4173_v29, %v508_v51 }
 0x216   :  { %v1239_v52 = vpop.f32.mrf.mxu2 }
 0x217   :  { %v1240_v53 = vadd.f32 %v1239_v52, %v4312_v17  ;;  %v4471_v19 = vpop.f32.mrf.mxu3 }
 0x218   :  { %3400 = vmatmul.msk.f32.gmra.mxu3 %vm1471_vm1, %v1426_v22 }
 0x219   :  { %3453 = vmatmul.msk.f32.gmra.mxu0 %vm1877_vm11, %v1240_v53 }
 0x21a   :  { %v4384_v54 = vpop.f32.mrf.mxu1 }
 0x21b   :  { %3341 = vmatmul.msk.f32.gmra.mxu2 %vm655_vm3, %v3621_v9 }
 0x21d   :  { %3282 = vmatmul.msk.f32.gmra.mxu1 %vm664_vm4, %v3621_v9  ;;  %vm669_vm4 = vcmp.eq.s32.totalorder %v4173_v29, %v4413_v1 }
 0x21e   :  { %v1242_v58 = vpop.f32.mrf.mxu2 }
 0x21f   :  { %v1243_v59 = vadd.f32 %v1242_v58, %v4323_v24  ;;  %v4481_v24 = vpop.permute.xlu1 %522  ;;  %v4491_v30 = vpop.f32.mrf.mxu3 }
 0x220   :  { %vm676_vm3 = vcmp.eq.s32.totalorder %v4153_v28, %v4481_v24  ;;  %3401 = vmatmul.msk.f32.gmra.mxu3 %vm1471_vm1, %v1427_v32  ;;  %v4561_v58 = vpop.permute.xlu2 %534 }
 0x221   :  { %3454 = vmatmul.msk.f32.gmra.mxu0 %vm1877_vm11, %v1243_v59 }
 0x222   :  { %v4396_v57 = vpop.f32.mrf.mxu1 }
 0x223   :  { %3342 = vmatmul.msk.f32.gmra.mxu2 %vm657_vm5, %v3621_v9  ;;  %vm678_vm5 = vcmp.eq.s32.totalorder %v4153_v28, %v4501_v34 }
 0x225   :  { %3283 = vmatmul.msk.f32.gmra.mxu1 %vm666_vm6, %v3621_v9  ;;  %vm671_vm6 = vcmp.eq.s32.totalorder %v4173_v29, %v4430_v23 }
 0x226   :  { %v1245_v61 = vpop.f32.mrf.mxu2 }
 0x227   :  { %v1246_v45 = vadd.f32 %v1245_v61, %v4335_v31  ;;  %v4511_v37 = vpop.f32.mrf.mxu3  ;;  %v4541_v49 = vpop.permute.xlu1 %531 }
 0x228   :  { %3402 = vmatmul.msk.f32.gmra.mxu3 %vm1471_vm1, %v1428_v40 }
 0x229   :  { %3455 = vmatmul.msk.f32.gmra.mxu0 %vm1877_vm11, %v1246_v45  ;;  %v1431_v45 = vld [vmem:[%s5540_s29 + $0xc8] sm:$0xff] }
 0x22a   :  { %v4408_v63 = vpop.f32.mrf.mxu1 }
 0x22b   :  { %3343 = vmatmul.msk.f32.gmra.mxu2 %vm659_vm7, %v3621_v9  ;;  %vm680_vm7 = vcmp.eq.s32.totalorder %v4153_v28, %v4521_v41 }
 0x22d   :  { %3284 = vmatmul.msk.f32.gmra.mxu1 %vm668_vm8, %v3621_v9  ;;  %vm673_vm8 = vcmp.eq.s32.totalorder %v4173_v29, %v4447_v10 }
 0x22e   :  { %v1248_v39 = vpop.f32.mrf.mxu2 }
 0x22f   :  { %v1249_v33 = vadd.f32 %v1248_v39, %v4347_v36  ;;  %v4531_v46 = vpop.f32.mrf.mxu3  ;;  %v4597_v23 = vpop.permute.xlu1 %540 }
 0x231   :  { %3456 = vmatmul.msk.f32.gmra.mxu0 %vm1877_vm11, %v1249_v33 }
 0x232   :  { %v4425_v3 = vpop.f32.mrf.mxu1 }
 0x233   :  { %3344 = vmatmul.msk.f32.gmra.mxu2 %vm661_vm9, %v3621_v9  ;;  %vm682_vm9 = vcmp.eq.s32.totalorder %v4153_v28, %v4541_v49 }
 0x235   :  { %3285 = vmatmul.msk.f32.gmra.mxu1 %vm670_vm10, %v3621_v9  ;;  %vm675_vm10 = vcmp.eq.s32.totalorder %v4173_v29, %v4464_v16 }
 0x236   :  { %v1251_v5 = vpop.f32.mrf.mxu2 }
 0x237   :  { %v1252_v7 = vadd.f32 %v1251_v5, %v4360_v42  ;;  %v4664_v40 = vpop.permute.xlu1 %549 }
 0x239   :  { %3457 = vmatmul.msk.f32.gmra.mxu0 %vm1877_vm11, %v1252_v7 }
 0x23a   :  { %v4442_v18 = vpop.f32.mrf.mxu1 }
 0x23b   :  { %3345 = vmatmul.msk.f32.gmra.mxu2 %vm663_vm12, %v3621_v9  ;;  %vm684_vm12 = vcmp.eq.s32.totalorder %v4153_v28, %v4561_v58 }
 0x23d   :  { %3286 = vmatmul.msk.f32.gmra.mxu1 %vm672_vm13, %v3621_v9  ;;  %vm677_vm13 = vcmp.eq.s32.totalorder %v4173_v29, %v4481_v24 }
 0x23e   :  { %v1254_v8 = vpop.f32.mrf.mxu2 }
 0x23f   :  { %v1255_v12 = vadd.f32 %v1254_v8, %v4372_v48  ;;  %v1429_v48 = vld [vmem:[%s5540_s29 + $0xb8] sm:$0xff] }
 0x240   :  { %3403 = vmatmul.msk.f32.gmra.mxu3 %vm1471_vm1, %v1429_v48  ;;  %v1433_v8 = vld [vmem:[%s5540_s29 + $0xd8] sm:$0xff] }
 0x241   :  { %3458 = vmatmul.msk.f32.gmra.mxu0 %vm1877_vm11, %v1255_v12  ;;  %v4617_v12 = vpop.permute.xlu2 %543 }
 0x242   :  { %v4459_v14 = vpop.f32.mrf.mxu1 }
 0x243   :  { %3346 = vmatmul.msk.f32.gmra.mxu2 %vm665_vm14, %v3621_v9 }
 0x245   :  { %3287 = vmatmul.msk.f32.gmra.mxu1 %vm674_vm0, %v3621_v9  ;;  %vm679_vm0 = vcmp.eq.s32.totalorder %v4173_v29, %v4501_v34 }
 0x246   :  { %v1257_v17 = vpop.f32.mrf.mxu2 }
 0x247   :  { %v1258_v20 = vadd.f32 %v1257_v17, %v4384_v54  ;;  %v4551_v54 = vpop.f32.mrf.mxu3 }
 0x248   :  { %3404 = vmatmul.msk.f32.gmra.mxu3 %vm1471_vm1, %v1430_v56 }
 0x249   :  { %3459 = vmatmul.msk.f32.gmra.mxu0 %vm1877_vm11, %v1258_v20 }
 0x24a   :  { %v4476_v21 = vpop.f32.mrf.mxu1 }
 0x24b   :  { %3347 = vmatmul.msk.f32.gmra.mxu2 %vm667_vm2, %v3621_v9  ;;  %vm688_vm2 = vcmp.eq.s32.totalorder %v4153_v28, %v4597_v23 }
 0x24d   :  { %3288 = vmatmul.msk.f32.gmra.mxu1 %vm676_vm3, %v3621_v9  ;;  %vm681_vm3 = vcmp.eq.s32.totalorder %v4173_v29, %v4521_v41 }
 0x24e   :  { %v1260_v25 = vpop.f32.mrf.mxu2  ;;  %v4488_v26 = vpop.f32.mrf.mxu0 }
 0x24f   :  { %v1261_v27 = vadd.f32 %v1260_v25, %v4396_v57  ;;  %v1709_v51 = vpop.f32.mrf.mxu3  ;;  %v2088_v24 = vadd.f32 %v4488_v26, %v4420_v2  ;;  %v4644_v25 = vld [vmem:[%s5523_s10] ss:$0 sm:$0xff] }
 0x250   :  { %3405 = vmatmul.msk.f32.gmra.mxu3 %vm1471_vm1, %v1431_v45 }
 0x251   :  { %3460 = vmatmul.msk.f32.gmra.mxu0 %vm1877_vm11, %v1261_v27  ;;  %v2283_v32 = vadd.f32 %v4644_v25, %v2088_v24 }
 0x252   :  { %v4496_v31 = vpop.f32.mrf.mxu1 }
 0x253   :  { %3348 = vmatmul.msk.f32.gmra.mxu2 %vm669_vm4, %v3621_v9  ;;  %vm690_vm4 = vcmp.eq.s32.totalorder %v4153_v28, %v4617_v12  ;;  %v2347_v41 = vmax.f32 %v2283_v32, 0.0 }
 0x255   :  { %3289 = vmatmul.msk.f32.gmra.mxu1 %vm678_vm5, %v3621_v9  ;;  %vm683_vm5 = vcmp.eq.s32.totalorder %v4173_v29, %v4541_v49 }
 0x256   :  { %v1263_v35 = vpop.f32.mrf.mxu2  ;;  %v4508_v62 = vpop.f32.mrf.mxu0 }
 0x257   :  { %v1264_v36 = vadd.f32 %v1263_v35, %v4408_v63  ;;  %v4579_v63 = vpop.permute.xlu0 %537  ;;  %v1712_v33 = vpop.f32.mrf.mxu3 }
 0x258   :  { %vm686_vm14 = vcmp.eq.s32.totalorder %v4153_v28, %v4579_v63  ;;  %3406 = vmatmul.msk.f32.gmra.mxu3 %vm1471_vm1, %v1432_v4 }
 0x259   :  { %3461 = vmatmul.msk.f32.gmra.mxu0 %vm1877_vm11, %v1264_v36 }
 0x25a   :  { %v4516_v38 = vpop.f32.mrf.mxu1 }
 0x25b   :  { %3349 = vmatmul.msk.f32.gmra.mxu2 %vm671_vm6, %v3621_v9 }
 0x25d   :  { %3290 = vmatmul.msk.f32.gmra.mxu1 %vm680_vm7, %v3621_v9  ;;  %vm685_vm7 = vcmp.eq.s32.totalorder %v4173_v29, %v4561_v58 }
 0x25e   :  { %v1266_v42 = vpop.f32.mrf.mxu2  ;;  %v4528_v43 = vpop.f32.mrf.mxu0 }
 0x25f   :  { %v1267_v44 = vadd.f32 %v1266_v42, %v4425_v3  ;;  %v4607_v13 = vpop.f32.mrf.mxu3  ;;  %v4637_v22 = vpop.permute.xlu0 %546  ;;  %v2091_v42 = vadd.f32 %v4508_v62, %v4437_v6 }
 0x260   :  { %3407 = vmatmul.msk.f32.gmra.mxu3 %vm1471_vm1, %v1433_v8  ;;  %vm692_vm6 = vcmp.eq.s32.totalorder %v4153_v28, %v4637_v22  ;;  %v1437_v8 = vld [vmem:[%s5540_s29 + $0xf8] sm:$0xff] }
 0x261   :  { %3462 = vmatmul.msk.f32.gmra.mxu0 %vm1877_vm11, %v1267_v44 }
 0x262   :  { %v4536_v47 = vpop.f32.mrf.mxu1 }
 0x263   :  { %3350 = vmatmul.msk.f32.gmra.mxu2 %vm673_vm8, %v3621_v9  ;;  %vm694_vm8 = vcmp.eq.s32.totalorder %v4153_v28, %v4664_v40 }
 0x265   :  { %3291 = vmatmul.msk.f32.gmra.mxu1 %vm682_vm9, %v3621_v9  ;;  %vm687_vm9 = vcmp.eq.s32.totalorder %v4173_v29, %v4579_v63 }
 0x266   :  { %v1269_v50 = vpop.f32.mrf.mxu2  ;;  %v4548_v52 = vpop.f32.mrf.mxu0 }
 0x267   :  { %v1270_v53 = vadd.f32 %v1269_v50, %v4442_v18  ;;  %v4627_v17 = vpop.f32.mrf.mxu3  ;;  %v2284_v50 = vadd.f32 %v4644_v25, %v2091_v42 }
 0x269   :  { %3463 = vmatmul.msk.f32.gmra.mxu0 %vm1877_vm11, %v1270_v53 }
 0x26a   :  { %v4556_v55 = vpop.f32.mrf.mxu1 }
 0x26b   :  { %3351 = vmatmul.msk.f32.gmra.mxu2 %vm675_vm10, %v3621_v9 }
 0x26d   :  { %3292 = vmatmul.msk.f32.gmra.mxu1 %vm684_vm12, %v3621_v9  ;;  %vm689_vm12 = vcmp.eq.s32.totalorder %v4173_v29, %v4597_v23 }
 0x26e   :  { %v1272_v59 = vpop.f32.mrf.mxu2  ;;  %v4568_v57 = vpop.f32.mrf.mxu0 }
 0x26f   :  { %v1273_v60 = vadd.f32 %v1272_v59, %v4459_v14  ;;  %v4653_v34 = vpop.f32.mrf.mxu3  ;;  %v1436_v59 = vld [vmem:[%s5540_s29 + $0xf0] sm:$0xff] }
 0x271   :  { %3464 = vmatmul.msk.f32.gmra.mxu0 %vm1877_vm11, %v1273_v60  ;;  %v4688_v60 = vpop.permute.xlu2 %552 }
 0x272   :  { %v4574_v61 = vpop.f32.mrf.mxu1  ;;  %vm696_vm10 = vcmp.eq.s32.totalorder %v4153_v28, %v4688_v60 }
 0x273   :  { %3352 = vmatmul.msk.f32.gmra.mxu2 %vm677_vm13, %v3621_v9 }
 0x275   :  { %3293 = vmatmul.msk.f32.gmra.mxu1 %vm686_vm14, %v3621_v9  ;;  %vm691_vm14 = vcmp.eq.s32.totalorder %v4173_v29, %v4617_v12 }
 0x276   :  { %v1275_v0 = vpop.f32.mrf.mxu2  ;;  %v4586_v1 = vpop.f32.mrf.mxu0 }
 0x277   :  { %v1276_v39 = vadd.f32 %v1275_v0, %v4476_v21  ;;  %v1434_v21 = vld [vmem:[%s5540_s29 + $0xe0] sm:$0xff]  ;;  %v4677_v6 = vpop.f32.mrf.mxu3 }
 0x278   :  { %3408 = vmatmul.msk.f32.gmra.mxu3 %vm1471_vm1, %v1434_v21 }
 0x279   :  { %3465 = vmatmul.msk.f32.gmra.mxu0 %vm1877_vm11, %v1276_v39 }
 0x27a   :  { %v4592_v3 = vpop.f32.mrf.mxu1 }
 0x27b   :  { %3353 = vmatmul.msk.f32.gmra.mxu2 %vm679_vm0, %v3621_v9 }
 0x27d   :  { %3294 = vmatmul.msk.f32.gmra.mxu1 %vm688_vm2, %v3621_v9  ;;  %vm693_vm2 = vcmp.eq.s32.totalorder %v4173_v29, %v4637_v22 }
 0x27e   :  { %v1278_v5 = vpop.f32.mrf.mxu2  ;;  %v4604_v7 = vpop.f32.mrf.mxu0 }
 0x27f   :  { %v1279_v18 = vadd.f32 %v1278_v5, %v4496_v31 }
 0x281   :  { %3466 = vmatmul.msk.f32.gmra.mxu0 %vm1877_vm11, %v1279_v18 }
 0x282   :  { %v4612_v10 = vpop.f32.mrf.mxu1 }
 0x283   :  { %3354 = vmatmul.msk.f32.gmra.mxu2 %vm681_vm3, %v3621_v9 }
 0x285   :  { %3295 = vmatmul.msk.f32.gmra.mxu1 %vm690_vm4, %v3621_v9  ;;  %vm695_vm4 = vcmp.eq.s32.totalorder %v4173_v29, %v4664_v40 }
 0x286   :  { %v1281_v14 = vpop.f32.mrf.mxu2  ;;  %v4624_v15 = vpop.f32.mrf.mxu0 }
 0x287   :  { %v1282_v16 = vadd.f32 %v1281_v14, %v4516_v38  ;;  %v1435_v38 = vld [vmem:[%s5540_s29 + $0xe8] sm:$0xff]  ;;  %v4713_v14 = vpop.permute.xlu0 %555 }
 0x288   :  { %3409 = vmatmul.msk.f32.gmra.mxu3 %vm1471_vm1, %v1435_v38  ;;  %vm698_vm13 = vcmp.eq.s32.totalorder %v4153_v28, %v4713_v14 }
 0x289   :  { %3467 = vmatmul.msk.f32.gmra.mxu0 %vm1877_vm11, %v1282_v16 }
 0x28a   :  { %v4632_v20 = vpop.f32.mrf.mxu1 }
 0x28b   :  { %3355 = vmatmul.msk.f32.gmra.mxu2 %vm683_vm5, %v3621_v9 }
 0x28d   :  { %3296 = vmatmul.msk.f32.gmra.mxu1 %vm692_vm6, %v3621_v9  ;;  %vm697_vm6 = vcmp.eq.s32.totalorder %v4173_v29, %v4688_v60 }
 0x28e   :  { %v1284_v27 = vpop.f32.mrf.mxu2  ;;  %v2111_v31 = vpop.f32.mrf.mxu0 }
 0x28f   :  { %v1285_v2 = vadd.f32 %v1284_v27, %v4536_v47  ;;  %v2112_v26 = vadd.f32 %v2111_v31, %v1709_v51  ;;  %v2348_v51 = vmax.f32 %v2284_v50, 0.0 }
 0x290   :  { %3410 = vmatmul.msk.f32.gmra.mxu3 %vm1471_vm1, %v1436_v59 }
 0x291   :  { %v2291_v35 = vadd.f32 %v4644_v25, %v2112_v26  ;;  %3468 = vmatmul.msk.f32.gmra.mxu0 %vm1877_vm11, %v1285_v2  ;;  %v1438_v26 = vld [vmem:[%s5540_s29 + $0x100] sm:$0xff] }
 0x292   :  { %v4659_v36 = vpop.f32.mrf.mxu1 }
 0x293   :  { %v2355_v44 = vmax.f32 %v2291_v35, 0.0  ;;  %3356 = vmatmul.msk.f32.gmra.mxu2 %vm685_vm7, %v3621_v9  ;;  %v4738_v35 = vpop.permute.xlu1 %558 }
 0x294   :  { %vm700_vm0 = vcmp.eq.s32.totalorder %v4153_v28, %v4738_v35 }
 0x295   :  { %v4672_v47 = vmax.f32 %v2347_v41, %v2355_v44  ;;  %3297 = vmatmul.msk.f32.gmra.mxu1 %vm694_vm8, %v3621_v9  ;;  %vm699_vm8 = vcmp.eq.s32.totalorder %v4173_v29, %v4713_v14 }
 0x296   :  { %v1287_v48 = vpop.f32.mrf.mxu2  ;;  %v2114_v49 = vpop.f32.mrf.mxu0 }
 0x297   :  { %v1288_v53 = vadd.f32 %v1287_v48, %v4556_v55  ;;  %v2115_v56 = vadd.f32 %v2114_v49, %v1712_v33  ;;  %v2094_v55 = vadd.f32 %v4528_v43, %v4454_v11  ;;  %v4702_v43 = vpop.f32.mrf.mxu3 }
 0x298   :  { %3411 = vmatmul.msk.f32.gmra.mxu3 %vm1471_vm1, %v1437_v8 }
 0x299   :  { %v2292_v62 = vadd.f32 %v4644_v25, %v2115_v56  ;;  %3469 = vmatmul.msk.f32.gmra.mxu0 %vm1877_vm11, %v1288_v53  ;;  %v2285_v33 = vadd.f32 %v4644_v25, %v2094_v55  ;;  %v1439_v53 = vld [vmem:[%s5540_s29 + $0x108] sm:$0xff]  ;;  %v4763_v56 = vpop.permute.xlu2 %561 }
 0x29a   :  { %v4683_v58 = vpop.f32.mrf.mxu1  ;;  %vm702_vm3 = vcmp.eq.s32.totalorder %v4153_v28, %v4763_v56 }
 0x29b   :  { %v2356_v45 = vmax.f32 %v2292_v62, 0.0  ;;  %3357 = vmatmul.msk.f32.gmra.mxu2 %vm687_vm9, %v3621_v9 }
 0x29d   :  { %v4696_v63 = vmax.f32 %v2348_v51, %v2356_v45  ;;  %3298 = vmatmul.msk.f32.gmra.mxu1 %vm696_vm10, %v3621_v9  ;;  %vm701_vm10 = vcmp.eq.s32.totalorder %v4173_v29, %v4738_v35 }
 0x29e   :  { %v1290_v0 = vpop.f32.mrf.mxu2  ;;  %v2117_v39 = vpop.f32.mrf.mxu0 }
 0x29f   :  { %v1291_v4 = vadd.f32 %v1290_v0, %v4574_v61  ;;  %v2118_v11 = vadd.f32 %v2117_v39, %v4607_v13  ;;  %v2349_v61 = vmax.f32 %v2285_v33, 0.0  ;;  %v2097_v13 = vadd.f32 %v4548_v52, %v4471_v19  ;;  %v4727_v52 = vpop.f32.mrf.mxu3  ;;  %v1440_v33 = vld [vmem:[%s5540_s29 + $0x110] sm:$0xff] }
 0x2a0   :  { %3412 = vmatmul.msk.f32.gmra.mxu3 %vm1471_vm1, %v1438_v26 }
 0x2a1   :  { %v2293_v5 = vadd.f32 %v4644_v25, %v2118_v11  ;;  %3470 = vmatmul.msk.f32.gmra.mxu0 %vm1877_vm11, %v1291_v4  ;;  %v2286_v27 = vadd.f32 %v4644_v25, %v2097_v13  ;;  %v4788_v4 = vpop.permute.xlu0 %564 }
 0x2a2   :  { %v4708_v18 = vpop.f32.mrf.mxu1  ;;  %vm704_vm5 = vcmp.eq.s32.totalorder %v4153_v28, %v4788_v4 }
 0x2a3   :  { %v2357_v16 = vmax.f32 %v2293_v5, 0.0  ;;  %3358 = vmatmul.msk.f32.gmra.mxu2 %vm689_vm12, %v3621_v9 }
 0x2a5   :  { %v4721_v23 = vmax.f32 %v2349_v61, %v2357_v16  ;;  %3299 = vmatmul.msk.f32.gmra.mxu1 %vm698_vm13, %v3621_v9  ;;  %vm703_vm13 = vcmp.eq.s32.totalorder %v4173_v29, %v4763_v56 }
 0x2a6   :  { %v1293_v21 = vpop.f32.mrf.mxu2  ;;  %v2120_v24 = vpop.f32.mrf.mxu0 }
 0x2a7   :  { %v1294_v31 = vadd.f32 %v1293_v21, %v4592_v3  ;;  %v2121_v19 = vadd.f32 %v2120_v24, %v4627_v17  ;;  %v2350_v3 = vmax.f32 %v2286_v27, 0.0  ;;  %v2100_v17 = vadd.f32 %v4568_v57, %v4491_v30  ;;  %v4752_v57 = vpop.f32.mrf.mxu3  ;;  %v1441_v24 = vld [vmem:[%s5540_s29 + $0x118] sm:$0xff]  ;;  %v4813_v27 = vpop.permute.xlu1 %567 }
 0x2a8   :  { %3413 = vmatmul.msk.f32.gmra.mxu3 %vm1471_vm1, %v1439_v53  ;;  %vm706_vm7 = vcmp.eq.s32.totalorder %v4153_v28, %v4813_v27 }
 0x2a9   :  { %v2294_v32 = vadd.f32 %v4644_v25, %v2121_v19  ;;  %3471 = vmatmul.msk.f32.gmra.mxu0 %vm1877_vm11, %v1294_v31  ;;  %v2287_v44 = vadd.f32 %v4644_v25, %v2100_v17 }
 0x2aa   :  { %v4733_v2 = vpop.f32.mrf.mxu1 }
 0x2ab   :  { %v2358_v38 = vmax.f32 %v2294_v32, 0.0  ;;  %3359 = vmatmul.msk.f32.gmra.mxu2 %vm691_vm14, %v3621_v9 }
 0x2ad   :  { %v4746_v12 = vmax.f32 %v2350_v3, %v2358_v38  ;;  %3300 = vmatmul.msk.f32.gmra.mxu1 %vm700_vm0, %v3621_v9  ;;  %vm705_vm0 = vcmp.eq.s32.totalorder %v4173_v29, %v4788_v4 }
 0x2ae   :  { %v1296_v41 = vpop.f32.mrf.mxu2  ;;  %v2123_v42 = vpop.f32.mrf.mxu0 }
 0x2af   :  { %v1297_v48 = vadd.f32 %v1296_v41, %v4612_v10  ;;  %v2124_v30 = vadd.f32 %v2123_v42, %v4653_v34  ;;  %v2351_v10 = vmax.f32 %v2287_v44, 0.0  ;;  %v2103_v34 = vadd.f32 %v4586_v1, %v4511_v37  ;;  %v4777_v1 = vpop.f32.mrf.mxu3  ;;  %v1442_v41 = vld [vmem:[%s5540_s29 + $0x120] sm:$0xff]  ;;  %v4838_v42 = vpop.permute.xlu2 %570 }
 0x2b0   :  { %3414 = vmatmul.msk.f32.gmra.mxu3 %vm1471_vm1, %v1440_v33  ;;  %vm708_vm9 = vcmp.eq.s32.totalorder %v4153_v28, %v4838_v42 }
 0x2b1   :  { %v2295_v49 = vadd.f32 %v4644_v25, %v2124_v30  ;;  %3472 = vmatmul.msk.f32.gmra.mxu0 %vm1877_vm11, %v1297_v48  ;;  %v2288_v55 = vadd.f32 %v4644_v25, %v2103_v34 }
 0x2b2   :  { %v4758_v50 = vpop.f32.mrf.mxu1 }
 0x2b3   :  { %v2359_v62 = vmax.f32 %v2295_v49, 0.0  ;;  %3360 = vmatmul.msk.f32.gmra.mxu2 %vm693_vm2, %v3621_v9 }
 0x2b5   :  { %v4771_v22 = vmax.f32 %v2351_v10, %v2359_v62  ;;  %3301 = vmatmul.msk.f32.gmra.mxu1 %vm702_vm3, %v3621_v9  ;;  %v1443_v62 = vld [vmem:[%s5540_s29 + $0x128] sm:$0xff]  ;;  %vm707_vm3 = vcmp.eq.s32.totalorder %v4173_v29, %v4813_v27 }
 0x2b6   :  { %v1299_v59 = vpop.f32.mrf.mxu2  ;;  %v2126_v51 = vpop.f32.mrf.mxu0 }
 0x2b7   :  { %v1300_v45 = vadd.f32 %v1299_v59, %v4632_v20  ;;  %v2127_v37 = vadd.f32 %v2126_v51, %v4677_v6  ;;  %v2352_v20 = vmax.f32 %v2288_v55, 0.0  ;;  %v2106_v6 = vadd.f32 %v4604_v7, %v4531_v46  ;;  %v4802_v7 = vpop.f32.mrf.mxu3  ;;  %v4860_v59 = vpop.permute.xlu0 %573 }
 0x2b8   :  { %3415 = vmatmul.msk.f32.gmra.mxu3 %vm1471_vm1, %v1441_v24  ;;  %vm710_vm12 = vcmp.eq.s32.totalorder %v4153_v28, %v4860_v59 }
 0x2b9   :  { %v2296_v0 = vadd.f32 %v4644_v25, %v2127_v37  ;;  %3473 = vmatmul.msk.f32.gmra.mxu0 %vm1877_vm11, %v1300_v45  ;;  %v2289_v61 = vadd.f32 %v4644_v25, %v2106_v6 }
 0x2ba   :  { %v4783_v39 = vpop.f32.mrf.mxu1 }
 0x2bb   :  { %v2360_v11 = vmax.f32 %v2296_v0, 0.0  ;;  %3361 = vmatmul.msk.f32.gmra.mxu2 %vm695_vm4, %v3621_v9 }
 0x2bd   :  { %v4796_v40 = vmax.f32 %v2352_v20, %v2360_v11  ;;  %3302 = vmatmul.msk.f32.gmra.mxu1 %vm704_vm5, %v3621_v9  ;;  %v4883_v20 = vpop.permute.xlu1 %576  ;;  %vm709_vm5 = vcmp.eq.s32.totalorder %v4173_v29, %v4838_v42 }
 0x2be   :  { %v1302_v5 = vpop.f32.mrf.mxu2  ;;  %v2129_v8 = vpop.f32.mrf.mxu0  ;;  %vm712_vm14 = vcmp.eq.s32.totalorder %v4153_v28, %v4883_v20 }
 0x2bf   :  { %v1303_v13 = vadd.f32 %v1302_v5, %v4659_v36  ;;  %v2130_v46 = vadd.f32 %v2129_v8, %v4702_v43  ;;  %v2353_v36 = vmax.f32 %v2289_v61, 0.0  ;;  %v2109_v43 = vadd.f32 %v4624_v15, %v4551_v54  ;;  %v4827_v15 = vpop.f32.mrf.mxu3 }
 0x2c0   :  { %3416 = vmatmul.msk.f32.gmra.mxu3 %vm1471_vm1, %v1442_v41 }
 0x2c1   :  { %v2297_v16 = vadd.f32 %v4644_v25, %v2130_v46  ;;  %3474 = vmatmul.msk.f32.gmra.mxu0 %vm1877_vm11, %v1303_v13  ;;  %v2290_v26 = vadd.f32 %v4644_v25, %v2109_v43  ;;  %v4906_v46 = vpop.permute.xlu2 %579 }
 0x2c2   :  { %v4808_v21 = vpop.f32.mrf.mxu1  ;;  %vm714_vm2 = vcmp.eq.s32.totalorder %v4153_v28, %v4906_v46 }
 0x2c3   :  { %v2361_v31 = vmax.f32 %v2297_v16, 0.0  ;;  %3362 = vmatmul.msk.f32.gmra.mxu2 %vm697_vm6, %v3621_v9 }
 0x2c5   :  { %v4821_v60 = vmax.f32 %v2353_v36, %v2361_v31  ;;  %3303 = vmatmul.msk.f32.gmra.mxu1 %vm706_vm7, %v3621_v9  ;;  %vm711_vm7 = vcmp.eq.s32.totalorder %v4173_v29, %v4860_v59 }
 0x2c6   :  { %v1305_v19 = vpop.f32.mrf.mxu2  ;;  %v2132_v32 = vpop.f32.mrf.mxu0 }
 0x2c7   :  { %v1306_v3 = vadd.f32 %v1305_v19, %v4683_v58  ;;  %v2133_v54 = vadd.f32 %v2132_v32, %v4727_v52  ;;  %v2354_v58 = vmax.f32 %v2290_v26, 0.0  ;;  %v4849_v53 = vpop.f32.mrf.mxu3  ;;  %v4929_v32 = vpop.permute.xlu0 %582 }
 0x2c8   :  { %3417 = vmatmul.msk.f32.gmra.mxu3 %vm1471_vm1, %v1443_v62  ;;  %vm716_vm4 = vcmp.eq.s32.totalorder %v4153_v28, %v4929_v32 }
 0x2c9   :  { %v2298_v17 = vadd.f32 %v4644_v25, %v2133_v54  ;;  %3475 = vmatmul.msk.f32.gmra.mxu0 %vm1877_vm11, %v1306_v3  ;;  %v4973_v62 = vpop.permute.xlu2 %588 }
 0x2ca   :  { %v4833_v38 = vpop.f32.mrf.mxu1 }
 0x2cb   :  { %v2362_v44 = vmax.f32 %v2298_v17, 0.0  ;;  %3363 = vmatmul.msk.f32.gmra.mxu2 %vm699_vm8, %v3621_v9  ;;  %vm720_vm8 = vcmp.eq.s32.totalorder %v4153_v28, %v4973_v62 }
 0x2cd   :  { %v4844_v52 = vmax.f32 %v2354_v58, %v2362_v44  ;;  %3304 = vmatmul.msk.f32.gmra.mxu1 %vm708_vm9, %v3621_v9  ;;  %v4950_v58 = vpop.permute.xlu1 %585  ;;  %vm713_vm9 = vcmp.eq.s32.totalorder %v4173_v29, %v4883_v20 }
 0x2ce   :  { %v1308_v14 = vpop.f32.mrf.mxu2  ;;  %v2135_v48 = vpop.f32.mrf.mxu0  ;;  %vm718_vm6 = vcmp.eq.s32.totalorder %v4153_v28, %v4950_v58 }
 0x2cf   :  { %v1309_v30 = vadd.f32 %v1308_v14, %v4708_v18  ;;  %v2136_v49 = vadd.f32 %v2135_v48, %v4752_v57  ;;  %v4872_v37 = vpop.f32.mrf.mxu3 }
 0x2d1   :  { %v2299_v10 = vadd.f32 %v4644_v25, %v2136_v49  ;;  %3476 = vmatmul.msk.f32.gmra.mxu0 %vm1877_vm11, %v1309_v30 }
 0x2d2   :  { %v4855_v34 = vpop.f32.mrf.mxu1 }
 0x2d3   :  { %v2363_v18 = vmax.f32 %v2299_v10, 0.0  ;;  %3364 = vmatmul.msk.f32.gmra.mxu2 %vm701_vm10, %v3621_v9 }
 0x2d5   :  { %v4867_v57 = vmax.f32 %v4672_v47, %v2363_v18  ;;  %3305 = vmatmul.msk.f32.gmra.mxu1 %vm710_vm12, %v3621_v9  ;;  %v1444_v47 = vld [vmem:[%s5540_s29 + $0x130] sm:$0xff]  ;;  %vm715_vm12 = vcmp.eq.s32.totalorder %v4173_v29, %v4906_v46 }
 0x2d6   :  { %v1311_v35 = vpop.f32.mrf.mxu2  ;;  %v2138_v51 = vpop.f32.mrf.mxu0  ;;  %3418 = vmatmul.msk.f32.gmra.mxu3 %vm1471_vm1, %v1444_v47 }
 0x2d7   :  { %v1312_v55 = vadd.f32 %v1311_v35, %v4733_v2  ;;  %v2139_v45 = vadd.f32 %v2138_v51, %v4777_v1  ;;  %v4895_v8 = vpop.f32.mrf.mxu3  ;;  %v4996_v47 = vpop.permute.xlu0 %591 }
 0x2d8   :  { %vm722_vm10 = vcmp.eq.s32.totalorder %v4153_v28, %v4996_v47 }
 0x2d9   :  { %v2300_v0 = vadd.f32 %v4644_v25, %v2139_v45  ;;  %3477 = vmatmul.msk.f32.gmra.mxu0 %vm1877_vm11, %v1312_v55 }
 0x2da   :  { %v4878_v33 = vpop.f32.mrf.mxu1 }
 0x2db   :  { %v2364_v2 = vmax.f32 %v2300_v0, 0.0  ;;  %3365 = vmatmul.msk.f32.gmra.mxu2 %vm703_vm13, %v3621_v9 }
 0x2dd   :  { %v4890_v1 = vmax.f32 %v4696_v63, %v2364_v2  ;;  %3306 = vmatmul.msk.f32.gmra.mxu1 %vm712_vm14, %v3621_v9  ;;  %v1445_v63 = vld [vmem:[%s5540_s29 + $0x138] sm:$0xff]  ;;  %vm717_vm14 = vcmp.eq.s32.totalorder %v4173_v29, %v4929_v32 }
 0x2de   :  { %v1314_v56 = vpop.f32.mrf.mxu2  ;;  %v2141_v6 = vpop.f32.mrf.mxu0  ;;  %3419 = vmatmul.msk.f32.gmra.mxu3 %vm1471_vm1, %v1445_v63 }
 0x2df   :  { %v1315_v11 = vadd.f32 %v1314_v56, %v4758_v50  ;;  %v2142_v5 = vadd.f32 %v2141_v6, %v4802_v7  ;;  %v4918_v43 = vpop.f32.mrf.mxu3  ;;  %v5019_v63 = vpop.permute.xlu1 %594 }
 0x2e0   :  { %vm724_vm13 = vcmp.eq.s32.totalorder %v4153_v28, %v5019_v63 }
 0x2e1   :  { %v2301_v61 = vadd.f32 %v4644_v25, %v2142_v5  ;;  %3478 = vmatmul.msk.f32.gmra.mxu0 %vm1877_vm11, %v1315_v11 }
 0x2e2   :  { %v4901_v13 = vpop.f32.mrf.mxu1 }
 0x2e3   :  { %v2365_v50 = vmax.f32 %v2301_v61, 0.0  ;;  %3366 = vmatmul.msk.f32.gmra.mxu2 %vm705_vm0, %v3621_v9 }
 0x2e5   :  { %v4913_v7 = vmax.f32 %v4721_v23, %v2365_v50  ;;  %3307 = vmatmul.msk.f32.gmra.mxu1 %vm714_vm2, %v3621_v9  ;;  %v1446_v23 = vld [vmem:[%s5540_s29 + $0x140] sm:$0xff]  ;;  %vm719_vm2 = vcmp.eq.s32.totalorder %v4173_v29, %v4950_v58 }
 0x2e6   :  { %v1317_v4 = vpop.f32.mrf.mxu2  ;;  %v2144_v16 = vpop.f32.mrf.mxu0  ;;  %3420 = vmatmul.msk.f32.gmra.mxu3 %vm1471_vm1, %v1446_v23 }
 0x2e7   :  { %v1318_v24 = vadd.f32 %v1317_v4, %v4783_v39  ;;  %v2145_v36 = vadd.f32 %v2144_v16, %v4827_v15  ;;  %v4941_v17 = vpop.f32.mrf.mxu3  ;;  %v5040_v23 = vpop.permute.xlu2 %597 }
 0x2e8   :  { %vm726_vm0 = vcmp.eq.s32.totalorder %v4153_v28, %v5040_v23 }
 0x2e9   :  { %v2302_v31 = vadd.f32 %v4644_v25, %v2145_v36  ;;  %3479 = vmatmul.msk.f32.gmra.mxu0 %vm1877_vm11, %v1318_v24 }
 0x2ea   :  { %v4924_v19 = vpop.f32.mrf.mxu1 }
 0x2eb   :  { %v2366_v39 = vmax.f32 %v2302_v31, 0.0  ;;  %3367 = vmatmul.msk.f32.gmra.mxu2 %vm707_vm3, %v3621_v9 }
 0x2ed   :  { %v4936_v26 = vmax.f32 %v4746_v12, %v2366_v39  ;;  %3308 = vmatmul.msk.f32.gmra.mxu1 %vm716_vm4, %v3621_v9  ;;  %v1447_v12 = vld [vmem:[%s5540_s29 + $0x148] sm:$0xff]  ;;  %vm721_vm4 = vcmp.eq.s32.totalorder %v4173_v29, %v4973_v62 }
 0x2ee   :  { %v1320_v27 = vpop.f32.mrf.mxu2  ;;  %v2147_v3 = vpop.f32.mrf.mxu0  ;;  %3421 = vmatmul.msk.f32.gmra.mxu3 %vm1471_vm1, %v1447_v12 }
 0x2ef   :  { %v1321_v54 = vadd.f32 %v1320_v27, %v4808_v21  ;;  %v2148_v15 = vadd.f32 %v2147_v3, %v4849_v53  ;;  %v4964_v53 = vpop.f32.mrf.mxu3 }
 0x2f1   :  { %v2303_v41 = vadd.f32 %v4644_v25, %v2148_v15  ;;  %3480 = vmatmul.msk.f32.gmra.mxu0 %vm1877_vm11, %v1321_v54 }
 0x2f2   :  { %v4952_v14 = vpop.f32.mrf.mxu1 }
 0x2f3   :  { %v2367_v44 = vmax.f32 %v2303_v41, 0.0  ;;  %3368 = vmatmul.msk.f32.gmra.mxu2 %vm709_vm5, %v3621_v9  ;;  %v5059_v41 = vpop.permute.xlu0 %600  ;;  %vm723_vm5 = vcmp.eq.s32.totalorder %v4173_v29, %v4996_v47 }
 0x2f4   :  { %vm728_vm3 = vcmp.eq.s32.totalorder %v4153_v28, %v5059_v41 }
 0x2f5   :  { %v4959_v21 = vmax.f32 %v4771_v22, %v2367_v44  ;;  %3309 = vmatmul.msk.f32.gmra.mxu1 %vm718_vm6, %v3621_v9  ;;  %v1448_v22 = vld [vmem:[%s5540_s29 + $0x150] sm:$0xff]  ;;  %vm725_vm6 = vcmp.eq.s32.totalorder %v4173_v29, %v5019_v63 }
 0x2f6   :  { %v1323_v42 = vpop.f32.mrf.mxu2  ;;  %v2150_v48 = vpop.f32.mrf.mxu0  ;;  %3422 = vmatmul.msk.f32.gmra.mxu3 %vm1471_vm1, %v1448_v22 }
 0x2f7   :  { %v1324_v30 = vadd.f32 %v1323_v42, %v4833_v38  ;;  %v2151_v49 = vadd.f32 %v2150_v48, %v4872_v37  ;;  %v4987_v37 = vpop.f32.mrf.mxu3 }
 0x2f9   :  { %v2304_v10 = vadd.f32 %v4644_v25, %v2151_v49  ;;  %3481 = vmatmul.msk.f32.gmra.mxu0 %vm1877_vm11, %v1324_v30 }
 0x2fa   :  { %v4982_v35 = vpop.f32.mrf.mxu1 }
 0x2fb   :  { %v2368_v18 = vmax.f32 %v2304_v10, 0.0  ;;  %3369 = vmatmul.msk.f32.gmra.mxu2 %vm711_vm7, %v3621_v9  ;;  %vm727_vm7 = vcmp.eq.s32.totalorder %v4173_v29, %v5040_v23 }
 0x2fd   :  { %v4980_v38 = vmax.f32 %v4796_v40, %v2368_v18  ;;  %3310 = vmatmul.msk.f32.gmra.mxu1 %vm720_vm8, %v3621_v9  ;;  %v1449_v40 = vld [vmem:[%s5540_s29 + $0x158] sm:$0xff]  ;;  %vm729_vm8 = vcmp.eq.s32.totalorder %v4173_v29, %v5059_v41  ;;  %v1458_v41 = vld [vmem:[%s5540_s29 + $0x1a0] sm:$0xff] }
 0x2fe   :  { %v1326_v59 = vpop.f32.mrf.mxu2  ;;  %v2153_v51 = vpop.f32.mrf.mxu0  ;;  %3423 = vmatmul.msk.f32.gmra.mxu3 %vm1471_vm1, %v1449_v40 }
 0x2ff   :  { %v1327_v55 = vadd.f32 %v1326_v59, %v4855_v34  ;;  %v2154_v45 = vadd.f32 %v2153_v51, %v4895_v8  ;;  %v5010_v8 = vpop.f32.mrf.mxu3 }
 0x301   :  { %v2305_v0 = vadd.f32 %v4644_v25, %v2154_v45  ;;  %3482 = vmatmul.msk.f32.gmra.mxu0 %vm1877_vm11, %v1327_v55 }
 0x302   :  { %v5006_v6 = vpop.f32.mrf.mxu1 }
 0x303   :  { %v2369_v2 = vmax.f32 %v2305_v0, 0.0  ;;  %3370 = vmatmul.msk.f32.gmra.mxu2 %vm713_vm9, %v3621_v9 }
 0x305   :  { %v5003_v34 = vmax.f32 %v4821_v60, %v2369_v2  ;;  %3311 = vmatmul.msk.f32.gmra.mxu1 %vm722_vm10, %v3621_v9  ;;  %v1450_v60 = vld [vmem:[%s5540_s29 + $0x160] sm:$0xff]  ;;  %vm2579_vm10 = vcmask 523264  }
 0x306   :  { %v1329_v20 = vpop.f32.mrf.mxu2  ;;  %v2156_v56 = vpop.f32.mrf.mxu0  ;;  %3424 = vmatmul.msk.f32.gmra.mxu3 %vm1471_vm1, %v1450_v60 }
 0x307   :  { %v1330_v11 = vadd.f32 %v1329_v20, %v4878_v33  ;;  %v2157_v5 = vadd.f32 %v2156_v56, %v4918_v43  ;;  %v1769_v36 = vpop.f32.mrf.mxu3 }
 0x309   :  { %v2306_v61 = vadd.f32 %v4644_v25, %v2157_v5  ;;  %3483 = vmatmul.msk.f32.gmra.mxu0 %vm1877_vm11, %v1330_v11  ;;  %v1455_v5 = vld [vmem:[%s5540_s29 + $0x188] sm:$0xff] }
 0x30a   :  { %v5031_v43 = vpop.f32.mrf.mxu1 }
 0x30b   :  { %v2370_v50 = vmax.f32 %v2306_v61, 0.0  ;;  %3371 = vmatmul.msk.f32.gmra.mxu2 %vm715_vm12, %v3621_v9 }
 0x30d   :  { %v5026_v33 = vmax.f32 %v4844_v52, %v2370_v50  ;;  %3312 = vmatmul.msk.f32.gmra.mxu1 %vm724_vm13, %v3621_v9  ;;  %v1451_v52 = vld [vmem:[%s5540_s29 + $0x168] sm:$0xff] }
 0x30e   :  { %v1332_v46 = vpop.f32.mrf.mxu2  ;;  %v2159_v4 = vpop.f32.mrf.mxu0  ;;  %3425 = vmatmul.msk.f32.gmra.mxu3 %vm1471_vm1, %v1451_v52 }
 0x30f   :  { %v1333_v16 = vadd.f32 %v1332_v46, %v4901_v13  ;;  %v2160_v24 = vadd.f32 %v2159_v4, %v4941_v17  ;;  %v1772_v15 = vpop.f32.mrf.mxu3 }
 0x311   :  { %v2307_v31 = vadd.f32 %v4644_v25, %v2160_v24  ;;  %3484 = vmatmul.msk.f32.gmra.mxu0 %vm1877_vm11, %v1333_v16  ;;  %v1456_v16 = vld [vmem:[%s5540_s29 + $0x190] sm:$0xff] }
 0x312   :  { %v5061_v12 = vpop.f32.mrf.mxu1 }
 0x313   :  { %v2371_v39 = vmax.f32 %v2307_v31, 0.0  ;;  %3372 = vmatmul.msk.f32.gmra.mxu2 %vm717_vm14, %v3621_v9 }
 0x315   :  { %v5047_v13 = vmax.f32 %v4867_v57, %v2371_v39  ;;  %3313 = vmatmul.msk.f32.gmra.mxu1 %vm726_vm0, %v3621_v9  ;;  %v1452_v57 = vld [vmem:[%s5540_s29 + $0x170] sm:$0xff] }
 0x316   :  { %v1335_v32 = vpop.f32.mrf.mxu2  ;;  %v2162_v27 = vpop.f32.mrf.mxu0  ;;  %3426 = vmatmul.msk.f32.gmra.mxu3 %vm1471_vm1, %v1452_v57 }
 0x317   :  { %v1336_v3 = vadd.f32 %v1335_v32, %v4924_v19  ;;  %v2163_v54 = vadd.f32 %v2162_v27, %v4964_v53  ;;  %v1775_v49 = vpop.f32.mrf.mxu3  ;;  %v1457_v32 = vld [vmem:[%s5540_s29 + $0x198] sm:$0xff] }
 0x319   :  { %v2308_v17 = vadd.f32 %v4644_v25, %v2163_v54  ;;  %3485 = vmatmul.msk.f32.gmra.mxu0 %vm1877_vm11, %v1336_v3 }
 0x31b   :  { %v2372_v44 = vmax.f32 %v2308_v17, 0.0  ;;  %3373 = vmatmul.msk.f32.gmra.mxu2 %vm719_vm2, %v3621_v9 }
 0x31d   :  { %v5068_v19 = vmax.f32 %v4890_v1, %v2372_v44  ;;  %3314 = vmatmul.msk.f32.gmra.mxu1 %vm728_vm3, %v3621_v9  ;;  %v1453_v1 = vld [vmem:[%s5540_s29 + $0x178] sm:$0xff] }
 0x31e   :  { %v1338_v58 = vpop.f32.mrf.mxu2  ;;  %v2165_v42 = vpop.f32.mrf.mxu0  ;;  %3427 = vmatmul.msk.f32.gmra.mxu3 %vm1471_vm1, %v1453_v1  ;;  %v1459_v1 = vld [vmem:[%s5540_s29 + $0x1a8] sm:$0xff] }
 0x31f   :  { %v1339_v48 = vadd.f32 %v1338_v58, %v4952_v14  ;;  %v2166_v30 = vadd.f32 %v2165_v42, %v4987_v37  ;;  %v1144_v14 = vpop.f32.mrf.mxu1  ;;  %v1778_v62 = vpop.f32.mrf.mxu3  ;;  %v1454_v37 = vld [vmem:[%s5540_s29 + $0x180] sm:$0xff] }
 0x321   :  { %v2309_v53 = vadd.f32 %v4644_v25, %v2166_v30  ;;  %3486 = vmatmul.msk.f32.gmra.mxu0 %vm1877_vm11, %v1339_v48 }
 0x323   :  { %v2373_v10 = vmax.f32 %v2309_v53, 0.0  ;;  %3374 = vmatmul.msk.f32.gmra.mxu2 %vm721_vm4, %v3621_v9 }
 0x325   :  { %v5083_v22 = vmax.f32 %v4913_v7, %v2373_v10 }
 0x326   :  { %v1341_v18 = vpop.f32.mrf.mxu2  ;;  %v2168_v59 = vpop.f32.mrf.mxu0  ;;  %3428 = vmatmul.msk.f32.gmra.mxu3 %vm1471_vm1, %v1454_v37  ;;  %v1460_v37 = vld [vmem:[%s5540_s29 + $0x1b0] sm:$0xff] }
 0x327   :  { %v1342_v51 = vadd.f32 %v1341_v18, %v4982_v35  ;;  %v2169_v55 = vadd.f32 %v2168_v59, %v5010_v8  ;;  %v1147_v2 = vpop.f32.mrf.mxu1  ;;  %v1781_v11 = vpop.f32.mrf.mxu3 }
 0x329   :  { %v2310_v45 = vadd.f32 %v4644_v25, %v2169_v55  ;;  %3487 = vmatmul.msk.f32.gmra.mxu0 %vm1877_vm11, %v1342_v51 }
 0x32b   :  { %v2374_v7 = vmax.f32 %v2310_v45, 0.0  ;;  %3375 = vmatmul.msk.f32.gmra.mxu2 %vm723_vm5, %v3621_v9 }
 0x32d   :  { %v5097_v35 = vmax.f32 %v4936_v26, %v2374_v7 }
 0x32e   :  { %v1344_v0 = vpop.f32.mrf.mxu2  ;;  %v2171_v40 = vpop.f32.mrf.mxu0  ;;  %3429 = vmatmul.msk.f32.gmra.mxu3 %vm1471_vm1, %v1455_v5  ;;  %v1461_v5 = vld [vmem:[%s5540_s29 + $0x1b8] sm:$0xff] }
 0x32f   :  { %v1345_v20 = vadd.f32 %v1344_v0, %v5006_v6  ;;  %v2172_v56 = vadd.f32 %v2171_v40, %v1769_v36  ;;  %v1784_v46 = vpop.f32.mrf.mxu3  ;;  %v1150_v4 = vpop.f32.mrf.mxu1 }
 0x331   :  { %v2311_v47 = vadd.f32 %v4644_v25, %v2172_v56  ;;  %3488 = vmatmul.msk.f32.gmra.mxu0 %vm1877_vm11, %v1345_v20 }
 0x333   :  { %v2375_v26 = vmax.f32 %v2311_v47, 0.0  ;;  %3376 = vmatmul.msk.f32.gmra.mxu2 %vm725_vm6, %v3621_v9 }
 0x335   :  { %v5110_v6 = vmax.f32 %v4959_v21, %v2375_v26 }
 0x336   :  { %v1347_v8 = vpop.f32.mrf.mxu2  ;;  %v2174_v61 = vpop.f32.mrf.mxu0  ;;  %3430 = vmatmul.msk.f32.gmra.mxu3 %vm1471_vm1, %v1456_v16 }
 0x337   :  { %v1348_v60 = vadd.f32 %v1347_v8, %v5031_v43  ;;  %v2175_v50 = vadd.f32 %v2174_v61, %v1772_v15  ;;  %v1787_v39 = vpop.f32.mrf.mxu3  ;;  %v1153_v27 = vpop.f32.mrf.mxu1 }
 0x339   :  { %v2312_v63 = vadd.f32 %v4644_v25, %v2175_v50  ;;  %3489 = vmatmul.msk.f32.gmra.mxu0 %vm1877_vm11, %v1348_v60 }
 0x33b   :  { %v2376_v21 = vmax.f32 %v2312_v63, 0.0  ;;  %3377 = vmatmul.msk.f32.gmra.mxu2 %vm727_vm7, %v3621_v9  ;;  %v1462_v63 = vld [vmem:[%s5540_s29 + $0x1c0] sm:$0xff] }
 0x33d   :  { %v5123_v24 = vmax.f32 %v4980_v38, %v2376_v21 }
 0x33e   :  { %v1350_v36 = vpop.f32.mrf.mxu2  ;;  %v2177_v43 = vpop.f32.mrf.mxu0  ;;  %3431 = vmatmul.msk.f32.gmra.mxu3 %vm1471_vm1, %v1457_v32  ;;  %v1463_v32 = vld [vmem:[%s5540_s29 + $0x1c8] sm:$0xff] }
 0x33f   :  { %v1351_v31 = vadd.f32 %v1350_v36, %v5061_v12  ;;  %v2178_v52 = vadd.f32 %v2177_v43, %v1775_v49  ;;  %v1790_v12 = vpop.f32.mrf.mxu3 }
 0x341   :  { %v2313_v23 = vadd.f32 %v4644_v25, %v2178_v52  ;;  %3490 = vmatmul.msk.f32.gmra.mxu0 %vm1877_vm11, %v1351_v31 }
 0x343   :  { %v2377_v38 = vmax.f32 %v2313_v23, 0.0  ;;  %3378 = vmatmul.msk.f32.gmra.mxu2 %vm729_vm8, %v3621_v9  ;;  %v1156_v9 = vpop.f32.mrf.mxu1 }
 0x345   :  { %v5136_v3 = vmax.f32 %v5003_v34, %v2377_v38 }
 0x346   :  { %v1353_v54 = vpop.f32.mrf.mxu2  ;;  %v2180_v15 = vpop.f32.mrf.mxu0  ;;  %3432 = vmatmul.msk.f32.gmra.mxu3 %vm1471_vm1, %v1458_v41  ;;  %v1464_v41 = vld [vmem:[%s5540_s29 + $0x1d0] sm:$0xff] }
 0x347   :  { %v1354_v17 = vadd.f32 %v1353_v54, %v1144_v14  ;;  %v2181_v57 = vadd.f32 %v2180_v15, %v1778_v62  ;;  %v1793_v49 = vpop.f32.mrf.mxu3 }
 0x349   :  { %v2314_v29 = vadd.f32 %v4644_v25, %v2181_v57  ;;  %3491 = vmatmul.msk.f32.gmra.mxu0 %vm1877_vm11, %v1354_v17 }
 0x34b   :  { %v2378_v44 = vmax.f32 %v2314_v29, 0.0  ;;  %v1159_v59 = vpop.f32.mrf.mxu1 }
 0x34d   :  { %v5145_v34 = vmax.f32 %v5026_v33, %v2378_v44 }
 0x34e   :  { %v1356_v58 = vpop.f32.mrf.mxu2  ;;  %v2183_v42 = vpop.f32.mrf.mxu0  ;;  %3433 = vmatmul.msk.f32.gmra.mxu3 %vm1471_vm1, %v1459_v1  ;;  %v1465_v1 = vld [vmem:[%s5540_s29 + $0x1d8] sm:$0xff] }
 0x34f   :  { %v1357_v48 = vadd.f32 %v1356_v58, %v1147_v2  ;;  %v2184_v30 = vadd.f32 %v2183_v42, %v1781_v11  ;;  %v1796_v62 = vpop.f32.mrf.mxu3 }
 0x351   :  { %v2315_v53 = vadd.f32 %v4644_v25, %v2184_v30  ;;  %3492 = vmatmul.msk.f32.gmra.mxu0 %vm1877_vm11, %v1357_v48 }
 0x353   :  { %v2379_v10 = vmax.f32 %v2315_v53, 0.0  ;;  %v1162_v11 = vpop.f32.mrf.mxu1 }
 0x355   :  { %v5154_v14 = vmax.f32 %v5047_v13, %v2379_v10 }
 0x356   :  { %v1359_v33 = vpop.f32.mrf.mxu2  ;;  %v2186_v18 = vpop.f32.mrf.mxu0  ;;  %3434 = vmatmul.msk.f32.gmra.mxu3 %vm1471_vm1, %v1460_v37  ;;  %v1466_v37 = vld [vmem:[%s5540_s29 + $0x1e0] sm:$0xff] }
 0x357   :  { %v1360_v51 = vadd.f32 %v1359_v33, %v1150_v4  ;;  %v2187_v55 = vadd.f32 %v2186_v18, %v1784_v46 }
 0x359   :  { %v2316_v45 = vadd.f32 %v4644_v25, %v2187_v55  ;;  %3493 = vmatmul.msk.f32.gmra.mxu0 %vm1877_vm11, %v1360_v51  ;;  %v1799_v56 = vpop.f32.mrf.mxu3 }
 0x35b   :  { %v2380_v7 = vmax.f32 %v2316_v45, 0.0  ;;  %v1165_v16 = vpop.f32.mrf.mxu1 }
 0x35d   :  { %v5163_v13 = vmax.f32 %v5068_v19, %v2380_v7 }
 0x35e   :  { %v1362_v0 = vpop.f32.mrf.mxu2  ;;  %v2189_v40 = vpop.f32.mrf.mxu0  ;;  %3435 = vmatmul.msk.f32.gmra.mxu3 %vm1471_vm1, %v1461_v5 }
 0x35f   :  { %v1363_v2 = vadd.f32 %v1362_v0, %v1153_v27  ;;  %v2190_v20 = vadd.f32 %v2189_v40, %v1787_v39 }
 0x361   :  { %v2317_v47 = vadd.f32 %v4644_v25, %v2190_v20  ;;  %3494 = vmatmul.msk.f32.gmra.mxu0 %vm1877_vm11, %v1363_v2  ;;  %v1802_v46 = vpop.f32.mrf.mxu3 }
 0x363   :  { %v2381_v26 = vmax.f32 %v2317_v47, 0.0  ;;  %v1168_v38 = vpop.f32.mrf.mxu1  ;;  %v1467_v47 = vld [vmem:[%s5540_s29 + $0x1e8] sm:$0xff] }
 0x365   :  { %v5172_v19 = vmax.f32 %v5083_v22, %v2381_v26 }
 0x366   :  { %v1365_v8 = vpop.f32.mrf.mxu2  ;;  %v2192_v61 = vpop.f32.mrf.mxu0  ;;  %3436 = vmatmul.msk.f32.gmra.mxu3 %vm1471_vm1, %v1462_v63  ;;  %v1468_v63 = vld [vmem:[%s5540_s29 + $0x1f0] sm:$0xff] }
 0x367   :  { %v1366_v60 = vadd.f32 %v1365_v8, %v1156_v9  ;;  %v2193_v50 = vadd.f32 %v2192_v61, %v1790_v12 }
 0x369   :  { %v2318_v4 = vadd.f32 %v4644_v25, %v2193_v50  ;;  %3495 = vmatmul.msk.f32.gmra.mxu0 %vm1877_vm11, %v1366_v60  ;;  %v1805_v39 = vpop.f32.mrf.mxu3 }
 0x36b   :  { %v2382_v21 = vmax.f32 %v2318_v4, 0.0  ;;  %v1171_v42 = vpop.f32.mrf.mxu1 }
 0x36d   :  { %v5181_v22 = vmax.f32 %v5097_v35, %v2382_v21 }
 0x36e   :  { %v1368_v36 = vpop.f32.mrf.mxu2  ;;  %v2195_v43 = vpop.f32.mrf.mxu0  ;;  %3437 = vmatmul.msk.f32.gmra.mxu3 %vm1471_vm1, %v1463_v32 }
 0x36f   :  { %v1369_v31 = vadd.f32 %v1368_v36, %v1159_v59  ;;  %v2196_v52 = vadd.f32 %v2195_v43, %v1793_v49 }
 0x371   :  { %v2319_v23 = vadd.f32 %v4644_v25, %v2196_v52  ;;  %3496 = vmatmul.msk.f32.gmra.mxu0 %vm1877_vm11, %v1369_v31  ;;  %v1808_v12 = vpop.f32.mrf.mxu3 }
 0x373   :  { %v2383_v27 = vmax.f32 %v2319_v23, 0.0 }
 0x375   :  { %v5190_v35 = vmax.f32 %v5110_v6, %v2383_v27 }
 0x376   :  { %v1371_v54 = vpop.f32.mrf.mxu2  ;;  %v2198_v15 = vpop.f32.mrf.mxu0  ;;  %3438 = vmatmul.msk.f32.gmra.mxu3 %vm1471_vm1, %v1464_v41 }
 0x377   :  { %v1372_v17 = vadd.f32 %v1371_v54, %v1162_v11  ;;  %v2199_v57 = vadd.f32 %v2198_v15, %v1796_v62  ;;  %v1174_v62 = vpop.f32.mrf.mxu1 }
 0x379   :  { %v2320_v29 = vadd.f32 %v4644_v25, %v2199_v57  ;;  %3497 = vmatmul.msk.f32.gmra.mxu0 %vm1877_vm11, %v1372_v17  ;;  %v1811_v49 = vpop.f32.mrf.mxu3 }
 0x37b   :  { %v2384_v44 = vmax.f32 %v2320_v29, 0.0 }
 0x37d   :  { %v5199_v9 = vmax.f32 %v5123_v24, %v2384_v44 }
 0x37e   :  { %v1374_v6 = vpop.f32.mrf.mxu2  ;;  %v2201_v58 = vpop.f32.mrf.mxu0  ;;  %3439 = vmatmul.msk.f32.gmra.mxu3 %vm1471_vm1, %v1465_v1 }
 0x37f   :  { %v1375_v48 = vadd.f32 %v1374_v6, %v1165_v16  ;;  %v2202_v30 = vadd.f32 %v2201_v58, %v1799_v56 }
 0x381   :  { %v2321_v53 = vadd.f32 %v4644_v25, %v2202_v30  ;;  %3498 = vmatmul.msk.f32.gmra.mxu0 %vm1877_vm11, %v1375_v48  ;;  %v1814_v55 = vpop.f32.mrf.mxu3 }
 0x383   :  { %v2385_v10 = vmax.f32 %v2321_v53, 0.0 }
 0x385   :  { %v5208_v24 = vmax.f32 %v5136_v3, %v2385_v10 }
 0x386   :  { %v1377_v33 = vpop.f32.mrf.mxu2  ;;  %v2204_v18 = vpop.f32.mrf.mxu0  ;;  %3440 = vmatmul.msk.f32.gmra.mxu3 %vm1471_vm1, %v1466_v37 }
 0x387   :  { %v1378_v59 = vadd.f32 %v1377_v33, %v1168_v38  ;;  %v2205_v51 = vadd.f32 %v2204_v18, %v1802_v46 }
 0x389   :  { %v2322_v45 = vadd.f32 %v4644_v25, %v2205_v51  ;;  %3499 = vmatmul.msk.f32.gmra.mxu0 %vm1877_vm11, %v1378_v59  ;;  %v1817_v56 = vpop.f32.mrf.mxu3  ;;  %v5222_v25 = vld [vmem:[%s5523_s10] ss:$0 sm:$0xff] }
 0x38b   :  { %v2386_v7 = vmax.f32 %v2322_v45, 0.0 }
 0x38d   :  { %v5217_v3 = vmax.f32 %v5145_v34, %v2386_v7  ;;  %v1177_v34 = vpop.f32.mrf.mxu1 }
 0x38e   :  { %v1380_v0 = vpop.f32.mrf.mxu2  ;;  %v2207_v40 = vpop.f32.mrf.mxu0  ;;  %3441 = vmatmul.msk.f32.gmra.mxu3 %vm1471_vm1, %v1467_v47 }
 0x38f   :  { %v1381_v2 = vadd.f32 %v1380_v0, %v1171_v42  ;;  %v2208_v20 = vadd.f32 %v2207_v40, %v1805_v39 }
 0x391   :  { %v2323_v11 = vadd.f32 %v5222_v25, %v2208_v20  ;;  %3500 = vmatmul.msk.f32.gmra.mxu0 %vm1877_vm11, %v1381_v2  ;;  %v1820_v46 = vpop.f32.mrf.mxu3 }
 0x393   :  { %v2387_v5 = vmax.f32 %v2323_v11, 0.0 }
 0x395   :  { %v5231_v26 = vmax.f32 %v5154_v14, %v2387_v5  ;;  %v1180_v21 = vpop.f32.mrf.mxu1 }
 0x396   :  { %v1383_v8 = vpop.f32.mrf.mxu2  ;;  %v2210_v61 = vpop.f32.mrf.mxu0  ;;  %3442 = vmatmul.msk.f32.gmra.mxu3 %vm1471_vm1, %v1468_v63 }
 0x397   :  { %v1384_v60 = vadd.f32 %v1383_v8, %v1174_v62  ;;  %v2211_v50 = vadd.f32 %v2210_v61, %v1808_v12 }
 0x399   :  { %v2324_v4 = vadd.f32 %v5222_v25, %v2211_v50  ;;  %3501 = vmatmul.msk.f32.gmra.mxu0 %vm1877_vm11, %v1384_v60  ;;  %v1823_v23 = vpop.f32.mrf.mxu3 }
 0x39b   :  { %v2388_v16 = vmax.f32 %v2324_v4, 0.0 }
 0x39d   :  { %v5240_v14 = vmax.f32 %v5163_v13, %v2388_v16  ;;  %v1183_v15 = vpop.f32.mrf.mxu1  ;;  %v1469_v13 = vld [vmem:[%s5540_s29 + $0x1f8] sm:$0xff] }
 0x39e   :  { %v1386_v36 = vpop.f32.mrf.mxu2  ;;  %v2213_v43 = vpop.f32.mrf.mxu0  ;;  %3443 = vmatmul.msk.f32.gmra.mxu3 %vm1471_vm1, %v1469_v13 }
 0x39f   :  { %v1387_v31 = vadd.f32 %v1386_v36, %v1177_v34  ;;  %v2214_v52 = vadd.f32 %v2213_v43, %v1811_v49 }
 0x3a1   :  { %v2325_v39 = vadd.f32 %v5222_v25, %v2214_v52  ;;  %3502 = vmatmul.msk.f32.gmra.mxu0 %vm1877_vm11, %v1387_v31  ;;  %v1826_v41 = vpop.f32.mrf.mxu3 }
 0x3a3   :  { %v2389_v32 = vmax.f32 %v2325_v39, 0.0 }
 0x3a5   :  { %v5245_v27 = vmax.f32 %v5172_v19, %v2389_v32  ;;  %v1186_v48 = vpop.f32.mrf.mxu1 }
 0x3a6   :  { %v1389_v38 = vpop.f32.mrf.mxu2  ;;  %v2216_v54 = vpop.f32.mrf.mxu0 }
 0x3a7   :  { %v1390_v17 = vadd.f32 %v1389_v38, %v1180_v21  ;;  %v2217_v57 = vadd.f32 %v2216_v54, %v1814_v55 }
 0x3a9   :  { %v2326_v12 = vadd.f32 %v5222_v25, %v2217_v57  ;;  %3503 = vmatmul.msk.f32.gmra.mxu0 %vm1877_vm11, %v1390_v17  ;;  %v1829_v1 = vpop.f32.mrf.mxu3 }
 0x3ab   :  { %v2390_v29 = vmax.f32 %v2326_v12, 0.0 }
 0x3ad   :  { %v2446_v19 = vmax.f32 %v5181_v22, %v2390_v29  ;;  %v1189_v22 = vpop.f32.mrf.mxu1 }
 0x3ae   :  { %v1392_v44 = vpop.f32.mrf.mxu2  ;;  %v2219_v6 = vpop.f32.mrf.mxu0 }
 0x3af   :  { %v1393_v58 = vadd.f32 %v1392_v44, %v1183_v15  ;;  %v2220_v42 = vadd.f32 %v2219_v6, %v1817_v56 }
 0x3b1   :  { %v2327_v30 = vadd.f32 %v5222_v25, %v2220_v42  ;;  %3504 = vmatmul.msk.f32.gmra.mxu0 %vm1877_vm11, %v1393_v58  ;;  %v1832_v40 = vpop.f32.mrf.mxu3 }
 0x3b3   :  { %v2391_v49 = vmax.f32 %v2327_v30, 0.0 }
 0x3b5   :  { %v2447_v53 = vmax.f32 %v5190_v35, %v2391_v49  ;;  %v1192_v20 = vpop.f32.mrf.mxu1 }
 0x3b6   :  { %v1395_v10 = vpop.f32.mrf.mxu2  ;;  %v2222_v33 = vpop.f32.mrf.mxu0 }
 0x3b7   :  { %v1396_v18 = vadd.f32 %v1395_v10, %v1186_v48  ;;  %v2223_v59 = vadd.f32 %v2222_v33, %v1820_v46 }
 0x3b9   :  { %v2328_v51 = vadd.f32 %v5222_v25, %v2223_v59  ;;  %3505 = vmatmul.msk.f32.gmra.mxu0 %vm1877_vm11, %v1396_v18  ;;  %v1835_v8 = vpop.f32.mrf.mxu3 }
 0x3bb   :  { %v2392_v55 = vmax.f32 %v2328_v51, 0.0 }
 0x3bd   :  { %v2448_v62 = vmax.f32 %v5199_v9, %v2392_v55 }
 0x3be   :  { %v1398_v45 = vpop.f32.mrf.mxu2  ;;  %v2225_v37 = vpop.f32.mrf.mxu0 }
 0x3bf   :  { %v1399_v7 = vadd.f32 %v1398_v45, %v1189_v22  ;;  %v2226_v0 = vadd.f32 %v2225_v37, %v1823_v23 }
 0x3c1   :  { %v2329_v35 = vadd.f32 %v5222_v25, %v2226_v0  ;;  %3506 = vmatmul.msk.f32.gmra.mxu0 %vm1877_vm11, %v1399_v7 }
 0x3c3   :  { %v2393_v2 = vmax.f32 %v2329_v35, 0.0 }
 0x3c5   :  { %v5263_v56 = vmax.f32 %v5208_v24, %v2393_v2  ;;  %v1838_v24 = vpop.f32.mrf.mxu3 }
 0x3c6   :  { %v1401_v11 = vpop.f32.mrf.mxu2  ;;  %v2228_v47 = vpop.f32.mrf.mxu0 }
 0x3c7   :  { %v1402_v34 = vadd.f32 %v1401_v11, %v1192_v20  ;;  %v2229_v5 = vadd.f32 %v2228_v47, %v1826_v41 }
 0x3c9   :  { %v2330_v9 = vadd.f32 %v5222_v25, %v2229_v5  ;;  %3507 = vmatmul.msk.f32.vlgmr.msrb.gmra.mxu2 %vm1877_vm11, %v1402_v34 }
 0x3cb   :  { %v2394_v61 = vmax.f32 %v2330_v9, 0.0 }
 0x3cd   :  { %v5268_v60 = vmax.f32 %v5217_v3, %v2394_v61  ;;  %v1841_v3 = vpop.f32.mrf.mxu3 }
 0x3ce   :  { %v2231_v50 = vpop.f32.mrf.mxu0 }
 0x3cf   :  { %v2232_v46 = vadd.f32 %v2231_v50, %v1829_v1 }
 0x3d1   :  { %v2331_v4 = vadd.f32 %v5222_v25, %v2232_v46 }
 0x3d3   :  { %v2395_v63 = vmax.f32 %v2331_v4, 0.0 }
 0x3d5   :  { %v5272_v16 = vmax.f32 %v5231_v26, %v2395_v63  ;;  %v1844_v17 = vpop.f32.mrf.mxu3 }
 0x3d6   :  { %v2234_v21 = vpop.f32.mrf.mxu0 }
 0x3d7   :  { %v2235_v36 = vadd.f32 %v2234_v21, %v1832_v40 }
 0x3d9   :  { %v2332_v43 = vadd.f32 %v5222_v25, %v2235_v36 }
 0x3db   :  { %v2396_v31 = vmax.f32 %v2332_v43, 0.0 }
 0x3dd   :  { %v5276_v52 = vmax.f32 %v5240_v14, %v2396_v31  ;;  %v1847_v44 = vpop.f32.mrf.mxu3 }
 0x3de   :  { %v2237_v39 = vpop.f32.mrf.mxu0 }
 0x3df   :  { %v2238_v23 = vadd.f32 %v2237_v39, %v1835_v8 }
 0x3e1   :  { %v2333_v32 = vadd.f32 %v5222_v25, %v2238_v23 }
 0x3e3   :  { %v2397_v38 = vmax.f32 %v2333_v32, 0.0 }
 0x3e5   :  { %v5280_v54 = vmax.f32 %v5245_v27, %v2397_v38  ;;  %v1850_v49 = vpop.f32.mrf.mxu3 }
 0x3e6   :  { %v2240_v15 = vpop.f32.mrf.mxu0 }
 0x3e7   :  { %v2241_v26 = vadd.f32 %v2240_v15, %v1838_v24 }
 0x3e9   :  { %v2334_v57 = vadd.f32 %v5222_v25, %v2241_v26 }
 0x3eb   :  { %v2398_v13 = vmax.f32 %v2334_v57, 0.0 }
 0x3ed   :  { %v5283_v12 = vmax.f32 %v2446_v19, %v2398_v13  ;;  %v1853_v18 = vpop.f32.mrf.mxu3 }
 0x3ee   :  { %v2243_v29 = vpop.f32.mrf.mxu0 }
 0x3ef   :  { %v2244_v14 = vadd.f32 %v2243_v29, %v1841_v3 }
 0x3f1   :  { %v2335_v41 = vadd.f32 %v5222_v25, %v2244_v14 }
 0x3f3   :  { %v2399_v6 = vmax.f32 %v2335_v41, 0.0 }
 0x3f5   :  { %v2455_v58 = vmax.f32 %v2447_v53, %v2399_v6  ;;  %v1856_v19 = vpop.f32.mrf.mxu3 }
 0x3f6   :  { %v2246_v42 = vpop.f32.mrf.mxu0 }
 0x3f7   :  { %v2247_v48 = vadd.f32 %v2246_v42, %v1844_v17 }
 0x3f9   :  { %v2336_v27 = vadd.f32 %v5222_v25, %v2247_v48 }
 0x3fb   :  { %v2400_v30 = vmax.f32 %v2336_v27, 0.0 }
 0x3fd   :  { %v2456_v1 = vmax.f32 %v2448_v62, %v2400_v30  ;;  %v1859_v22 = vpop.f32.mrf.mxu3 }
 0x3fe   :  { %v2249_v10 = vpop.f32.mrf.mxu0 }
 0x3ff   :  { %v2250_v20 = vadd.f32 %v2249_v10, %v1847_v44  ;;  %v2485_v10 = vpop.permute.xlu1 %2484 }
 0x400   :  { %vm2531_vm9 = vcmp.eq.s32.totalorder %v4153_v28, %v2485_v10 }
 0x401   :  { %v2337_v34 = vadd.f32 %v5222_v25, %v2250_v20 }
 0x403   :  { %v2401_v63 = vmax.f32 %v2337_v34, 0.0  ;;  %v2713_v34 = vld [vmem:[%s5525_s12] sm:$0x7] }
 0x404   :  { %3540 = vmatpush.msk.msra.mxu1 %vm1664_vm15, %v2713_v34 }
 0x405   :  { %v1862_v45 = vpop.f32.mrf.mxu3  ;;  %v2457_v32 = vmax.f32 %v5263_v56, %v2401_v63  ;;  %v2697_v63 = vld [vmem:[%s5517_s4] sm:$0xff] }
 0x406   :  { %v2252_v33 = vpop.f32.mrf.mxu0  ;;  %3541 = vmatmul.msk.f32.vlgmr.msra.gmra.mxu1 %vm1471_vm1, %v2697_v63 }
 0x407   :  { %v2253_v2 = vadd.f32 %v2252_v33, %v1850_v49 }
 0x409   :  { %v2338_v62 = vadd.f32 %v5222_v25, %v2253_v2 }
 0x40b   :  { %v2402_v8 = vmax.f32 %v2338_v62, 0.0 }
 0x40d   :  { %v1865_v7 = vpop.f32.mrf.mxu3  ;;  %v2458_v43 = vmax.f32 %v5268_v60, %v2402_v8  ;;  %v2694_v8 = vld [vmem:[%s5524_s11 + $0x8] sm:$0xff] }
 0x40e   :  { %v2255_v59 = vpop.f32.mrf.mxu0 }
 0x40f   :  { %v2256_v57 = vadd.f32 %v2255_v59, %v1853_v18 }
 0x411   :  { %v2339_v6 = vadd.f32 %v5222_v25, %v2256_v57 }
 0x413   :  { %v2403_v30 = vmax.f32 %v2339_v6, 0.0  ;;  %v2707_v6 = vld [vmem:[%s5517_s4 + $0x50] sm:$0xff] }
 0x415   :  { %v1868_v53 = vpop.f32.mrf.mxu3 }
 0x416   :  { %v2258_v51 = vpop.f32.mrf.mxu0 }
 0x417   :  { %v2259_v38 = vadd.f32 %v2258_v51, %v1856_v19 }
 0x419   :  { %v2340_v60 = vadd.f32 %v5222_v25, %v2259_v38 }
 0x41b   :  { %v2404_v48 = vmax.f32 %v2340_v60, 0.0 }
 0x41d   :  { %v1871_v35 = vpop.f32.mrf.mxu3  ;;  %v2460_v33 = vmax.f32 %v5276_v52, %v2404_v48  ;;  %v2491_v52 = vpop.permute.xlu0 %2490 }
 0x41e   :  { %v2261_v55 = vpop.f32.mrf.mxu0  ;;  %vm2533_vm13 = vcmp.eq.s32.totalorder %v4153_v28, %v2491_v52 }
 0x41f   :  { %v2262_v31 = vadd.f32 %v2261_v55, %v1859_v22 }
 0x421   :  { %v2341_v13 = vadd.f32 %v5222_v25, %v2262_v31 }
 0x423   :  { %v2405_v42 = vmax.f32 %v2341_v13, 0.0  ;;  %v2704_v13 = vld [vmem:[%s5517_s4 + $0x38] sm:$0xff] }
 0x425   :  { %v1874_v5 = vpop.f32.mrf.mxu3  ;;  %v2461_v49 = vmax.f32 %v5280_v54, %v2405_v42  ;;  %v2500_v22 = vpop.permute.xlu0 %2499 }
 0x426   :  { %v2264_v37 = vpop.f32.mrf.mxu0  ;;  %vm2536_vm2 = vcmp.eq.s32.totalorder %v4153_v28, %v2500_v22 }
 0x427   :  { %v2265_v24 = vadd.f32 %v2264_v37, %v1862_v45 }
 0x429   :  { %v2342_v15 = vadd.f32 %v5222_v25, %v2265_v24 }
 0x42b   :  { %v2406_v41 = vmax.f32 %v2342_v15, 0.0  ;;  %v2702_v15 = vld [vmem:[%s5517_s4 + $0x28] sm:$0xff] }
 0x42d   :  { %v2462_v27 = vmax.f32 %v5283_v12, %v2406_v41  ;;  %v2488_v12 = vpop.permute.xlu2 %2487  ;;  %v2706_v41 = vld [vmem:[%s5517_s4 + $0x48] sm:$0xff] }
 0x42e   :  { %v2267_v0 = vpop.f32.mrf.mxu0  ;;  %vm2532_vm12 = vcmp.eq.s32.totalorder %v4153_v28, %v2488_v12 }
 0x42f   :  { %v2268_v50 = vadd.f32 %v2267_v0, %v1865_v7 }
 0x431   :  { %v2343_v39 = vadd.f32 %v5222_v25, %v2268_v50 }
 0x433   :  { %v2407_v29 = vmax.f32 %v2343_v39, 0.0  ;;  %v2699_v39 = vld [vmem:[%s5517_s4 + $0x10] sm:$0xff] }
 0x435   :  { %v2463_v56 = vmax.f32 %v2455_v58, %v2407_v29  ;;  %v2497_v19 = vpop.permute.xlu2 %2496 }
 0x436   :  { %v2270_v40 = vpop.f32.mrf.mxu0  ;;  %vm2535_vm0 = vcmp.eq.s32.totalorder %v4153_v28, %v2497_v19 }
 0x437   :  { %v2271_v9 = vadd.f32 %v2270_v40, %v1868_v53  ;;  %v2509_v53 = vpop.permute.xlu0 %2508 }
 0x438   :  { %vm2539_vm5 = vcmp.eq.s32.totalorder %v4153_v28, %v2509_v53 }
 0x439   :  { %v2344_v21 = vadd.f32 %v5222_v25, %v2271_v9  ;;  %v2695_v9 = vld [vmem:[%s5524_s11 + $0x10] sm:$0xff] }
 0x43b   :  { %v2408_v26 = vmax.f32 %v2344_v21, 0.0 }
 0x43d   :  { %v2464_v44 = vmax.f32 %v2456_v1, %v2408_v26  ;;  %v3622_v1 = vmov 0.0   ;;  %v2506_v7 = vpop.permute.xlu2 %2505 }
 0x43e   :  { %v2273_v11 = vpop.f32.mrf.mxu0  ;;  %v3508_v58 = vsel %vm2531_vm9, 1.0, %v3622_v1  ;;  %v3509_v54 = vsel %vm2532_vm12, 1.0, %v3622_v1  ;;  %v3510_v18 = vsel %vm2533_vm13, 1.0, %v3622_v1  ;;  %v3512_v51 = vsel %vm2535_vm0, 1.0, %v3622_v1 }
 0x43f   :  { %v2274_v47 = vadd.f32 %v2273_v11, %v1871_v35  ;;  %v3513_v55 = vsel %vm2536_vm2, 1.0, %v3622_v1  ;;  %vm2538_vm4 = vcmp.eq.s32.totalorder %v4153_v28, %v2506_v7  ;;  %v3516_v40 = vsel %vm2539_vm5, 1.0, %v3622_v1  ;;  %v2518_v62 = vpop.permute.xlu0 %2517  ;;  %v5450_v7 = vld [vmem:[%s5526_s13] ss:$0 sm:$0xff] }
 0x440   :  { %v3515_v0 = vsel %vm2538_vm4, 1.0, %v3622_v1  ;;  %vm2542_vm8 = vcmp.eq.s32.totalorder %v4153_v28, %v2518_v62 }
 0x441   :  { %v2345_v46 = vadd.f32 %v5222_v25, %v2274_v47  ;;  %v3519_v47 = vsel %vm2542_vm8, 1.0, %v3622_v1 }
 0x443   :  { %v2409_v3 = vmax.f32 %v2345_v46, 0.0 }
 0x445   :  { %v2465_v14 = vmax.f32 %v2457_v32, %v2409_v3  ;;  %v2515_v20 = vpop.permute.xlu2 %2514 }
 0x446   :  { %vm2541_vm7 = vcmp.eq.s32.totalorder %v4153_v28, %v2515_v20 }
 0x447   :  { %v3518_v11 = vsel %vm2541_vm7, 1.0, %v3622_v1  ;;  %v2527_v21 = vpop.permute.xlu0 %2526 }
 0x448   :  { %vm2545_vm12 = vcmp.eq.s32.totalorder %v4153_v28, %v2527_v21 }
 0x44c   :  { %v2276_v61 = vpop.f32.mrf.mxu2 }
 0x44d   :  { %v2277_v4 = vadd.f32 %v2276_v61, %v1874_v5  ;;  %v2696_v5 = vld [vmem:[%s5524_s11 + $0x18] sm:$0xff]  ;;  %v2524_v46 = vpop.permute.xlu2 %2523 }
 0x44e   :  { %2891 = vmatpush.msra.mxu2 %v2696_v5  ;;  %vm2544_vm15 = vcmp.eq.s32.totalorder %v4153_v28, %v2524_v46 }
 0x44f   :  { %v2346_v36 = vadd.f32 %v5222_v25, %v2277_v4  ;;  %v2459_v25 = vmax.f32 %v5272_v16, %v2403_v30  ;;  %v2494_v16 = vpop.permute.xlu1 %2493  ;;  %v2693_v4 = vld [vmem:[%s5524_s11] sm:$0xff]  ;;  %v3521_v24 = vsel %vm2544_vm15, 1.0, %v3622_v1 }
 0x450   :  { %vm2534_vm14 = vcmp.eq.s32.totalorder %v4153_v28, %v2494_v16  ;;  %2892 = vmatpush.msra.mxu2 %v2695_v9 }
 0x451   :  { %v2410_v23 = vmax.f32 %v2346_v36, 0.0  ;;  %v3511_v59 = vsel %vm2534_vm14, 1.0, %v3622_v1  ;;  %v2698_v36 = vld [vmem:[%s5517_s4 + $0x8] sm:$0xff]  ;;  %vm2830_vm14 = vcmask 261120  }
 0x452   :  { %2893 = vmatpush.msra.mxu2 %v2694_v8  ;;  %3542 = vmatmul.msk.f32.gmra.mxu1 %vm1471_vm1, %v2698_v36 }
 0x453   :  { %v2466_v17 = vmax.f32 %v2458_v43, %v2410_v23  ;;  %v3522_v43 = vsel %vm2545_vm12, 1.0, %v3622_v1  ;;  %v2700_v23 = vld [vmem:[%s5517_s4 + $0x18] sm:$0xff] }
 0x454   :  { %2894 = vmatpush.msra.mxu2 %v2693_v4 }
 0x455   :  { %2636 = vmatpush.msra.mxu3 %v2466_v17  ;;  %v2703_v17 = vld [vmem:[%s5517_s4 + $0x30] sm:$0xff] }
 0x457   :  { %2637 = vmatpush.msra.mxu3 %v2465_v14  ;;  %v2503_v45 = vpop.permute.xlu1 %2502  ;;  %v2705_v14 = vld [vmem:[%s5517_s4 + $0x40] sm:$0xff] }
 0x458   :  { %vm2537_vm3 = vcmp.eq.s32.totalorder %v4153_v28, %v2503_v45 }
 0x459   :  { %2638 = vmatpush.msra.mxu3 %v2464_v44  ;;  %v3514_v37 = vsel %vm2537_vm3, 1.0, %v3622_v1 }
 0x45a   :  { %3543 = vmatmul.msk.f32.gmra.mxu1 %vm1471_vm1, %v2699_v39 }
 0x45b   :  { %2639 = vmatpush.msra.mxu3 %v2463_v56  ;;  %v2708_v56 = vld [vmem:[%s5517_s4 + $0x58] sm:$0xff] }
 0x45d   :  { %2640 = vmatpush.msra.mxu3 %v2462_v27  ;;  %v2709_v27 = vld [vmem:[%s5517_s4 + $0x60] sm:$0xff] }
 0x45f   :  { %2641 = vmatpush.msra.mxu3 %v2461_v49  ;;  %v2512_v35 = vpop.permute.xlu1 %2511  ;;  %v2710_v49 = vld [vmem:[%s5517_s4 + $0x68] sm:$0xff] }
 0x460   :  { %vm2540_vm6 = vcmp.eq.s32.totalorder %v4153_v28, %v2512_v35 }
 0x461   :  { %2642 = vmatpush.msra.mxu3 %v2460_v33  ;;  %v3517_v2 = vsel %vm2540_vm6, 1.0, %v3622_v1  ;;  %v2711_v33 = vld [vmem:[%s5517_s4 + $0x70] sm:$0xff] }
 0x462   :  { %3544 = vmatmul.msk.f32.gmra.mxu1 %vm1471_vm1, %v2700_v23 }
 0x463   :  { %2643 = vmatpush.msra.mxu3 %v2459_v25 }
 0x464   :  { %3524 = vmatmul.msk.f32.vlgmr.msra.gmra.mxu3 %vm2579_vm10, %v3508_v58 }
 0x467   :  { %v2521_v61 = vpop.permute.xlu1 %2520 }
 0x468   :  { %vm2543_vm9 = vcmp.eq.s32.totalorder %v4153_v28, %v2521_v61 }
 0x469   :  { %v3520_v50 = vsel %vm2543_vm9, 1.0, %v3622_v1 }
 0x46c   :  { %3525 = vmatmul.msk.f32.gmra.mxu3 %vm2579_vm10, %v3509_v54 }
 0x46f   :  { %v2530_v31 = vpop.permute.xlu1 %2529 }
 0x470   :  { %vm2546_vm13 = vcmp.eq.s32.totalorder %v4153_v28, %v2530_v31  ;;  %v2701_v28 = vld [vmem:[%s5517_s4 + $0x20] sm:$0xff] }
 0x471   :  { %v3523_v3 = vsel %vm2546_vm13, 1.0, %v3622_v1  ;;  %3545 = vmatmul.msk.f32.gmra.mxu1 %vm1471_vm1, %v2701_v28  ;;  %v2712_v1 = vld [vmem:[%s5517_s4 + $0x78] sm:$0xff] }
 0x474   :  { %3526 = vmatmul.msk.f32.gmra.mxu3 %vm2579_vm10, %v3510_v18 }
 0x479   :  { %3546 = vmatmul.msk.f32.gmra.mxu1 %vm1471_vm1, %v2702_v15 }
 0x47c   :  { %3527 = vmatmul.msk.f32.gmra.mxu3 %vm2579_vm10, %v3511_v59 }
 0x481   :  { %3547 = vmatmul.msk.f32.gmra.mxu1 %vm1471_vm1, %v2703_v17 }
 0x483   :  { %v2782_v12 = vpop.f32.mrf.mxu1 }
 0x484   :  { %3528 = vmatmul.msk.f32.gmra.mxu3 %vm2579_vm10, %v3512_v51 }
 0x489   :  { %3548 = vmatmul.msk.f32.gmra.mxu1 %vm1471_vm1, %v2704_v13 }
 0x48c   :  { %3529 = vmatmul.msk.f32.gmra.mxu3 %vm2579_vm10, %v3513_v55 }
 0x491   :  { %3549 = vmatmul.msk.f32.gmra.mxu1 %vm1471_vm1, %v2705_v14  ;;  %v3000_v14 = vld [vmem:[%s5527_s14 + $0x30] sm:$0xff] }
 0x494   :  { %3530 = vmatmul.msk.f32.gmra.mxu3 %vm2579_vm10, %v3514_v37 }
 0x499   :  { %3550 = vmatmul.msk.f32.gmra.mxu1 %vm1471_vm1, %v2706_v41 }
 0x49c   :  { %3531 = vmatmul.msk.f32.gmra.mxu3 %vm2579_vm10, %v3515_v0 }
 0x4a1   :  { %3551 = vmatmul.msk.f32.gmra.mxu1 %vm1471_vm1, %v2707_v6 }
 0x4a4   :  { %3532 = vmatmul.msk.f32.gmra.mxu3 %vm2579_vm10, %v3516_v40 }
 0x4a9   :  { %3552 = vmatmul.msk.f32.gmra.mxu1 %vm1471_vm1, %v2708_v56  ;;  %v2996_v56 = vld [vmem:[%s5527_s14 + $0x10] sm:$0xff] }
 0x4ac   :  { %3533 = vmatmul.msk.f32.gmra.mxu3 %vm2579_vm10, %v3517_v2 }
 0x4b1   :  { %3553 = vmatmul.msk.f32.gmra.mxu1 %vm1471_vm1, %v2709_v27  ;;  %v2994_v27 = vld [vmem:[%s5527_s14] sm:$0xff] }
 0x4b4   :  { %3534 = vmatmul.msk.f32.gmra.mxu3 %vm2579_vm10, %v3518_v11 }
 0x4b9   :  { %3554 = vmatmul.msk.f32.gmra.mxu1 %vm1471_vm1, %v2710_v49 }
 0x4bc   :  { %3535 = vmatmul.msk.f32.gmra.mxu3 %vm2579_vm10, %v3519_v47 }
 0x4c1   :  { %3555 = vmatmul.msk.f32.gmra.mxu1 %vm1471_vm1, %v2711_v33 }
 0x4c4   :  { %3536 = vmatmul.msk.f32.gmra.mxu3 %vm2579_vm10, %v3520_v50 }
 0x4c9   :  { %3556 = vmatmul.msk.f32.gmra.mxu1 %vm1471_vm1, %v2712_v1  ;;  %vm3072_vm1 = vcmask 517120  }
 0x4cc   :  { %3537 = vmatmul.msk.f32.gmra.mxu3 %vm2579_vm10, %v3521_v24 }
 0x4cf   :  { %v2785_v52 = vpop.f32.mrf.mxu1 }
 0x4d4   :  { %3538 = vmatmul.msk.f32.gmra.mxu3 %vm2579_vm10, %v3522_v43 }
 0x4d7   :  { %v2788_v59 = vpop.f32.mrf.mxu1 }
 0x4dc   :  { %3539 = vmatmul.msk.f32.gmra.mxu3 %vm2579_vm10, %v3523_v3 }
 0x4df   :  { %v2791_v19 = vpop.f32.mrf.mxu1 }
 0x4e7   :  { %v2645_v32 = vpop.f32.mrf.mxu3 }
 0x4e8   :  { %3557 = vmatmul.msk.f32.vlgmr.msra.gmra.mxu2 %vm2830_vm14, %v2645_v32 }
 0x4ee   :  { %v2794_v45 = vpop.f32.mrf.mxu1 }
 0x4ef   :  { %v2648_v38 = vpop.f32.mrf.mxu3 }
 0x4f0   :  { %3558 = vmatmul.msk.f32.gmra.mxu2 %vm2830_vm14, %v2648_v38 }
 0x4f6   :  { %v2797_v35 = vpop.f32.mrf.mxu1 }
 0x4f7   :  { %v2651_v26 = vpop.f32.mrf.mxu3 }
 0x4f8   :  { %3559 = vmatmul.msk.f32.gmra.mxu2 %vm2830_vm14, %v2651_v26 }
 0x4fe   :  { %v2800_v8 = vpop.f32.mrf.mxu1 }
 0x4ff   :  { %v2654_v57 = vpop.f32.mrf.mxu3 }
 0x500   :  { %3560 = vmatmul.msk.f32.gmra.mxu2 %vm2830_vm14, %v2654_v57 }
 0x506   :  { %v2803_v36 = vpop.f32.mrf.mxu1 }
 0x507   :  { %v2657_v29 = vpop.f32.mrf.mxu3 }
 0x508   :  { %3561 = vmatmul.msk.f32.gmra.mxu2 %vm2830_vm14, %v2657_v29  ;;  %v3001_v29 = vld [vmem:[%s5527_s14 + $0x38] sm:$0xff] }
 0x509   :  { %3020 = vmatpush.msrb.mxu3 %v3001_v29 }
 0x50b   :  { %3021 = vmatpush.msrb.mxu3 %v3000_v14 }
 0x50e   :  { %v2806_v38 = vpop.f32.mrf.mxu1 }
 0x50f   :  { %v2660_v60 = vpop.f32.mrf.mxu3 }
 0x510   :  { %3562 = vmatmul.msk.f32.gmra.mxu2 %vm2830_vm14, %v2660_v60  ;;  %v2999_v60 = vld [vmem:[%s5527_s14 + $0x28] sm:$0xff] }
 0x511   :  { %3022 = vmatpush.msrb.mxu3 %v2999_v60 }
 0x516   :  { %v2809_v26 = vpop.f32.mrf.mxu1 }
 0x517   :  { %v2663_v44 = vpop.f32.mrf.mxu3 }
 0x518   :  { %3563 = vmatmul.msk.f32.gmra.mxu2 %vm2830_vm14, %v2663_v44  ;;  %v2998_v44 = vld [vmem:[%s5527_s14 + $0x20] sm:$0xff] }
 0x519   :  { %3023 = vmatpush.msrb.mxu3 %v2998_v44  ;;  %v3592_v44 = vld [vmem:[%s5530_s17] ss:$0 sm:$0xff] }
 0x51e   :  { %v2812_v57 = vpop.f32.mrf.mxu1 }
 0x51f   :  { %v2666_v42 = vpop.f32.mrf.mxu3 }
 0x520   :  { %3564 = vmatmul.msk.f32.gmra.mxu2 %vm2830_vm14, %v2666_v42  ;;  %v2997_v42 = vld [vmem:[%s5527_s14 + $0x18] sm:$0xff] }
 0x521   :  { %3024 = vmatpush.msrb.mxu3 %v2997_v42 }
 0x523   :  { %3025 = vmatpush.msrb.mxu3 %v2996_v56 }
 0x526   :  { %v2815_v41 = vpop.f32.mrf.mxu1 }
 0x527   :  { %v2669_v48 = vpop.f32.mrf.mxu3 }
 0x528   :  { %3565 = vmatmul.msk.f32.gmra.mxu2 %vm2830_vm14, %v2669_v48  ;;  %v2995_v48 = vld [vmem:[%s5527_s14 + $0x8] sm:$0xff] }
 0x529   :  { %3026 = vmatpush.msrb.mxu3 %v2995_v48 }
 0x52b   :  { %3027 = vmatpush.msrb.mxu3 %v2994_v27 }
 0x52e   :  { %v2818_v49 = vpop.f32.mrf.mxu1 }
 0x52f   :  { %v2672_v30 = vpop.f32.mrf.mxu3 }
 0x530   :  { %3566 = vmatmul.msk.f32.gmra.mxu2 %vm2830_vm14, %v2672_v30 }
 0x537   :  { %v2675_v10 = vpop.f32.mrf.mxu3 }
 0x538   :  { %3567 = vmatmul.msk.f32.gmra.mxu2 %vm2830_vm14, %v2675_v10 }
 0x53f   :  { %v2678_v25 = vpop.f32.mrf.mxu3 }
 0x540   :  { %3568 = vmatmul.msk.f32.gmra.mxu2 %vm2830_vm14, %v2678_v25  ;;  %v2821_v25 = vpop.f32.mrf.mxu1 }
 0x547   :  { %v2681_v58 = vpop.f32.mrf.mxu3 }
 0x548   :  { %3569 = vmatmul.msk.f32.gmra.mxu2 %vm2830_vm14, %v2681_v58 }
 0x54f   :  { %v2684_v54 = vpop.f32.mrf.mxu3 }
 0x550   :  { %3570 = vmatmul.msk.f32.gmra.mxu2 %vm2830_vm14, %v2684_v54 }
 0x557   :  { %v2687_v18 = vpop.f32.mrf.mxu3 }
 0x558   :  { %3571 = vmatmul.msk.f32.gmra.mxu2 %vm2830_vm14, %v2687_v18 }
 0x55f   :  { %v2690_v16 = vpop.f32.mrf.mxu3 }
 0x560   :  { %3572 = vmatmul.msk.f32.gmra.mxu2 %vm2830_vm14, %v2690_v16 }
 0x56b   :  { %v2896_v51 = vpop.f32.mrf.mxu2 }
 0x56c   :  { %v2897_v22 = vadd.f32 %v2896_v51, %v2782_v12 }
 0x56e   :  { %v2948_v53 = vadd.f32 %v5450_v7, %v2897_v22  ;;  %v2824_v22 = vpop.f32.mrf.mxu1 }
 0x570   :  { %v2964_v20 = vmax.f32 %v2948_v53, 0.0 }
 0x573   :  { %v2899_v55 = vpop.f32.mrf.mxu2 }
 0x574   :  { %v2900_v37 = vadd.f32 %v2899_v55, %v2785_v52 }
 0x576   :  { %v2949_v34 = vadd.f32 %v5450_v7, %v2900_v37 }
 0x578   :  { %v2965_v61 = vmax.f32 %v2949_v34, 0.0 }
 0x57b   :  { %v2902_v0 = vpop.f32.mrf.mxu2 }
 0x57c   :  { %v2903_v40 = vadd.f32 %v2902_v0, %v2788_v59 }
 0x57e   :  { %v2950_v2 = vadd.f32 %v5450_v7, %v2903_v40 }
 0x580   :  { %v2966_v11 = vmax.f32 %v2950_v2, 0.0 }
 0x582   :  { %v2980_v62 = vmax.f32 %v2964_v20, %v2966_v11 }
 0x583   :  { %v2905_v47 = vpop.f32.mrf.mxu2 }
 0x584   :  { %v2906_v5 = vadd.f32 %v2905_v47, %v2791_v19 }
 0x586   :  { %v2951_v9 = vadd.f32 %v5450_v7, %v2906_v5 }
 0x588   :  { %v2967_v50 = vmax.f32 %v2951_v9, 0.0 }
 0x58a   :  { %v2981_v46 = vmax.f32 %v2965_v61, %v2967_v50 }
 0x58b   :  { %v2908_v4 = vpop.f32.mrf.mxu2 }
 0x58c   :  { %v2909_v63 = vadd.f32 %v2908_v4, %v2794_v45 }
 0x58e   :  { %v2952_v24 = vadd.f32 %v5450_v7, %v2909_v63  ;;  %v2827_v63 = vpop.f32.mrf.mxu1 }
 0x590   :  { %v2968_v21 = vmax.f32 %v2952_v24, 0.0 }
 0x592   :  { %v2982_v43 = vmax.f32 %v2980_v62, %v2968_v21 }
 0x593   :  { %v2911_v31 = vpop.f32.mrf.mxu2 }
 0x594   :  { %v2912_v39 = vadd.f32 %v2911_v31, %v2797_v35 }
 0x596   :  { %v2953_v3 = vadd.f32 %v5450_v7, %v2912_v39 }
 0x598   :  { %v2969_v23 = vmax.f32 %v2953_v3, 0.0 }
 0x59a   :  { %v5458_v32 = vmax.f32 %v2981_v46, %v2969_v23 }
 0x59b   :  { %v2914_v28 = vpop.f32.mrf.mxu2 }
 0x59c   :  { %v2915_v33 = vadd.f32 %v2914_v28, %v2800_v8 }
 0x59e   :  { %v2954_v58 = vadd.f32 %v5450_v7, %v2915_v33 }
 0x5a0   :  { %v2970_v16 = vmax.f32 %v2954_v58, 0.0 }
 0x5a2   :  { %v2984_v37 = vmax.f32 %v2982_v43, %v2970_v16 }
 0x5a3   :  { %v2917_v15 = vpop.f32.mrf.mxu2 }
 0x5a4   :  { %v2918_v59 = vadd.f32 %v2917_v15, %v2803_v36 }
 0x5a6   :  { %v2955_v0 = vadd.f32 %v5450_v7, %v2918_v59 }
 0x5a8   :  { %v2971_v34 = vmax.f32 %v2955_v0, 0.0 }
 0x5aa   :  { %v2985_v24 = vmax.f32 %v5458_v32, %v2971_v34  ;;  %v3590_v32 = vld [vmem:[%s5528_s15] ss:$0 sm:$0xff]  ;;  %s3623_s15 = smov [#allocation2]  }
 0x5ab   :  { %v2920_v17 = vpop.f32.mrf.mxu2  ;;  %s3079_s4 = sshll.u32 %s3623_s15, 4  ;;  %s3080_s4 = int_to_ptr.vmem [resolvable:$true] %s3079_s4 }
 0x5ac   :  { %v2921_v1 = vadd.f32 %v2920_v17, %v2806_v38 }
 0x5ae   :  { %v2956_v54 = vadd.f32 %v5450_v7, %v2921_v1 }
 0x5b0   :  { %v2972_v51 = vmax.f32 %v2956_v54, 0.0 }
 0x5b2   :  { %v2986_v35 = vmax.f32 %v2984_v37, %v2972_v51 }
 0x5b3   :  { %v2923_v13 = vpop.f32.mrf.mxu2 }
 0x5b4   :  { %v2924_v55 = vadd.f32 %v2923_v13, %v2809_v26 }
 0x5b6   :  { %v2957_v20 = vadd.f32 %v5450_v7, %v2924_v55 }
 0x5b8   :  { %v2973_v61 = vmax.f32 %v2957_v20, 0.0 }
 0x5ba   :  { %v2987_v31 = vmax.f32 %v2985_v24, %v2973_v61 }
 0x5bb   :  { %v2926_v6 = vpop.f32.mrf.mxu2 }
 0x5bc   :  { %v2927_v12 = vadd.f32 %v2926_v6, %v2812_v57 }
 0x5be   :  { %v2958_v19 = vadd.f32 %v5450_v7, %v2927_v12 }
 0x5c0   :  { %v2974_v53 = vmax.f32 %v2958_v19, 0.0 }
 0x5c2   :  { %v2988_v5 = vmax.f32 %v2986_v35, %v2974_v53 }
 0x5c3   :  { %v2929_v30 = vpop.f32.mrf.mxu2 }
 0x5c4   :  { %v2930_v40 = vadd.f32 %v2929_v30, %v2815_v41  ;;  %v3591_v41 = vld [vmem:[%s5529_s16] ss:$0 sm:$0xff] }
 0x5c6   :  { %v2959_v9 = vadd.f32 %v5450_v7, %v2930_v40 }
 0x5c8   :  { %v2975_v21 = vmax.f32 %v2959_v9, 0.0 }
 0x5ca   :  { %v2989_v23 = vmax.f32 %v2987_v31, %v2975_v21 }
 0x5cb   :  { %v2932_v10 = vpop.f32.mrf.mxu2 }
 0x5cc   :  { %v2933_v18 = vadd.f32 %v2932_v10, %v2818_v49 }
 0x5ce   :  { %v2960_v45 = vadd.f32 %v5450_v7, %v2933_v18 }
 0x5d0   :  { %v2976_v11 = vmax.f32 %v2960_v45, 0.0 }
 0x5d2   :  { %v2990_v50 = vmax.f32 %v2988_v5, %v2976_v11 }
 0x5d3   :  { %v2935_v52 = vpop.f32.mrf.mxu2 }
 0x5d4   :  { %v2936_v62 = vadd.f32 %v2935_v52, %v2821_v25 }
 0x5d6   :  { %v2961_v46 = vadd.f32 %v5450_v7, %v2936_v62 }
 0x5d8   :  { %v2977_v39 = vmax.f32 %v2961_v46, 0.0 }
 0x5da   :  { %v2991_v38 = vmax.f32 %v2989_v23, %v2977_v39 }
 0x5db   :  { %v2938_v2 = vpop.f32.mrf.mxu2 }
 0x5dc   :  { %v2939_v47 = vadd.f32 %v2938_v2, %v2824_v22 }
 0x5de   :  { %v2962_v8 = vadd.f32 %v5450_v7, %v2939_v47 }
 0x5e0   :  { %v2978_v4 = vmax.f32 %v2962_v8, 0.0 }
 0x5e2   :  { %v2992_v36 = vmax.f32 %v2990_v50, %v2978_v4 }
 0x5e3   :  { %v2941_v43 = vpop.f32.mrf.mxu2 }
 0x5e4   :  { %v2942_v3 = vadd.f32 %v2941_v43, %v2827_v63  ;;  %3573 = vmatmul.msk.f32.vlgmr.msrb.gmra.mxu3 %vm2579_vm10, %v2992_v36 }
 0x5e6   :  { %v2963_v28 = vadd.f32 %v5450_v7, %v2942_v3  ;;  %v3037_v7 = vld [vmem:[%s5518_s5] sm:$0x3] }
 0x5e8   :  { %v2979_v15 = vmax.f32 %v2963_v28, 0.0 }
 0x5ea   :  { %v2993_v26 = vmax.f32 %v2991_v38, %v2979_v15 }
 0x5ec   :  { %3574 = vmatmul.msk.f32.gmra.mxu3 %vm2579_vm10, %v2993_v26 }
 0x667   :  { %v3029_v17 = vpop.f32.mrf.mxu3 }
 0x668   :  { %v3030_v13 = vadd.f32 %v3590_v32, %v3029_v17 }
 0x66a   :  { %v3035_v60 = vmax.f32 %v3030_v13, 0.0 }
 0x66f   :  { %v3032_v57 = vpop.f32.mrf.mxu3 }
 0x670   :  { %v3033_v29 = vadd.f32 %v3590_v32, %v3032_v57 }
 0x672   :  { %v3036_v14 = vmax.f32 %v3033_v29, 0.0 }
 0x674   :  { %3055 = vmatpush.msra.mxu3 %v3036_v14 }
 0x676   :  { %3056 = vmatpush.msra.mxu3 %v3035_v60 }
 0x677   :  { %3575 = vmatmul.msk.f32.vlgmr.msra.gmra.mxu3 %vm1877_vm11, %v3037_v7 }
 0x6fa   :  { %v3058_v6 = vpop.f32.mrf.mxu3 }
 0x6fb   :  { %v3065_v42 = vmul.f32 %v3591_v41, %v3058_v6 }
 0x6fd   :  { %v3070_v56 = vadd.f32 %v3592_v44, %v3065_v42 }
 0x6ff   :  { %v3071_v48 = vmax.f32 %v3070_v56, 0.0 }
 0x701   :  { %3073 = vst.msk [vmem:[#allocation2] sm:$0x3] %vm3072_vm1, %v3071_v48 }
 0x702   :  { %3084 = dma.vmem_to_hbm [thread:$0]  %s3080_s4, 32, %s3082_s26, [#allocation3]  }
 0x703   :  { %3618 = dma.done.wait [#allocation3], 32  }
 0x704   :  { %3619 = vsyncadd [#allocation3], 4294967264 }
 0x705   :  { %3089 = vsyncpa [#allocation3], 1 }

</bundles_post_ra>
